<compile_context>
chip_gen: v6e
topology: v6e:2x2x1
jax: 0.10.0
libtpu: 0.0.40
codegen_flags: <defaults>
</compile_context>

<pallas_src>
import numpy as np

import jax
import jax.numpy as jnp
from jax.experimental import pallas as pl
from jax.experimental.pallas import tpu as pltpu


TILE_B = 8  # batch tile per grid step (one sublane group)


# ----------------------------- fused Pallas kernel ------------------------------- #
def _mnist_fused_kernel(xr_ref, t1_ref, b1_ref, u2_ref, b2_ref, vfc_ref, bf_ref,
                        out_ref):
    """Fused conv1+ReLU -> conv2+ReLU -> fc for one batch tile.

    xr_ref : (TB, 4, 7, 28)  input rows split by row%4:  xr[n, m, u, w] = x[n, 4u+m, w]
    t1_ref : (5, 28, 60)     conv1 banded weights (per kernel row i), cols = ow*5 + c
    b1_ref : (1, 60)         conv1 bias tiled over ow
    u2_ref : (5, 60, 200)    conv2 banded weights (per kernel row i2), cols = ow2*50 + o
    b2_ref : (1, 200)        conv2 bias tiled over ow2
    vfc_ref: (4, 200, 10)    fc weights per output row oh (PyTorch NCHW flatten order)
    bf_ref : (1, 10)         fc bias
    out_ref: (TB, 10)        logits
    """
    tb = out_ref.shape[0]

    # ---- conv1 + ReLU -------------------------------------------------------------
    # Output rows oh = 2a + rp (rp = output-row parity).  For kernel row i the input
    # row is 4a + (2rp + i)  ->  contiguous slice of the mod-4-split input.
    # The width/channel part is one GEMM against a banded weight: lane = ow*5 + c.
    h1 = []  # h1[rp] : (TB, 6, 60),  [n, a, ow*5 + c] == conv1_out[n, c, 2a+rp, ow]
    for rp in range(2):
        acc = jnp.zeros((tb * 6, 60), jnp.float32)
        for i in range(5):
            s = 2 * rp + i
            rows = xr_ref[:, s % 4, s // 4:s // 4 + 6, :]           # (TB, 6, 28)
            acc = acc + jnp.dot(rows.reshape(tb * 6, 28), t1_ref[i],
                                preferred_element_type=jnp.float32)
        h1.append(jnp.maximum(acc + b1_ref[...], 0.0).reshape(tb, 6, 60))

    # ---- conv2 + ReLU -------------------------------------------------------------
    # Output rows oh2 = 0..3.  For kernel row i2 the conv1 row is 2*oh2 + i2, i.e.
    # parity i2%2 and a = oh2 + i2//2  ->  contiguous slice of h1[i2%2].
    # Width/channel contraction is again one GEMM against a banded weight.
    acc2 = jnp.zeros((tb * 4, 200), jnp.float32)
    for i2 in range(5):
        lo = i2 // 2
        rows = h1[i2 % 2][:, lo:lo + 4, :].reshape(tb * 4, 60)      # (TB*4, 60)
        acc2 = acc2 + jnp.dot(rows, u2_ref[i2],
                              preferred_element_type=jnp.float32)
    h2 = jnp.maximum(acc2 + b2_ref[...], 0.0).reshape(tb, 4, 200)   # [n, oh2, ow2*50+o]

    # ---- fc -----------------------------------------------------------------------
    # fc weight was pre-permuted at init to match PyTorch's NCHW .view() flatten, so
    # the contraction is 4 small GEMMs (one per output row) on the channel-last h2.
    logits = jnp.zeros((tb, 10), jnp.float32)
    for oh in range(4):
        logits = logits + jnp.dot(h2[:, oh, :], vfc_ref[oh],
                                  preferred_element_type=jnp.float32)
    out_ref[...] = logits + bf_ref[...]


# ------------------------------- parameter handling ------------------------------ #
def init_params(key):
    """PyTorch-layout parameters (same init scheme as nn.Conv2d / nn.Linear)."""
    k1, k2, k3, k4, k5, k6 = jax.random.split(key, 6)

    def uni(k, shape, fan_in):
        bound = 1.0 / np.sqrt(fan_in)
        return jax.random.uniform(k, shape, jnp.float32, -bound, bound)

    return {
        "w1": uni(k1, (5, 1, 5, 5), 1 * 5 * 5),
        "b1": uni(k2, (5,), 1 * 5 * 5),
        "w2": uni(k3, (50, 5, 5, 5), 5 * 5 * 5),
        "b2": uni(k4, (50,), 5 * 5 * 5),
        "wfc": uni(k5, (10, 50 * 4 * 4), 50 * 4 * 4),  # PyTorch Linear: (out, in)
        "bfc": uni(k6, (10,), 50 * 4 * 4),
    }


def prepare_params(pt):
    """Hoist every weight re-layout out of the forward pass (done once at init).

    Each conv is lowered exactly (same arithmetic) to banded/Toeplitz GEMM weights
    over the width axis, so the kernel never needs strided access or an im2col
    patch tensor.
    """
    w1 = np.asarray(pt["w1"], np.float32)    # (5, 1, 5, 5)   (O, C, kh, kw)
    b1 = np.asarray(pt["b1"], np.float32)    # (5,)
    w2 = np.asarray(pt["w2"], np.float32)    # (50, 5, 5, 5)
    b2 = np.asarray(pt["b2"], np.float32)    # (50,)
    wfc = np.asarray(pt["wfc"], np.float32)  # (10, 800)
    bfc = np.asarray(pt["bfc"], np.float32)  # (10,)

    # conv1: t1[i, w, ow*5 + c] = w1[c, 0, i, w - 2*ow]  (banded over input width)
    t1 = np.zeros((5, 28, 60), np.float32)
    for i in range(5):
        for ow in range(12):
            for j in range(5):
                t1[i, 2 * ow + j, ow * 5:ow * 5 + 5] = w1[:, 0, i, j]
    b1t = np.tile(b1[None, None, :], (1, 12, 1)).reshape(1, 60)

    # conv2: u2[i2, (2*ow2+j2)*5 + c, ow2*50 + o] = w2[o, c, i2, j2]
    u2 = np.zeros((5, 60, 200), np.float32)
    for i2 in range(5):
        for ow2 in range(4):
            for j2 in range(5):
                for c in range(5):
                    u2[i2, (2 * ow2 + j2) * 5 + c,
                       ow2 * 50:(ow2 + 1) * 50] = w2[:, c, i2, j2]
    b2t = np.tile(b2[None, None, :], (1, 4, 1)).reshape(1, 200)

    # fc: vfc[oh, ow*50 + o, k] = wfc[k, o*16 + oh*4 + ow]   (PyTorch NCHW flatten)
    vfc = np.transpose(wfc.reshape(10, 50, 4, 4), (2, 3, 1, 0)).reshape(4, 200, 10)
    bfc_t = bfc.reshape(1, 10)

    out = dict(t1=t1, b1=b1t, u2=u2, b2=b2t, vfc=vfc, bfc=bfc_t)
    return {k: jnp.asarray(v) for k, v in out.items()}


# ------------------------------------ forward ------------------------------------ #
def mnist_cnn_forward(params, x):
    """x: (N, 1, 28, 28) float32 -> logits (N, 10). Single fused pallas_call."""
    n = x.shape[0]
    nb = pl.cdiv(n, TILE_B)
    n_pad = nb * TILE_B
    if n_pad != n:
        x = jnp.pad(x, ((0, n_pad - n), (0, 0), (0, 0), (0, 0)))

    # Row-parity (mod-4) split of the input: same byte count as x; lets every
    # in-kernel slice be contiguous (no strided access, no im2col tensor in HBM).
    xr = x.reshape(n_pad, 7, 4, 28).transpose(0, 2, 1, 3)           # (N, 4, 7, 28)

    out = pl.pallas_call(
        _mnist_fused_kernel,
        out_shape=jax.ShapeDtypeStruct((n_pad, 10), jnp.float32),
        grid=(nb,),
        in_specs=[
            pl.BlockSpec((TILE_B, 4, 7, 28), lambda b: (b, 0, 0, 0)),
            pl.BlockSpec((5, 28, 60), lambda b: (0, 0, 0)),
            pl.BlockSpec((1, 60), lambda b: (0, 0)),
            pl.BlockSpec((5, 60, 200), lambda b: (0, 0, 0)),
            pl.BlockSpec((1, 200), lambda b: (0, 0)),
            pl.BlockSpec((4, 200, 10), lambda b: (0, 0, 0)),
            pl.BlockSpec((1, 10), lambda b: (0, 0)),
        ],
        out_specs=pl.BlockSpec((TILE_B, 10), lambda b: (b, 0)),
        compiler_params=pltpu.CompilerParams(
            dimension_semantics=("parallel",)),          # shard batch tiles (v7x 2 TCs)
    )(xr, params["t1"], params["b1"], params["u2"], params["b2"],
      params["vfc"], params["bfc"])
    return out[:n]


# --------------------------- pure-JAX reference (checking) ----------------------- #
def reference_forward(pt, x):
    dn = ("NCHW", "OIHW", "NCHW")
    y = jax.lax.conv_general_dilated(x, pt["w1"], (2, 2), "VALID",
                                     dimension_numbers=dn)
    y = jnp.maximum(y + pt["b1"][None, :, None, None], 0.0)
    y = jax.lax.conv_general_dilated(y, pt["w2"], (2, 2), "VALID",
                                     dimension_numbers=dn)
    y = jnp.maximum(y + pt["b2"][None, :, None, None], 0.0)
    y = y.reshape(y.shape[0], -1)
    return y @ pt["wfc"].T + pt["bfc"]


if __name__ == "__main__":
    key = jax.random.PRNGKey(0)
    kx, kp = jax.random.split(key)
    # MNIST-consistent input (28x28 is required so the fc sees 50*4*4 features);
    # batch 16 -> grid of 2 "parallel" batch tiles of 8.
    x = jax.random.normal(kx, (16, 1, 28, 28), dtype=jnp.float32)
    pt_params = init_params(kp)
    params = prepare_params(pt_params)

    fwd = jax.jit(mnist_cnn_forward)
    logits = fwd(params, x)
    jax.block_until_ready(logits)

    assert logits.shape == (16, 10) and logits.dtype == jnp.float32
    ref = reference_forward(pt_params, x)
    err = float(jnp.max(jnp.abs(logits - ref)))
    assert err < 1e-3, f"mismatch vs reference: {err}"
    print("KERNEL_OK")
</pallas_src>

<mosaic_0001>
module attributes {stable_mosaic.version = 11 : i64} {
  func.func @_mnist_fused_kernel(%arg0: i32, %arg1: memref<8x4x7x28xf32, #tpu.memory_space<vmem>>, %arg2: memref<5x28x60xf32, #tpu.memory_space<vmem>>, %arg3: memref<1x60xf32, #tpu.memory_space<vmem>>, %arg4: memref<5x60x200xf32, #tpu.memory_space<vmem>>, %arg5: memref<1x200xf32, #tpu.memory_space<vmem>>, %arg6: memref<4x200x10xf32, #tpu.memory_space<vmem>>, %arg7: memref<1x10xf32, #tpu.memory_space<vmem>>, %arg8: memref<8x10xf32, #tpu.memory_space<vmem>>) attributes {dimension_semantics = [#tpu.dimension_semantics<parallel>], iteration_bounds = array<i64: 2>, scalar_prefetch = 0 : i64, scratch_operands = 0 : i64, tpu.core_type = #tpu.core_type<tc>, window_params = [{transform_indices = @transform_0, window_bounds = array<i64: 8, 4, 7, 28>}, {pipeline_mode = #tpu.pipeline_mode<synchronous>, transform_indices = @transform_1, window_bounds = array<i64: 5, 28, 60>}, {pipeline_mode = #tpu.pipeline_mode<synchronous>, transform_indices = @transform_2, window_bounds = array<i64: 1, 60>}, {pipeline_mode = #tpu.pipeline_mode<synchronous>, transform_indices = @transform_3, window_bounds = array<i64: 5, 60, 200>}, {pipeline_mode = #tpu.pipeline_mode<synchronous>, transform_indices = @transform_4, window_bounds = array<i64: 1, 200>}, {pipeline_mode = #tpu.pipeline_mode<synchronous>, transform_indices = @transform_5, window_bounds = array<i64: 4, 200, 10>}, {pipeline_mode = #tpu.pipeline_mode<synchronous>, transform_indices = @transform_6, window_bounds = array<i64: 1, 10>}, {transform_indices = @transform_7, window_bounds = array<i64: 8, 10>}]} {
    %cst = arith.constant 0.000000e+00 : f32
    %0 = vector.broadcast %cst : f32 to vector<48x60xf32>
    %c0 = arith.constant 0 : index
    %c0_0 = arith.constant 0 : index
    %c0_1 = arith.constant 0 : index
    %c0_2 = arith.constant 0 : index
    %1 = vector.load %arg1[%c0, %c0_0, %c0_1, %c0_2] : memref<8x4x7x28xf32, #tpu.memory_space<vmem>>, vector<8x1x6x28xf32>
    %2 = vector.shape_cast %1 : vector<8x1x6x28xf32> to vector<8x6x28xf32>
    %3 = vector.shape_cast %2 : vector<8x6x28xf32> to vector<48x28xf32>
    %c0_3 = arith.constant 0 : index
    %c0_4 = arith.constant 0 : index
    %c0_5 = arith.constant 0 : index
    %4 = vector.load %arg2[%c0_3, %c0_4, %c0_5] : memref<5x28x60xf32, #tpu.memory_space<vmem>>, vector<1x28x60xf32>
    %5 = vector.shape_cast %4 : vector<1x28x60xf32> to vector<28x60xf32>
    %cst_6 = arith.constant dense<0.000000e+00> : vector<48x60xf32>
    %6 = tpu.matmul %3, %5, %cst_6 {dimension_numbers = #tpu.dot_dimension_numbers<[1], [0], [0], [1], [0, 0, 1, 1], [], []>} : vector<48x28xf32>, vector<28x60xf32>, vector<48x60xf32> -> vector<48x60xf32>
    %7 = arith.addf %0, %6 : vector<48x60xf32>
    %c0_7 = arith.constant 0 : index
    %c1 = arith.constant 1 : index
    %c0_8 = arith.constant 0 : index
    %c0_9 = arith.constant 0 : index
    %8 = vector.load %arg1[%c0_7, %c1, %c0_8, %c0_9] : memref<8x4x7x28xf32, #tpu.memory_space<vmem>>, vector<8x1x6x28xf32>
    %9 = vector.shape_cast %8 : vector<8x1x6x28xf32> to vector<8x6x28xf32>
    %10 = vector.shape_cast %9 : vector<8x6x28xf32> to vector<48x28xf32>
    %c1_10 = arith.constant 1 : index
    %c0_11 = arith.constant 0 : index
    %c0_12 = arith.constant 0 : index
    %11 = vector.load %arg2[%c1_10, %c0_11, %c0_12] : memref<5x28x60xf32, #tpu.memory_space<vmem>>, vector<1x28x60xf32>
    %12 = vector.shape_cast %11 : vector<1x28x60xf32> to vector<28x60xf32>
    %cst_13 = arith.constant dense<0.000000e+00> : vector<48x60xf32>
    %13 = tpu.matmul %10, %12, %cst_13 {dimension_numbers = #tpu.dot_dimension_numbers<[1], [0], [0], [1], [0, 0, 1, 1], [], []>} : vector<48x28xf32>, vector<28x60xf32>, vector<48x60xf32> -> vector<48x60xf32>
    %14 = arith.addf %7, %13 : vector<48x60xf32>
    %c0_14 = arith.constant 0 : index
    %c2 = arith.constant 2 : index
    %c0_15 = arith.constant 0 : index
    %c0_16 = arith.constant 0 : index
    %15 = vector.load %arg1[%c0_14, %c2, %c0_15, %c0_16] : memref<8x4x7x28xf32, #tpu.memory_space<vmem>>, vector<8x1x6x28xf32>
    %16 = vector.shape_cast %15 : vector<8x1x6x28xf32> to vector<8x6x28xf32>
    %17 = vector.shape_cast %16 : vector<8x6x28xf32> to vector<48x28xf32>
    %c2_17 = arith.constant 2 : index
    %c0_18 = arith.constant 0 : index
    %c0_19 = arith.constant 0 : index
    %18 = vector.load %arg2[%c2_17, %c0_18, %c0_19] : memref<5x28x60xf32, #tpu.memory_space<vmem>>, vector<1x28x60xf32>
    %19 = vector.shape_cast %18 : vector<1x28x60xf32> to vector<28x60xf32>
    %cst_20 = arith.constant dense<0.000000e+00> : vector<48x60xf32>
    %20 = tpu.matmul %17, %19, %cst_20 {dimension_numbers = #tpu.dot_dimension_numbers<[1], [0], [0], [1], [0, 0, 1, 1], [], []>} : vector<48x28xf32>, vector<28x60xf32>, vector<48x60xf32> -> vector<48x60xf32>
    %21 = arith.addf %14, %20 : vector<48x60xf32>
    %c0_21 = arith.constant 0 : index
    %c3 = arith.constant 3 : index
    %c0_22 = arith.constant 0 : index
    %c0_23 = arith.constant 0 : index
    %22 = vector.load %arg1[%c0_21, %c3, %c0_22, %c0_23] : memref<8x4x7x28xf32, #tpu.memory_space<vmem>>, vector<8x1x6x28xf32>
    %23 = vector.shape_cast %22 : vector<8x1x6x28xf32> to vector<8x6x28xf32>
    %24 = vector.shape_cast %23 : vector<8x6x28xf32> to vector<48x28xf32>
    %c3_24 = arith.constant 3 : index
    %c0_25 = arith.constant 0 : index
    %c0_26 = arith.constant 0 : index
    %25 = vector.load %arg2[%c3_24, %c0_25, %c0_26] : memref<5x28x60xf32, #tpu.memory_space<vmem>>, vector<1x28x60xf32>
    %26 = vector.shape_cast %25 : vector<1x28x60xf32> to vector<28x60xf32>
    %cst_27 = arith.constant dense<0.000000e+00> : vector<48x60xf32>
    %27 = tpu.matmul %24, %26, %cst_27 {dimension_numbers = #tpu.dot_dimension_numbers<[1], [0], [0], [1], [0, 0, 1, 1], [], []>} : vector<48x28xf32>, vector<28x60xf32>, vector<48x60xf32> -> vector<48x60xf32>
    %28 = arith.addf %21, %27 : vector<48x60xf32>
    %c0_28 = arith.constant 0 : index
    %c0_29 = arith.constant 0 : index
    %c1_30 = arith.constant 1 : index
    %c0_31 = arith.constant 0 : index
    %29 = vector.load %arg1[%c0_28, %c0_29, %c1_30, %c0_31] : memref<8x4x7x28xf32, #tpu.memory_space<vmem>>, vector<8x1x6x28xf32>
    %30 = vector.shape_cast %29 : vector<8x1x6x28xf32> to vector<8x6x28xf32>
    %31 = vector.shape_cast %30 : vector<8x6x28xf32> to vector<48x28xf32>
    %c4 = arith.constant 4 : index
    %c0_32 = arith.constant 0 : index
    %c0_33 = arith.constant 0 : index
    %32 = vector.load %arg2[%c4, %c0_32, %c0_33] : memref<5x28x60xf32, #tpu.memory_space<vmem>>, vector<1x28x60xf32>
    %33 = vector.shape_cast %32 : vector<1x28x60xf32> to vector<28x60xf32>
    %cst_34 = arith.constant dense<0.000000e+00> : vector<48x60xf32>
    %34 = tpu.matmul %31, %33, %cst_34 {dimension_numbers = #tpu.dot_dimension_numbers<[1], [0], [0], [1], [0, 0, 1, 1], [], []>} : vector<48x28xf32>, vector<28x60xf32>, vector<48x60xf32> -> vector<48x60xf32>
    %35 = arith.addf %28, %34 : vector<48x60xf32>
    %c0_35 = arith.constant 0 : index
    %c0_36 = arith.constant 0 : index
    %36 = vector.load %arg3[%c0_35, %c0_36] : memref<1x60xf32, #tpu.memory_space<vmem>>, vector<1x60xf32>
    %37 = vector.broadcast %36 : vector<1x60xf32> to vector<48x60xf32>
    %38 = arith.addf %35, %37 : vector<48x60xf32>
    %cst_37 = arith.constant 0.000000e+00 : f32
    %39 = vector.broadcast %cst_37 : f32 to vector<48x60xf32>
    %40 = arith.maximumf %38, %39 : vector<48x60xf32>
    %41 = vector.shape_cast %40 : vector<48x60xf32> to vector<8x6x60xf32>
    %cst_38 = arith.constant 0.000000e+00 : f32
    %42 = vector.broadcast %cst_38 : f32 to vector<48x60xf32>
    %c0_39 = arith.constant 0 : index
    %c2_40 = arith.constant 2 : index
    %c0_41 = arith.constant 0 : index
    %c0_42 = arith.constant 0 : index
    %43 = vector.load %arg1[%c0_39, %c2_40, %c0_41, %c0_42] : memref<8x4x7x28xf32, #tpu.memory_space<vmem>>, vector<8x1x6x28xf32>
    %44 = vector.shape_cast %43 : vector<8x1x6x28xf32> to vector<8x6x28xf32>
    %45 = vector.shape_cast %44 : vector<8x6x28xf32> to vector<48x28xf32>
    %c0_43 = arith.constant 0 : index
    %c0_44 = arith.constant 0 : index
    %c0_45 = arith.constant 0 : index
    %46 = vector.load %arg2[%c0_43, %c0_44, %c0_45] : memref<5x28x60xf32, #tpu.memory_space<vmem>>, vector<1x28x60xf32>
    %47 = vector.shape_cast %46 : vector<1x28x60xf32> to vector<28x60xf32>
    %cst_46 = arith.constant dense<0.000000e+00> : vector<48x60xf32>
    %48 = tpu.matmul %45, %47, %cst_46 {dimension_numbers = #tpu.dot_dimension_numbers<[1], [0], [0], [1], [0, 0, 1, 1], [], []>} : vector<48x28xf32>, vector<28x60xf32>, vector<48x60xf32> -> vector<48x60xf32>
    %49 = arith.addf %42, %48 : vector<48x60xf32>
    %c0_47 = arith.constant 0 : index
    %c3_48 = arith.constant 3 : index
    %c0_49 = arith.constant 0 : index
    %c0_50 = arith.constant 0 : index
    %50 = vector.load %arg1[%c0_47, %c3_48, %c0_49, %c0_50] : memref<8x4x7x28xf32, #tpu.memory_space<vmem>>, vector<8x1x6x28xf32>
    %51 = vector.shape_cast %50 : vector<8x1x6x28xf32> to vector<8x6x28xf32>
    %52 = vector.shape_cast %51 : vector<8x6x28xf32> to vector<48x28xf32>
    %c1_51 = arith.constant 1 : index
    %c0_52 = arith.constant 0 : index
    %c0_53 = arith.constant 0 : index
    %53 = vector.load %arg2[%c1_51, %c0_52, %c0_53] : memref<5x28x60xf32, #tpu.memory_space<vmem>>, vector<1x28x60xf32>
    %54 = vector.shape_cast %53 : vector<1x28x60xf32> to vector<28x60xf32>
    %cst_54 = arith.constant dense<0.000000e+00> : vector<48x60xf32>
    %55 = tpu.matmul %52, %54, %cst_54 {dimension_numbers = #tpu.dot_dimension_numbers<[1], [0], [0], [1], [0, 0, 1, 1], [], []>} : vector<48x28xf32>, vector<28x60xf32>, vector<48x60xf32> -> vector<48x60xf32>
    %56 = arith.addf %49, %55 : vector<48x60xf32>
    %c0_55 = arith.constant 0 : index
    %c0_56 = arith.constant 0 : index
    %c1_57 = arith.constant 1 : index
    %c0_58 = arith.constant 0 : index
    %57 = vector.load %arg1[%c0_55, %c0_56, %c1_57, %c0_58] : memref<8x4x7x28xf32, #tpu.memory_space<vmem>>, vector<8x1x6x28xf32>
    %58 = vector.shape_cast %57 : vector<8x1x6x28xf32> to vector<8x6x28xf32>
    %59 = vector.shape_cast %58 : vector<8x6x28xf32> to vector<48x28xf32>
    %c2_59 = arith.constant 2 : index
    %c0_60 = arith.constant 0 : index
    %c0_61 = arith.constant 0 : index
    %60 = vector.load %arg2[%c2_59, %c0_60, %c0_61] : memref<5x28x60xf32, #tpu.memory_space<vmem>>, vector<1x28x60xf32>
    %61 = vector.shape_cast %60 : vector<1x28x60xf32> to vector<28x60xf32>
    %cst_62 = arith.constant dense<0.000000e+00> : vector<48x60xf32>
    %62 = tpu.matmul %59, %61, %cst_62 {dimension_numbers = #tpu.dot_dimension_numbers<[1], [0], [0], [1], [0, 0, 1, 1], [], []>} : vector<48x28xf32>, vector<28x60xf32>, vector<48x60xf32> -> vector<48x60xf32>
    %63 = arith.addf %56, %62 : vector<48x60xf32>
    %c0_63 = arith.constant 0 : index
    %c1_64 = arith.constant 1 : index
    %c1_65 = arith.constant 1 : index
    %c0_66 = arith.constant 0 : index
    %64 = vector.load %arg1[%c0_63, %c1_64, %c1_65, %c0_66] : memref<8x4x7x28xf32, #tpu.memory_space<vmem>>, vector<8x1x6x28xf32>
    %65 = vector.shape_cast %64 : vector<8x1x6x28xf32> to vector<8x6x28xf32>
    %66 = vector.shape_cast %65 : vector<8x6x28xf32> to vector<48x28xf32>
    %c3_67 = arith.constant 3 : index
    %c0_68 = arith.constant 0 : index
    %c0_69 = arith.constant 0 : index
    %67 = vector.load %arg2[%c3_67, %c0_68, %c0_69] : memref<5x28x60xf32, #tpu.memory_space<vmem>>, vector<1x28x60xf32>
    %68 = vector.shape_cast %67 : vector<1x28x60xf32> to vector<28x60xf32>
    %cst_70 = arith.constant dense<0.000000e+00> : vector<48x60xf32>
    %69 = tpu.matmul %66, %68, %cst_70 {dimension_numbers = #tpu.dot_dimension_numbers<[1], [0], [0], [1], [0, 0, 1, 1], [], []>} : vector<48x28xf32>, vector<28x60xf32>, vector<48x60xf32> -> vector<48x60xf32>
    %70 = arith.addf %63, %69 : vector<48x60xf32>
    %c0_71 = arith.constant 0 : index
    %c2_72 = arith.constant 2 : index
    %c1_73 = arith.constant 1 : index
    %c0_74 = arith.constant 0 : index
    %71 = vector.load %arg1[%c0_71, %c2_72, %c1_73, %c0_74] : memref<8x4x7x28xf32, #tpu.memory_space<vmem>>, vector<8x1x6x28xf32>
    %72 = vector.shape_cast %71 : vector<8x1x6x28xf32> to vector<8x6x28xf32>
    %73 = vector.shape_cast %72 : vector<8x6x28xf32> to vector<48x28xf32>
    %c4_75 = arith.constant 4 : index
    %c0_76 = arith.constant 0 : index
    %c0_77 = arith.constant 0 : index
    %74 = vector.load %arg2[%c4_75, %c0_76, %c0_77] : memref<5x28x60xf32, #tpu.memory_space<vmem>>, vector<1x28x60xf32>
    %75 = vector.shape_cast %74 : vector<1x28x60xf32> to vector<28x60xf32>
    %cst_78 = arith.constant dense<0.000000e+00> : vector<48x60xf32>
    %76 = tpu.matmul %73, %75, %cst_78 {dimension_numbers = #tpu.dot_dimension_numbers<[1], [0], [0], [1], [0, 0, 1, 1], [], []>} : vector<48x28xf32>, vector<28x60xf32>, vector<48x60xf32> -> vector<48x60xf32>
    %77 = arith.addf %70, %76 : vector<48x60xf32>
    %c0_79 = arith.constant 0 : index
    %c0_80 = arith.constant 0 : index
    %78 = vector.load %arg3[%c0_79, %c0_80] : memref<1x60xf32, #tpu.memory_space<vmem>>, vector<1x60xf32>
    %79 = vector.broadcast %78 : vector<1x60xf32> to vector<48x60xf32>
    %80 = arith.addf %77, %79 : vector<48x60xf32>
    %cst_81 = arith.constant 0.000000e+00 : f32
    %81 = vector.broadcast %cst_81 : f32 to vector<48x60xf32>
    %82 = arith.maximumf %80, %81 : vector<48x60xf32>
    %83 = vector.shape_cast %82 : vector<48x60xf32> to vector<8x6x60xf32>
    %cst_82 = arith.constant 0.000000e+00 : f32
    %84 = vector.broadcast %cst_82 : f32 to vector<32x200xf32>
    %85 = vector.extract_strided_slice %41 {offsets = [0, 0, 0], sizes = [8, 4, 60], strides = [1, 1, 1]} : vector<8x6x60xf32> to vector<8x4x60xf32>
    %86 = vector.shape_cast %85 : vector<8x4x60xf32> to vector<32x60xf32>
    %c0_83 = arith.constant 0 : index
    %c0_84 = arith.constant 0 : index
    %c0_85 = arith.constant 0 : index
    %87 = vector.load %arg4[%c0_83, %c0_84, %c0_85] : memref<5x60x200xf32, #tpu.memory_space<vmem>>, vector<1x60x200xf32>
    %88 = vector.shape_cast %87 : vector<1x60x200xf32> to vector<60x200xf32>
    %cst_86 = arith.constant dense<0.000000e+00> : vector<32x200xf32>
    %89 = tpu.matmul %86, %88, %cst_86 {dimension_numbers = #tpu.dot_dimension_numbers<[1], [0], [0], [1], [0, 0, 1, 1], [], []>} : vector<32x60xf32>, vector<60x200xf32>, vector<32x200xf32> -> vector<32x200xf32>
    %90 = arith.addf %84, %89 : vector<32x200xf32>
    %91 = vector.extract_strided_slice %83 {offsets = [0, 0, 0], sizes = [8, 4, 60], strides = [1, 1, 1]} : vector<8x6x60xf32> to vector<8x4x60xf32>
    %92 = vector.shape_cast %91 : vector<8x4x60xf32> to vector<32x60xf32>
    %c1_87 = arith.constant 1 : index
    %c0_88 = arith.constant 0 : index
    %c0_89 = arith.constant 0 : index
    %93 = vector.load %arg4[%c1_87, %c0_88, %c0_89] : memref<5x60x200xf32, #tpu.memory_space<vmem>>, vector<1x60x200xf32>
    %94 = vector.shape_cast %93 : vector<1x60x200xf32> to vector<60x200xf32>
    %cst_90 = arith.constant dense<0.000000e+00> : vector<32x200xf32>
    %95 = tpu.matmul %92, %94, %cst_90 {dimension_numbers = #tpu.dot_dimension_numbers<[1], [0], [0], [1], [0, 0, 1, 1], [], []>} : vector<32x60xf32>, vector<60x200xf32>, vector<32x200xf32> -> vector<32x200xf32>
    %96 = arith.addf %90, %95 : vector<32x200xf32>
    %97 = vector.extract_strided_slice %41 {offsets = [0, 1, 0], sizes = [8, 4, 60], strides = [1, 1, 1]} : vector<8x6x60xf32> to vector<8x4x60xf32>
    %98 = vector.shape_cast %97 : vector<8x4x60xf32> to vector<32x60xf32>
    %c2_91 = arith.constant 2 : index
    %c0_92 = arith.constant 0 : index
    %c0_93 = arith.constant 0 : index
    %99 = vector.load %arg4[%c2_91, %c0_92, %c0_93] : memref<5x60x200xf32, #tpu.memory_space<vmem>>, vector<1x60x200xf32>
    %100 = vector.shape_cast %99 : vector<1x60x200xf32> to vector<60x200xf32>
    %cst_94 = arith.constant dense<0.000000e+00> : vector<32x200xf32>
    %101 = tpu.matmul %98, %100, %cst_94 {dimension_numbers = #tpu.dot_dimension_numbers<[1], [0], [0], [1], [0, 0, 1, 1], [], []>} : vector<32x60xf32>, vector<60x200xf32>, vector<32x200xf32> -> vector<32x200xf32>
    %102 = arith.addf %96, %101 : vector<32x200xf32>
    %103 = vector.extract_strided_slice %83 {offsets = [0, 1, 0], sizes = [8, 4, 60], strides = [1, 1, 1]} : vector<8x6x60xf32> to vector<8x4x60xf32>
    %104 = vector.shape_cast %103 : vector<8x4x60xf32> to vector<32x60xf32>
    %c3_95 = arith.constant 3 : index
    %c0_96 = arith.constant 0 : index
    %c0_97 = arith.constant 0 : index
    %105 = vector.load %arg4[%c3_95, %c0_96, %c0_97] : memref<5x60x200xf32, #tpu.memory_space<vmem>>, vector<1x60x200xf32>
    %106 = vector.shape_cast %105 : vector<1x60x200xf32> to vector<60x200xf32>
    %cst_98 = arith.constant dense<0.000000e+00> : vector<32x200xf32>
    %107 = tpu.matmul %104, %106, %cst_98 {dimension_numbers = #tpu.dot_dimension_numbers<[1], [0], [0], [1], [0, 0, 1, 1], [], []>} : vector<32x60xf32>, vector<60x200xf32>, vector<32x200xf32> -> vector<32x200xf32>
    %108 = arith.addf %102, %107 : vector<32x200xf32>
    %109 = vector.extract_strided_slice %41 {offsets = [0, 2, 0], sizes = [8, 4, 60], strides = [1, 1, 1]} : vector<8x6x60xf32> to vector<8x4x60xf32>
    %110 = vector.shape_cast %109 : vector<8x4x60xf32> to vector<32x60xf32>
    %c4_99 = arith.constant 4 : index
    %c0_100 = arith.constant 0 : index
    %c0_101 = arith.constant 0 : index
    %111 = vector.load %arg4[%c4_99, %c0_100, %c0_101] : memref<5x60x200xf32, #tpu.memory_space<vmem>>, vector<1x60x200xf32>
    %112 = vector.shape_cast %111 : vector<1x60x200xf32> to vector<60x200xf32>
    %cst_102 = arith.constant dense<0.000000e+00> : vector<32x200xf32>
    %113 = tpu.matmul %110, %112, %cst_102 {dimension_numbers = #tpu.dot_dimension_numbers<[1], [0], [0], [1], [0, 0, 1, 1], [], []>} : vector<32x60xf32>, vector<60x200xf32>, vector<32x200xf32> -> vector<32x200xf32>
    %114 = arith.addf %108, %113 : vector<32x200xf32>
    %c0_103 = arith.constant 0 : index
    %c0_104 = arith.constant 0 : index
    %115 = vector.load %arg5[%c0_103, %c0_104] : memref<1x200xf32, #tpu.memory_space<vmem>>, vector<1x200xf32>
    %116 = vector.broadcast %115 : vector<1x200xf32> to vector<32x200xf32>
    %117 = arith.addf %114, %116 : vector<32x200xf32>
    %cst_105 = arith.constant 0.000000e+00 : f32
    %118 = vector.broadcast %cst_105 : f32 to vector<32x200xf32>
    %119 = arith.maximumf %117, %118 : vector<32x200xf32>
    %120 = vector.shape_cast %119 : vector<32x200xf32> to vector<8x4x200xf32>
    %cst_106 = arith.constant 0.000000e+00 : f32
    %121 = vector.broadcast %cst_106 : f32 to vector<8x10xf32>
    %122 = vector.extract_strided_slice %120 {offsets = [0, 0, 0], sizes = [8, 1, 200], strides = [1, 1, 1]} : vector<8x4x200xf32> to vector<8x1x200xf32>
    %123 = vector.shape_cast %122 : vector<8x1x200xf32> to vector<8x200xf32>
    %c0_107 = arith.constant 0 : index
    %c0_108 = arith.constant 0 : index
    %c0_109 = arith.constant 0 : index
    %124 = vector.load %arg6[%c0_107, %c0_108, %c0_109] : memref<4x200x10xf32, #tpu.memory_space<vmem>>, vector<1x200x10xf32>
    %125 = vector.shape_cast %124 : vector<1x200x10xf32> to vector<200x10xf32>
    %cst_110 = arith.constant dense<0.000000e+00> : vector<8x10xf32>
    %126 = tpu.matmul %123, %125, %cst_110 {dimension_numbers = #tpu.dot_dimension_numbers<[1], [0], [0], [1], [0, 0, 1, 1], [], []>} : vector<8x200xf32>, vector<200x10xf32>, vector<8x10xf32> -> vector<8x10xf32>
    %127 = arith.addf %121, %126 : vector<8x10xf32>
    %128 = vector.extract_strided_slice %120 {offsets = [0, 1, 0], sizes = [8, 1, 200], strides = [1, 1, 1]} : vector<8x4x200xf32> to vector<8x1x200xf32>
    %129 = vector.shape_cast %128 : vector<8x1x200xf32> to vector<8x200xf32>
    %c1_111 = arith.constant 1 : index
    %c0_112 = arith.constant 0 : index
    %c0_113 = arith.constant 0 : index
    %130 = vector.load %arg6[%c1_111, %c0_112, %c0_113] : memref<4x200x10xf32, #tpu.memory_space<vmem>>, vector<1x200x10xf32>
    %131 = vector.shape_cast %130 : vector<1x200x10xf32> to vector<200x10xf32>
    %cst_114 = arith.constant dense<0.000000e+00> : vector<8x10xf32>
    %132 = tpu.matmul %129, %131, %cst_114 {dimension_numbers = #tpu.dot_dimension_numbers<[1], [0], [0], [1], [0, 0, 1, 1], [], []>} : vector<8x200xf32>, vector<200x10xf32>, vector<8x10xf32> -> vector<8x10xf32>
    %133 = arith.addf %127, %132 : vector<8x10xf32>
    %134 = vector.extract_strided_slice %120 {offsets = [0, 2, 0], sizes = [8, 1, 200], strides = [1, 1, 1]} : vector<8x4x200xf32> to vector<8x1x200xf32>
    %135 = vector.shape_cast %134 : vector<8x1x200xf32> to vector<8x200xf32>
    %c2_115 = arith.constant 2 : index
    %c0_116 = arith.constant 0 : index
    %c0_117 = arith.constant 0 : index
    %136 = vector.load %arg6[%c2_115, %c0_116, %c0_117] : memref<4x200x10xf32, #tpu.memory_space<vmem>>, vector<1x200x10xf32>
    %137 = vector.shape_cast %136 : vector<1x200x10xf32> to vector<200x10xf32>
    %cst_118 = arith.constant dense<0.000000e+00> : vector<8x10xf32>
    %138 = tpu.matmul %135, %137, %cst_118 {dimension_numbers = #tpu.dot_dimension_numbers<[1], [0], [0], [1], [0, 0, 1, 1], [], []>} : vector<8x200xf32>, vector<200x10xf32>, vector<8x10xf32> -> vector<8x10xf32>
    %139 = arith.addf %133, %138 : vector<8x10xf32>
    %140 = vector.extract_strided_slice %120 {offsets = [0, 3, 0], sizes = [8, 1, 200], strides = [1, 1, 1]} : vector<8x4x200xf32> to vector<8x1x200xf32>
    %141 = vector.shape_cast %140 : vector<8x1x200xf32> to vector<8x200xf32>
    %c3_119 = arith.constant 3 : index
    %c0_120 = arith.constant 0 : index
    %c0_121 = arith.constant 0 : index
    %142 = vector.load %arg6[%c3_119, %c0_120, %c0_121] : memref<4x200x10xf32, #tpu.memory_space<vmem>>, vector<1x200x10xf32>
    %143 = vector.shape_cast %142 : vector<1x200x10xf32> to vector<200x10xf32>
    %cst_122 = arith.constant dense<0.000000e+00> : vector<8x10xf32>
    %144 = tpu.matmul %141, %143, %cst_122 {dimension_numbers = #tpu.dot_dimension_numbers<[1], [0], [0], [1], [0, 0, 1, 1], [], []>} : vector<8x200xf32>, vector<200x10xf32>, vector<8x10xf32> -> vector<8x10xf32>
    %145 = arith.addf %139, %144 : vector<8x10xf32>
    %c0_123 = arith.constant 0 : index
    %c0_124 = arith.constant 0 : index
    %146 = vector.load %arg7[%c0_123, %c0_124] : memref<1x10xf32, #tpu.memory_space<vmem>>, vector<1x10xf32>
    %147 = vector.broadcast %146 : vector<1x10xf32> to vector<8x10xf32>
    %148 = arith.addf %145, %147 : vector<8x10xf32>
    %c0_125 = arith.constant 0 : index
    %c0_126 = arith.constant 0 : index
    %149 = vector.load %arg8[%c0_125, %c0_126] : memref<8x10xf32, #tpu.memory_space<vmem>>, vector<8x10xf32>
    tpu.vector_store %arg8[%c0_125, %c0_126], %148 {strides = array<i32>} : memref<8x10xf32, #tpu.memory_space<vmem>>, vector<8x10xf32>,
    return
  }
  func.func @transform_0(%arg0: i32) -> (i32, i32, i32, i32) {
    %c0_i32 = arith.constant 0 : i32
    %c0_i32_0 = arith.constant 0 : i32
    %c0_i32_1 = arith.constant 0 : i32
    %c0_i32_2 = arith.constant 0 : i32
    return %arg0, %c0_i32, %c0_i32_0, %c0_i32_1 : i32, i32, i32, i32
  }
  func.func @transform_1(%arg0: i32) -> (i32, i32, i32) {
    %c0_i32 = arith.constant 0 : i32
    %c0_i32_0 = arith.constant 0 : i32
    %c0_i32_1 = arith.constant 0 : i32
    %c0_i32_2 = arith.constant 0 : i32
    return %c0_i32, %c0_i32_0, %c0_i32_1 : i32, i32, i32
  }
  func.func @transform_2(%arg0: i32) -> (i32, i32) {
    %c0_i32 = arith.constant 0 : i32
    %c0_i32_0 = arith.constant 0 : i32
    %c0_i32_1 = arith.constant 0 : i32
    return %c0_i32, %c0_i32_0 : i32, i32
  }
  func.func @transform_3(%arg0: i32) -> (i32, i32, i32) {
    %c0_i32 = arith.constant 0 : i32
    %c0_i32_0 = arith.constant 0 : i32
    %c0_i32_1 = arith.constant 0 : i32
    %c0_i32_2 = arith.constant 0 : i32
    return %c0_i32, %c0_i32_0, %c0_i32_1 : i32, i32, i32
  }
  func.func @transform_4(%arg0: i32) -> (i32, i32) {
    %c0_i32 = arith.constant 0 : i32
    %c0_i32_0 = arith.constant 0 : i32
    %c0_i32_1 = arith.constant 0 : i32
    return %c0_i32, %c0_i32_0 : i32, i32
  }
  func.func @transform_5(%arg0: i32) -> (i32, i32, i32) {
    %c0_i32 = arith.constant 0 : i32
    %c0_i32_0 = arith.constant 0 : i32
    %c0_i32_1 = arith.constant 0 : i32
    %c0_i32_2 = arith.constant 0 : i32
    return %c0_i32, %c0_i32_0, %c0_i32_1 : i32, i32, i32
  }
  func.func @transform_6(%arg0: i32) -> (i32, i32) {
    %c0_i32 = arith.constant 0 : i32
    %c0_i32_0 = arith.constant 0 : i32
    %c0_i32_1 = arith.constant 0 : i32
    return %c0_i32, %c0_i32_0 : i32, i32
  }
  func.func @transform_7(%arg0: i32) -> (i32, i32) {
    %c0_i32 = arith.constant 0 : i32
    %c0_i32_0 = arith.constant 0 : i32
    return %arg0, %c0_i32 : i32, i32
  }
}

</mosaic_0001>

<bundles_post_ra>
// kernel: mnist_cnn_forward.1
= control target key start
LH: loop header
LB: loop body
LE: loop exit
PB: predicated region body
PF: predicated region fallthrough
CT: control target
= control target key end

     0   :  { %12 = vsyncpa [#allocation3], 0  ;;  %s8145_s0 = inlined_call_operand.vmem [shape: f32[16,4,7,28], index: 0, kind: input, shape index: {}]   ;;  %s8146_s1 = inlined_call_operand.vmem [shape: f32[5,28,60], index: 1, kind: input, shape index: {}]   ;;  %s8147_s2 = inlined_call_operand.vmem [shape: f32[1,60], index: 2, kind: input, shape index: {}]   ;;  %s8148_s3 = inlined_call_operand.vmem [shape: f32[5,60,200], index: 3, kind: input, shape index: {}]   ;;  %s8149_s4 = inlined_call_operand.vmem [shape: f32[1,200], index: 4, kind: input, shape index: {}]   ;;  %s8150_s5 = inlined_call_operand.vmem [shape: f32[4,200,10], index: 5, kind: input, shape index: {}]   ;;  %s8151_s6 = inlined_call_operand.vmem [shape: f32[1,10], index: 6, kind: input, shape index: {}]   ;;  %s8152_s7 = inlined_call_operand.hbm [shape: f32[16,10], index: 7, kind: output, shape index: {}]  }
   0x1   :  { %14 = vsyncpa [#allocation3 + $0x1], 0  ;;  %s6093_s24 = smov 0   ;;  %s6095_s25 = smov 0  }
   0x2   :  { %s6097_s26 = smov 0   ;;  %s6099_s27 = smov 0  }
   0x3 LB: > { %s6114_s28 = sadd.s32 4294967295, %s6048_s27   ;;  %s5289_s29 = sadd.s32 4294967294, %s6048_s27   ;;  %s6048_s27 = sphi %s6099_s27, %s8179_s27   ;;  %s6044_s26 = sphi %s6097_s26, %s8178_s26   ;;  %s6040_s25 = sphi %s6095_s25, %s8177_s25   ;;  %s6036_s24 = sphi %s6093_s24, %s8176_s24  }
   0x4   : > { %s6118_s30 = sadd.s32 1, %s6048_s27   ;;  %s179_s8 = sadd.s32 1, %s6044_s26 }
   0x5   : > { %s176_s9 = ssub.s32 %s6048_s27, %s6118_s30  ;;  %p189_p0 = scmp.ne.s32.totalorder %s6044_s26, %s6040_s25 }
   0x6   : > { %p177_p1 = scmp.eq.s32.totalorder %s176_s9, 0  ;;  %p190_p2 = scmp.eq.s32.totalorder %s6114_s28, 1 }
   0x7   : > { %p195_p3 = scmp.ne.s32.totalorder %s6040_s25, %s6036_s24  ;;  %p196_p4 = scmp.eq.s32.totalorder %s5289_s29, 1 }
   0x8   : > { %s6129_s10 = scalar_select %p177_p1, %s6044_s26, %s179_s8  }
   0x9   : > { %p6131_p5 = por %p190_p2, %p189_p0  ;;  %p6135_p6 = por %p196_p4, %p195_p3 }
   0xa   : > { %p5292_p7 = scmp.ge.s32.totalorder %s6048_s27, 1  ;;  %p242_p8 = scmp.lt.s32.totalorder %s6048_s27, 3 }
   0xc   : > { %p243_p9 = pnand %p5292_p7, %p242_p8 }
   0xd   : > { %s5294_s17 = sshll.u32 (!%p243_p9), %s6114_s28, 3  ;;  %s5615_s8 = sshll.u32 (!%p243_p9), %s6114_s28, 7 }
   0xe   : > { %246 = sbr.rel (%p243_p9) target bundleno = 884 (0x374), region = 48  ;;  %p276_p10 = scmp.lt.s32.totalorder (!%p243_p9), %s5294_s17, 15 }
   0xf   : > { %s5228_s16 = scalar_lea.hbm (!%p243_p9), %s8152_s7, %s5615_s8 }
  0x13   : > { %v6144_v0 = vld [vmem:[%s8146_s1 + $0x38] sm:$0xf]  ;;  %vm695_vm0 = vcmask 1043456   ;;  %v6149_v1 = vld [vmem:[%s8146_s1 + $0x30] sm:$0xff]  ;;  %v302_v2 = vlaneseq  ;;  %v6159_v3 = vld [vmem:[%s8146_s1 + $0x28] sm:$0xff]  ;;  %s8181_s17 = smov (!%p276_p10, %s5294_s17), 15 }
  0x14   : > { %5719 = vmatprep.subr.msk.mxu1 %vm695_vm0, %v6144_v0  ;;  %v6050_v4 = vmov 1983009808   ;;  %v6166_v7 = vld [vmem:[%s8146_s1 + $0x58] sm:$0xf]  ;;  %v6174_v8 = vld [vmem:[%s8146_s1 + $0x50] sm:$0xff]  ;;  %v6180_v9 = vld [vmem:[%s8146_s1 + $0x20] sm:$0xff] }
  0x15   : > { %5720 = vmatpush3.msk.msra.mxu1 %vm695_vm0, %v6144_v0  ;;  %v300_v5 = vunpack.c.l.s4 %v6050_v4  ;;  %v6161_v6 = vshrl.u32 %v302_v2, 7  ;;  %5753 = vmatprep.subr.msk.mxu0 %vm695_vm0, %v6166_v7  ;;  %v6187_v11 = vld [vmem:[%s8146_s1 + $0x48] sm:$0xff]  ;;  %s5618_s14 = sshll.u32 %s8181_s17, 5  ;;  %v6203_v13 = vld [vmem:[%s8146_s1 + $0x18] sm:$0xf]  ;;  %vm682_vm1 = vcmask 228352  }
  0x16   : > { %5721 = vmatprep.subr.mxu1 %v6149_v1  ;;  %5754 = vmatpush3.msk.msra.mxu0 %vm695_vm0, %v6166_v7  ;;  %s6195_s18 = scalar_lea.vmem %s8145_s0, %s5618_s14  ;;  %v6218_v22 = vld [vmem:[%s8146_s1 + $0x40] sm:$0xff]  ;;  %v6231_v32 = vld [vmem:[%s8146_s1 + $0x98] sm:$0xf]  ;;  %v6256_v2 = vld [vmem:[%s8146_s1 + $0x10] sm:$0xff]  ;;  %vm3741_vm2 = vcmask 1040384   ;;  %vm3742_vm3 = vcmask 1042434  }
  0x17   : > { %5722 = vmatpush3.msra.mxu1 %v6149_v1  ;;  %v301_v10 = vunpack.c.0.s8 %v300_v5  ;;  %5755 = vmatprep.subr.mxu0 %v6174_v8  ;;  %v5297_v14 = vld [vmem:[%s6195_s18 + $0x8] sm:$0x3f]  ;;  %vm3744_vm4 = vcmask 1044484   ;;  %vm3743_vm5 = vmor %vm3741_vm2, %vm3742_vm3  ;;  %vm3746_vm6 = vcmask 1046534   ;;  %vm3466_vm7 = vcmask 490496   ;;  %s6052_s17 = smov [#allocation2]  }
  0x18   : > { %5723 = vmatprep.subr.mxu1 %v6159_v3  ;;  %5756 = vmatpush3.msra.mxu0 %v6174_v8  ;;  %v5298_v15 = vld [vmem:[%s6195_s18 + $0x28] sm:$0x3f]  ;;  %v447_v17 = vcombine.high %v5297_v14, %v5297_v14  ;;  %vm3745_vm8 = vmor %vm3743_vm5, %vm3744_vm4  ;;  %vm4607_vm10 = vcmask 1041409   ;;  %vm4610_vm11 = vcmask 1043459   ;;  %vm4613_vm12 = vcmask 1045509   ;;  %s5992_s28 = sshll.u32 %s6052_s17, 4  ;;  %s5993_s28 = int_to_ptr.vmem [resolvable:$false] %s5992_s28 }
  0x19   : > { %5724 = vmatpush3.msra.mxu1 %v6159_v3  ;;  %v6198_v12 = vsub.s32 %v301_v10, %v6161_v6  ;;  %v5299_v16 = vld [vmem:[%s6195_s18 + $0x48] sm:$0x3f]  ;;  %5757 = vmatprep.subr.mxu0 %v6187_v11  ;;  %v463_v19 = vcombine.high %v5298_v15, %v5298_v15  ;;  %vm6878_vm9 = vmor %vm3745_vm8, %vm3746_vm6  ;;  %vm4616_vm13 = vcmask 1047559   ;;  %vm4626_vm14 = vcmask 588800   ;;  %s5994_s21 = scalar_lea.vmem %s5993_s28, 256 }
  0x1a   : > { %5725 = vmatprep.subr.mxu1 %v6180_v9  ;;  %v5300_v21 = vld [vmem:[%s6195_s18 + $0x68] sm:$0x3f]  ;;  %v479_v24 = vcombine.high %v5299_v16, %v5299_v16  ;;  %5758 = vmatpush3.msra.mxu0 %v6187_v11  ;;  %vm5214_vm15 = vcmask 80896  }
  0x1b   : > { %5726 = vmatpush3.msra.mxu1 %v6180_v9  ;;  %v454_v18 = vrot.slane %v5297_v14, %v6198_v12  ;;  %v470_v20 = vrot.slane %v5298_v15, %v6198_v12  ;;  %v486_v23 = vrot.slane %v5299_v16, %v6198_v12  ;;  %v495_v25 = vcombine.high %v5300_v21, %v5300_v21  ;;  %v5301_v27 = vld [vmem:[%s6195_s18 + $0x88] sm:$0x3f]  ;;  %v282_v15 = vld [vmem:[%s6195_s18] sm:$0x3f] }
  0x1c   : > { %5736 = vmatprep.subr.msk.mxu1 %vm695_vm0, %v6203_v13  ;;  %v502_v26 = vrot.slane %v5300_v21, %v6198_v12  ;;  %v461_v28 = vrot.slane %v447_v17, %v6198_v12  ;;  %v477_v30 = vrot.slane %v463_v19, %v6198_v12  ;;  %v493_v34 = vrot.slane %v479_v24, %v6198_v12  ;;  %v5302_v44 = vld [vmem:[%s6195_s18 + $0xa8] sm:$0x3f] }
  0x1d   : > { %v462_v29 = vcombine.high %v454_v18, %v454_v18  ;;  %v478_v31 = vcombine.high %v470_v20, %v470_v20  ;;  %v494_v33 = vcombine.high %v486_v23, %v486_v23  ;;  %v509_v35 = vrot.slane %v495_v25, %v6198_v12  ;;  %5759 = vmatprep.subr.mxu0 %v6218_v22  ;;  %v5303_v46 = vld [vmem:[%s6195_s18 + $0xc8] sm:$0x3f]  ;;  %v283_v25 = vld [vmem:[%s6195_s18 + $0x20] sm:$0x3f] }
  0x1e   : > { %v510_v36 = vcombine.high %v502_v26, %v502_v26  ;;  %v581_v38 = vcombine.low %v461_v28, %v470_v20  ;;  %v511_v40 = vcombine.high %v5301_v27, %v5301_v27  ;;  %5760 = vmatpush3.msra.mxu0 %v6218_v22  ;;  %v614_v42 = vcombine.low %v493_v34, %v502_v26  ;;  %v5304_v59 = vld [vmem:[%s6195_s18 + $0xe8] sm:$0x3f] }
  0x1f   : > { %v580_v37 = vcombine.low %v454_v18, %v462_v29  ;;  %v597_v39 = vcombine.low %v478_v31, %v477_v30  ;;  %v598_v41 = vcombine.low %v486_v23, %v494_v33  ;;  %v518_v45 = vrot.slane %v5301_v27, %v6198_v12  ;;  %5787 = vmatprep.subr.msk.mxu0 %vm695_vm0, %v6231_v32  ;;  %v6271_v21 = vld [vmem:[%s8146_s1 + $0x8] sm:$0xff]  ;;  %v5323_v30 = vld [vmem:[%s6195_s18 + $0x10] sm:$0x3f] }
  0x20   : > { %v615_v43 = vcombine.low %v510_v36, %v509_v35  ;;  %v595_v48 = vrot.slane %v581_v38, %v6198_v12  ;;  %v525_v50 = vrot.slane %v511_v40, %v6198_v12  ;;  %v622_v52 = vrot.slane %v614_v42, %v6198_v12  ;;  %v5324_v36 = vld [vmem:[%s6195_s18 + $0x30] sm:$0x3f] }
  0x21   : > { %v588_v47 = vrot.slane %v580_v37, %v6198_v12  ;;  %v605_v49 = vrot.slane %v597_v39, %v6198_v12  ;;  %v612_v51 = vrot.slane %v598_v41, %v6198_v12  ;;  %v526_v54 = vcombine.high %v518_v45, %v518_v45  ;;  %v6287_v39 = vld [vmem:[%s8146_s1] sm:$0xff] }
  0x22   : > { %v629_v53 = vrot.slane %v615_v43, %v6198_v12  ;;  %v534_v56 = vrot.slane %v5302_v44, %v6198_v12  ;;  %v527_v57 = vcombine.high %v5302_v44, %v5302_v44  ;;  %v550_v58 = vrot.slane %v5303_v46, %v6198_v12 }
  0x23   : > { %v596_v55 = vcombine.low %v588_v47, %v595_v48  ;;  %v613_v60 = vcombine.low %v605_v49, %v612_v51  ;;  %v631_v62 = vcombine.low %v518_v45, %v526_v54  ;;  %v543_v63 = vcombine.high %v5303_v46, %v5303_v46  ;;  %v284_v54 = vld [vmem:[%s6195_s18 + $0x40] sm:$0x3f] }
  0x24   : > { %v630_v61 = vcombine.low %v622_v52, %v629_v53  ;;  %v632_v4 = vcombine.low %v525_v50, %v534_v56  ;;  %v541_v5 = vrot.slane %v527_v57, %v6198_v12  ;;  %v542_v10 = vcombine.high %v534_v56, %v534_v56  ;;  %v6299_v50 = vld [vmem:[%s8146_s1 + $0x78] sm:$0xf] }
  0x25   : > { %5727 = vmatprep.mubr.msk.f32.mxu1 %vm682_vm1, %v596_v55  ;;  %v558_v14 = vcombine.high %v550_v58, %v550_v58  ;;  %v639_v16 = vrot.slane %v631_v62, %v6198_v12  ;;  %v557_v17 = vrot.slane %v543_v63, %v6198_v12  ;;  %v559_v18 = vcombine.high %v5304_v59, %v5304_v59 }
  0x26   : > { %5728 = vmatmul.mubr.msk.f32.vlgmr.msra.gmra.mxu1 %vm682_vm1, %v613_v60  ;;  %v566_v19 = vrot.slane %v5304_v59, %v6198_v12  ;;  %v646_v20 = vrot.slane %v632_v4, %v6198_v12  ;;  %v648_v23 = vcombine.low %v542_v10, %v541_v5  ;;  %v298_v29 = vcombine.high %v282_v15, %v282_v15  ;;  %v5325_v59 = vld [vmem:[%s6195_s18 + $0x50] sm:$0x3f] }
  0x27   : > { %5737 = vmatpush3.msk.msra.mxu1 %vm695_vm0, %v6203_v13  ;;  %5730 = vmatprep.mubr.msk.f32.mxu1 %vm682_vm1, %v630_v61  ;;  %v649_v24 = vcombine.low %v550_v58, %v558_v14  ;;  %v573_v26 = vrot.slane %v559_v18, %v6198_v12  ;;  %v305_v35 = vrot.slane %v282_v15, %v6198_v12  ;;  %v285_v15 = vld [vmem:[%s6195_s18 + $0x60] sm:$0x3f] }
  0x28   : > { %5738 = vmatprep.subr.mxu1 %v6256_v2  ;;  %v574_v27 = vcombine.high %v566_v19, %v566_v19  ;;  %v665_v28 = vcombine.low %v557_v17, %v566_v19  ;;  %v647_v31 = vcombine.low %v639_v16, %v646_v20  ;;  %v656_v33 = vrot.slane %v648_v23, %v6198_v12 }
  0x29   : > { %5739 = vmatpush3.msra.mxu1 %v6256_v2  ;;  %v663_v34 = vrot.slane %v649_v24, %v6198_v12  ;;  %v312_v40 = vrot.slane %v298_v29, %v6198_v12  ;;  %v314_v41 = vcombine.high %v283_v25, %v283_v25  ;;  %v313_v43 = vcombine.high %v305_v35, %v305_v35 }
  0x2a   : > { %5740 = vmatprep.subr.mxu1 %v6271_v21  ;;  %v666_v37 = vcombine.low %v574_v27, %v573_v26  ;;  %v673_v38 = vrot.slane %v665_v28, %v6198_v12  ;;  %5731 = vmatmul.mubr.msk.f32.gmra.mxu1 %vm682_vm1, %v647_v31  ;;  %v321_v44 = vrot.slane %v283_v25, %v6198_v12 }
  0x2b   : > { %v664_v42 = vcombine.low %v656_v33, %v663_v34  ;;  %v1023_v45 = vcombine.high %v5323_v30, %v5323_v30  ;;  %5741 = vmatpush3.msra.mxu1 %v6271_v21  ;;  %v328_v47 = vrot.slane %v314_v41, %v6198_v12  ;;  %v1030_v48 = vrot.slane %v5323_v30, %v6198_v12  ;;  %v5326_v30 = vld [vmem:[%s6195_s18 + $0x70] sm:$0x3f] }
  0x2c   : > { %v680_v46 = vrot.slane %v666_v37, %v6198_v12  ;;  %v1039_v49 = vcombine.high %v5324_v36, %v5324_v36  ;;  %5742 = vmatprep.subr.mxu1 %v6287_v39  ;;  %v329_v51 = vcombine.high %v321_v44, %v321_v44  ;;  %v794_v52 = vcombine.low %v305_v35, %v313_v43 }
  0x2d   : > { %5733 = vmatprep.mubr.msk.f32.mxu1 %vm682_vm1, %v664_v42  ;;  %v795_v53 = vcombine.low %v312_v40, %v321_v44  ;;  %5743 = vmatpush3.msra.mxu1 %v6287_v39  ;;  %v1037_v56 = vrot.slane %v1023_v45, %v6198_v12  ;;  %v1038_v57 = vcombine.high %v1030_v48, %v1030_v48 }
  0x2e   : > { %v681_v55 = vcombine.low %v673_v38, %v680_v46  ;;  %v1046_v58 = vrot.slane %v5324_v36, %v6198_v12  ;;  %v802_v60 = vrot.slane %v794_v52, %v6198_v12  ;;  %v811_v62 = vcombine.low %v329_v51, %v328_v47  ;;  %5770 = vmatprep.subr.msk.mxu1 %vm695_vm0, %v6299_v50  ;;  %v286_v36 = vld [vmem:[%s6195_s18 + $0x80] sm:$0x3f]  ;;  %v5327_v52 = vld [vmem:[%s6195_s18 + $0x90] sm:$0x3f] }
  0x2f   : > { %v809_v61 = vrot.slane %v795_v53, %v6198_v12  ;;  %v1053_v63 = vrot.slane %v1039_v49, %v6198_v12  ;;  %v1156_v5 = vcombine.low %v1030_v48, %v1038_v57  ;;  %v337_v14 = vrot.slane %v284_v54, %v6198_v12  ;;  %v287_v49 = vld [vmem:[%s6195_s18 + $0xa0] sm:$0x3f] }
  0x30   : > { %5734 = vmatmul.mubr.msk.f32.gmra.mxu1 %vm682_vm1, %v681_v55  ;;  %v1054_v4 = vcombine.high %v1046_v58, %v1046_v58  ;;  %v1157_v10 = vcombine.low %v1037_v56, %v1046_v58  ;;  %v819_v17 = vrot.slane %v811_v62, %v6198_v12  ;;  %v1062_v18 = vrot.slane %v5325_v59, %v6198_v12  ;;  %v6344_v58 = vld [vmem:[%s8146_s1 + $0x70] sm:$0xff] }
  0x31   : > { %v810_v16 = vcombine.low %v802_v60, %v809_v61  ;;  %v330_v19 = vcombine.high %v284_v54, %v284_v54  ;;  %v1164_v20 = vrot.slane %v1156_v5, %v6198_v12  ;;  %v345_v24 = vcombine.high %v337_v14, %v337_v14  ;;  %v5328_v62 = vld [vmem:[%s6195_s18 + $0xb0] sm:$0x3f] }
  0x32   : > { %v1171_v23 = vrot.slane %v1157_v10, %v6198_v12  ;;  %v1173_v25 = vcombine.low %v1054_v4, %v1053_v63  ;;  %v1070_v26 = vcombine.high %v1062_v18, %v1062_v18  ;;  %v346_v28 = vcombine.high %v285_v15, %v285_v15 }
  0x33   : > { %5744 = vmatprep.mubr.msk.f32.mxu1 %vm682_vm1, %v810_v16  ;;  %v344_v27 = vrot.slane %v330_v19, %v6198_v12  ;;  %v353_v29 = vrot.slane %v285_v15, %v6198_v12  ;;  %v812_v33 = vcombine.low %v337_v14, %v345_v24  ;;  %v1055_v35 = vcombine.high %v5325_v59, %v5325_v59  ;;  %v6370_v24 = vld [vmem:[%s8146_s1 + $0x90] sm:$0xff] }
  0x34   : > { %v6324_v31 = vcombine.low %v1164_v20, %v1171_v23  ;;  %v1181_v34 = vrot.slane %v1173_v25, %v6198_v12  ;;  %v1174_v37 = vcombine.low %v1062_v18, %v1070_v26  ;;  %v360_v38 = vrot.slane %v346_v28, %v6198_v12 }
  0x35   : > { %v361_v40 = vcombine.high %v353_v29, %v353_v29  ;;  %v828_v41 = vcombine.low %v344_v27, %v353_v29  ;;  %v826_v42 = vrot.slane %v812_v33, %v6198_v12  ;;  %v1069_v43 = vrot.slane %v1055_v35, %v6198_v12  ;;  %v288_v27 = vld [vmem:[%s6195_s18 + $0xc0] sm:$0x3f] }
  0x36   : > { %5761 = vmatprep.mubr.msk.f32.mxu0 %vm682_vm1, %v6324_v31  ;;  %v1071_v44 = vcombine.high %v5326_v30, %v5326_v30  ;;  %v1078_v45 = vrot.slane %v5326_v30, %v6198_v12  ;;  %v1188_v46 = vrot.slane %v1174_v37, %v6198_v12  ;;  %v362_v51 = vcombine.high %v286_v36, %v286_v36 }
  0x37   : > { %v829_v47 = vcombine.low %v361_v40, %v360_v38  ;;  %v836_v48 = vrot.slane %v828_v41, %v6198_v12  ;;  %v827_v53 = vcombine.low %v819_v17, %v826_v42  ;;  %v369_v60 = vrot.slane %v286_v36, %v6198_v12  ;;  %v6361_v17 = vld [vmem:[%s8146_s1 + $0x68] sm:$0xff]  ;;  %v6389_v38 = vld [vmem:[%s8146_s1 + $0x60] sm:$0xff] }
  0x38   : > { %v1085_v54 = vrot.slane %v1071_v44, %v6198_v12  ;;  %v1086_v55 = vcombine.high %v1078_v45, %v1078_v45  ;;  %v1190_v56 = vcombine.low %v1069_v43, %v1078_v45  ;;  %v6339_v57 = vcombine.low %v1181_v34, %v1188_v46  ;;  %v5329_v34 = vld [vmem:[%s6195_s18 + $0xd0] sm:$0x3f]  ;;  %v289_v43 = vld [vmem:[%s6195_s18 + $0xe0] sm:$0x3f] }
  0x39   : > { %v843_v59 = vrot.slane %v829_v47, %v6198_v12  ;;  %v376_v61 = vrot.slane %v362_v51, %v6198_v12  ;;  %5745 = vmatmul.mubr.msk.f32.vlgmr.msra.gmra.mxu1 %vm682_vm1, %v827_v53  ;;  %v385_v5 = vrot.slane %v287_v49, %v6198_v12  ;;  %v1087_v10 = vcombine.high %v5327_v52, %v5327_v52 }
  0x3a   : > { %v1191_v63 = vcombine.low %v1086_v55, %v1085_v54  ;;  %v1198_v4 = vrot.slane %v1190_v56, %v6198_v12  ;;  %5762 = vmatmul.mubr.msk.f32.vlgmr.msra.gmra.mxu0 %vm682_vm1, %v6339_v57  ;;  %5771 = vmatpush3.msk.msra.mxu1 %vm695_vm0, %v6299_v50  ;;  %v377_v15 = vcombine.high %v369_v60, %v369_v60 }
  0x3b   : > { %v844_v14 = vcombine.low %v836_v48, %v843_v59  ;;  %v1094_v16 = vrot.slane %v5327_v52, %v6198_v12  ;;  %5772 = vmatprep.subr.mxu1 %v6344_v58  ;;  %v846_v19 = vcombine.low %v376_v61, %v385_v5  ;;  %v1101_v20 = vrot.slane %v1087_v10, %v6198_v12  ;;  %v6402_v48 = vld [vmem:[%s8146_s1 + $0x88] sm:$0xff] }
  0x3c   : > { %v1205_v18 = vrot.slane %v1191_v63, %v6198_v12  ;;  %v1110_v23 = vrot.slane %v5328_v62, %v6198_v12  ;;  %5773 = vmatpush3.msra.mxu1 %v6344_v58  ;;  %v845_v25 = vcombine.low %v369_v60, %v377_v15  ;;  %v378_v28 = vcombine.high %v287_v49, %v287_v49  ;;  %v5330_v60 = vld [vmem:[%s6195_s18 + $0xf0] sm:$0x3f] }
  0x3d   : > { %5747 = vmatprep.mubr.msk.f32.mxu1 %vm682_vm1, %v844_v14  ;;  %v1102_v26 = vcombine.high %v1094_v16, %v1094_v16  ;;  %v860_v30 = vrot.slane %v846_v19, %v6198_v12  ;;  %5774 = vmatprep.subr.mxu1 %v6361_v17  ;;  %v393_v40 = vcombine.high %v385_v5, %v385_v5 }
  0x3e   : > { %v6375_v29 = vcombine.low %v1198_v4, %v1205_v18  ;;  %v1208_v33 = vcombine.low %v1101_v20, %v1110_v23  ;;  %5788 = vmatpush3.msk.msra.mxu0 %vm695_vm0, %v6231_v32  ;;  %v853_v35 = vrot.slane %v845_v25, %v6198_v12  ;;  %5775 = vmatpush3.msra.mxu1 %v6361_v17  ;;  %v5342_v18 = vld [vmem:[%s6195_s18 + $0x18] sm:$0x3f] }
  0x3f   : > { %v1207_v36 = vcombine.low %v1094_v16, %v1102_v26  ;;  %5789 = vmatprep.subr.mxu0 %v6370_v24  ;;  %v392_v37 = vrot.slane %v378_v28, %v6198_v12  ;;  %v401_v41 = vrot.slane %v288_v27, %v6198_v12  ;;  %v1103_v42 = vcombine.high %v5328_v62, %v5328_v62  ;;  %v6420_v16 = vld [vmem:[%s8146_s1 + $0x80] sm:$0xff] }
  0x40   : > { %5764 = vmatprep.mubr.msk.f32.mxu0 %vm682_vm1, %v6375_v29  ;;  %v1222_v32 = vrot.slane %v1208_v33, %v6198_v12  ;;  %v861_v44 = vcombine.low %v853_v35, %v860_v30  ;;  %v1118_v46 = vcombine.high %v1110_v23, %v1110_v23  ;;  %v1126_v47 = vrot.slane %v5329_v34, %v6198_v12  ;;  %v5343_v33 = vld [vmem:[%s6195_s18 + $0x38] sm:$0x3f] }
  0x41   : > { %v1215_v45 = vrot.slane %v1207_v36, %v6198_v12  ;;  %5790 = vmatpush3.msra.mxu0 %v6370_v24  ;;  %v409_v49 = vcombine.high %v401_v41, %v401_v41  ;;  %v862_v51 = vcombine.low %v393_v40, %v392_v37  ;;  %v1117_v52 = vrot.slane %v1103_v42, %v6198_v12 }
  0x42   : > { %v394_v53 = vcombine.high %v288_v27, %v288_v27  ;;  %5776 = vmatprep.subr.mxu1 %v6389_v38  ;;  %5748 = vmatmul.mubr.msk.f32.gmra.mxu1 %vm682_vm1, %v861_v44  ;;  %v1134_v55 = vcombine.high %v1126_v47, %v1126_v47  ;;  %v410_v56 = vcombine.high %v289_v43, %v289_v43 }
  0x43   : > { %v6407_v54 = vcombine.low %v1215_v45, %v1222_v32  ;;  %v417_v59 = vrot.slane %v289_v43, %v6198_v12  ;;  %v863_v61 = vcombine.low %v401_v41, %v409_v49  ;;  %v870_v62 = vrot.slane %v862_v51, %v6198_v12  ;;  %5791 = vmatprep.subr.mxu0 %v6402_v48  ;;  %v1742_v32 = vld [vmem:[%s6195_s18 + $0x1] sm:$0x3f] }
  0x44   : > { %v1224_v63 = vcombine.low %v1118_v46, %v1117_v52  ;;  %v408_v4 = vrot.slane %v394_v53, %v6198_v12  ;;  %v1225_v5 = vcombine.low %v1126_v47, %v1134_v55  ;;  %v424_v10 = vrot.slane %v410_v56, %v6198_v12  ;;  %5777 = vmatpush3.msra.mxu1 %v6389_v38  ;;  %v1743_v49 = vld [vmem:[%s6195_s18 + $0x21] sm:$0x3f] }
  0x45   : > { %5765 = vmatmul.mubr.msk.f32.gmra.mxu0 %vm682_vm1, %v6407_v54  ;;  %v425_v14 = vcombine.high %v417_v59, %v417_v59  ;;  %v1119_v15 = vcombine.high %v5329_v34, %v5329_v34  ;;  %v877_v19 = vrot.slane %v863_v61, %v6198_v12  ;;  %v1135_v25 = vcombine.high %v5330_v60, %v5330_v60 }
  0x46   : > { %v1232_v20 = vrot.slane %v1224_v63, %v6198_v12  ;;  %v879_v23 = vcombine.low %v408_v4, %v417_v59  ;;  %v1239_v26 = vrot.slane %v1225_v5, %v6198_v12  ;;  %v1142_v30 = vrot.slane %v5330_v60, %v6198_v12  ;;  %5792 = vmatpush3.msra.mxu0 %v6402_v48 }
  0x47   : > { %v880_v27 = vcombine.low %v425_v14, %v424_v10  ;;  %v1133_v28 = vrot.slane %v1119_v15, %v6198_v12  ;;  %v878_v34 = vcombine.low %v870_v62, %v877_v19  ;;  %v1149_v36 = vrot.slane %v1135_v25, %v6198_v12  ;;  %5793 = vmatprep.subr.mxu0 %v6420_v16  ;;  %v5344_v62 = vld [vmem:[%s6195_s18 + $0x58] sm:$0x3f] }
  0x48   : > { %v887_v35 = vrot.slane %v879_v23, %v6198_v12  ;;  %v1391_v37 = vcombine.high %v5342_v18, %v5342_v18  ;;  %v6435_v40 = vcombine.low %v1232_v20, %v1239_v26  ;;  %v1150_v42 = vcombine.high %v1142_v30, %v1142_v30  ;;  %5794 = vmatpush3.msra.mxu0 %v6420_v16  ;;  %v1744_v20 = vld [vmem:[%s6195_s18 + $0x41] sm:$0x3f] }
  0x49   : > { %v894_v41 = vrot.slane %v880_v27, %v6198_v12  ;;  %v1241_v43 = vcombine.low %v1133_v28, %v1142_v30  ;;  %5750 = vmatprep.mubr.msk.f32.mxu1 %vm682_vm1, %v878_v34  ;;  %v1398_v44 = vrot.slane %v5342_v18, %v6198_v12  ;;  %v1407_v46 = vcombine.high %v5343_v33, %v5343_v33  ;;  %v5345_v28 = vld [vmem:[%s6195_s18 + $0x78] sm:$0x3f] }
  0x4a   : > { %v1405_v45 = vrot.slane %v1391_v37, %v6198_v12  ;;  %v1414_v47 = vrot.slane %v5343_v33, %v6198_v12  ;;  %5767 = vmatprep.mubr.msk.f32.mxu0 %vm682_vm1, %v6435_v40  ;;  %v1242_v52 = vcombine.low %v1150_v42, %v1149_v36  ;;  %v1758_v55 = vcombine.high %v1742_v32, %v1742_v32 }
  0x4b   : > { %v895_v51 = vcombine.low %v887_v35, %v894_v41  ;;  %v1249_v53 = vrot.slane %v1241_v43, %v6198_v12  ;;  %v1406_v56 = vcombine.high %v1398_v44, %v1398_v44  ;;  %v1421_v59 = vrot.slane %v1407_v46, %v6198_v12  ;;  %5804 = vmatprep.subr.msk.mxu1 %vm695_vm0, %v6144_v0  ;;  %v1745_v46 = vld [vmem:[%s6195_s18 + $0x61] sm:$0x3f] }
  0x4c   : > { %v1422_v60 = vcombine.high %v1414_v47, %v1414_v47  ;;  %v1525_v61 = vcombine.low %v1405_v45, %v1414_v47  ;;  %v1256_v63 = vrot.slane %v1242_v52, %v6198_v12  ;;  %v1765_v4 = vrot.slane %v1742_v32, %v6198_v12  ;;  %5821 = vmatprep.subr.msk.mxu0 %vm695_vm0, %v6203_v13 }
  0x4d   : > { %5751 = vmatmul.mubr.msk.f32.gmra.mxu1 %vm682_vm1, %v895_v51  ;;  %v1772_v5 = vrot.slane %v1758_v55, %v6198_v12  ;;  %v1774_v10 = vcombine.high %v1743_v49, %v1743_v49  ;;  %v1524_v14 = vcombine.low %v1398_v44, %v1406_v56  ;;  %v1781_v19 = vrot.slane %v1743_v49, %v6198_v12 }
  0x4e   : > { %v1539_v15 = vrot.slane %v1525_v61, %v6198_v12  ;;  %v1541_v18 = vcombine.low %v1422_v60, %v1421_v59  ;;  %v6460_v23 = vcombine.low %v1249_v53, %v1256_v63  ;;  %v1773_v25 = vcombine.high %v1765_v4, %v1765_v4  ;;  %v5346_v60 = vld [vmem:[%s6195_s18 + $0x98] sm:$0x3f] }
  0x4f   : > { %v1788_v26 = vrot.slane %v1774_v10, %v6198_v12  ;;  %v1430_v27 = vrot.slane %v5344_v62, %v6198_v12  ;;  %v1532_v30 = vrot.slane %v1524_v14, %v6198_v12  ;;  %v1789_v33 = vcombine.high %v1781_v19, %v1781_v19 }
  0x50   : > { %v1892_v34 = vcombine.low %v1772_v5, %v1781_v19  ;;  %v1549_v35 = vrot.slane %v1541_v18, %v6198_v12  ;;  %5768 = vmatmul.mubr.msk.f32.gmra.mxu0 %vm682_vm1, %v6460_v23  ;;  %v1891_v36 = vcombine.low %v1765_v4, %v1773_v25  ;;  %v1797_v32 = vrot.slane %v1744_v20, %v6198_v12  ;;  %v5347_v18 = vld [vmem:[%s6195_s18 + $0xb8] sm:$0x3f] }
  0x51   : > { %v1438_v37 = vcombine.high %v1430_v27, %v1430_v27  ;;  %v1423_v41 = vcombine.high %v5344_v62, %v5344_v62  ;;  %v6470_v42 = vcombine.low %v1532_v30, %v1539_v15  ;;  %v1908_v44 = vcombine.low %v1789_v33, %v1788_v26 }
  0x52   : > { %v1906_v43 = vrot.slane %v1892_v34, %v6198_v12  ;;  %v1439_v45 = vcombine.high %v5345_v28, %v5345_v28  ;;  %v1899_v47 = vrot.slane %v1891_v36, %v6198_v12  ;;  %v1805_v51 = vcombine.high %v1797_v32, %v1797_v32 }
  0x53   : > { %v1542_v49 = vcombine.low %v1430_v27, %v1438_v37  ;;  %v1437_v52 = vrot.slane %v1423_v41, %v6198_v12  ;;  %5778 = vmatprep.mubr.msk.f32.mxu1 %vm682_vm1, %v6470_v42  ;;  %v1916_v53 = vrot.slane %v1908_v44, %v6198_v12  ;;  %v1446_v55 = vrot.slane %v5345_v28, %v6198_v12  ;;  %v1746_v27 = vld [vmem:[%s6195_s18 + $0x81] sm:$0x3f] }
  0x54   : > { %v1453_v56 = vrot.slane %v1439_v45, %v6198_v12  ;;  %v1790_v59 = vcombine.high %v1744_v20, %v1744_v20  ;;  %v6482_v61 = vcombine.low %v1899_v47, %v1906_v43  ;;  %v1909_v63 = vcombine.low %v1797_v32, %v1805_v51  ;;  %v1747_v41 = vld [vmem:[%s6195_s18 + $0xa1] sm:$0x3f] }
  0x55   : > { %v1556_v62 = vrot.slane %v1542_v49, %v6198_v12  ;;  %v1806_v4 = vcombine.high %v1745_v46, %v1745_v46  ;;  %v1454_v5 = vcombine.high %v1446_v55, %v1446_v55  ;;  %v1558_v10 = vcombine.low %v1437_v52, %v1446_v55 }
  0x56   : > { %v1804_v14 = vrot.slane %v1790_v59, %v6198_v12  ;;  %v1813_v15 = vrot.slane %v1745_v46, %v6198_v12  ;;  %5795 = vmatprep.mubr.msk.f32.mxu0 %vm682_vm1, %v6482_v61  ;;  %v1923_v20 = vrot.slane %v1909_v63, %v6198_v12  ;;  %v1455_v26 = vcombine.high %v5346_v60, %v5346_v60 }
  0x57   : > { %v6490_v19 = vcombine.low %v1549_v35, %v1556_v62  ;;  %v1820_v25 = vrot.slane %v1806_v4, %v6198_v12  ;;  %v1559_v28 = vcombine.low %v1454_v5, %v1453_v56  ;;  %v1566_v30 = vrot.slane %v1558_v10, %v6198_v12  ;;  %v5348_v56 = vld [vmem:[%s6195_s18 + $0xd8] sm:$0x3f]  ;;  %v1748_v5 = vld [vmem:[%s6195_s18 + $0xc1] sm:$0x3f] }
  0x58   : > { %v1821_v33 = vcombine.high %v1813_v15, %v1813_v15  ;;  %v1925_v34 = vcombine.low %v1804_v14, %v1813_v15  ;;  %v6498_v36 = vcombine.low %v1916_v53, %v1923_v20  ;;  %v1462_v37 = vrot.slane %v5346_v60, %v6198_v12 }
  0x59   : > { %5779 = vmatmul.mubr.msk.f32.vlgmr.msra.gmra.mxu1 %vm682_vm1, %v6490_v19  ;;  %v1469_v35 = vrot.slane %v1455_v26, %v6198_v12  ;;  %v1478_v32 = vrot.slane %v5347_v18, %v6198_v12  ;;  %v1573_v43 = vrot.slane %v1559_v28, %v6198_v12  ;;  %v1822_v46 = vcombine.high %v1746_v27, %v1746_v27 }
  0x5a   : > { %5805 = vmatpush3.msk.msra.mxu1 %vm695_vm0, %v6144_v0  ;;  %v1926_v44 = vcombine.low %v1821_v33, %v1820_v25  ;;  %v1933_v45 = vrot.slane %v1925_v34, %v6198_v12  ;;  %5796 = vmatmul.mubr.msk.f32.vlgmr.msra.gmra.mxu0 %vm682_vm1, %v6498_v36  ;;  %v1470_v47 = vcombine.high %v1462_v37, %v1462_v37  ;;  %v5349_v25 = vld [vmem:[%s6195_s18 + $0xf8] sm:$0x3f] }
  0x5b   : > { %5806 = vmatprep.subr.mxu1 %v6149_v1  ;;  %v1576_v49 = vcombine.low %v1469_v35, %v1478_v32  ;;  %v1829_v51 = vrot.slane %v1746_v27, %v6198_v12  ;;  %v6512_v52 = vcombine.low %v1566_v30, %v1573_v43  ;;  %v1836_v53 = vrot.slane %v1822_v46, %v6198_v12  ;;  %v1749_v46 = vld [vmem:[%s6195_s18 + $0xe1] sm:$0x3f] }
  0x5c   : > { %v1940_v0 = vrot.slane %v1926_v44, %v6198_v12  ;;  %5807 = vmatpush3.msra.mxu1 %v6149_v1  ;;  %v1845_v55 = vrot.slane %v1747_v41, %v6198_v12  ;;  %v1575_v59 = vcombine.low %v1462_v37, %v1470_v47  ;;  %5822 = vmatpush3.msk.msra.mxu0 %vm695_vm0, %v6203_v13 }
  0x5d   : > { %v1590_v60 = vrot.slane %v1576_v49, %v6198_v12  ;;  %v1837_v62 = vcombine.high %v1829_v51, %v1829_v51  ;;  %5808 = vmatprep.subr.mxu1 %v6159_v3  ;;  %5781 = vmatprep.mubr.msk.f32.mxu1 %vm682_vm1, %v6512_v52  ;;  %v1471_v4 = vcombine.high %v5347_v18, %v5347_v18 }
  0x5e   : > { %v6525_v63 = vcombine.low %v1933_v45, %v1940_v0  ;;  %v1943_v1 = vcombine.low %v1836_v53, %v1845_v55  ;;  %5809 = vmatpush3.msra.mxu1 %v6159_v3  ;;  %v1583_v10 = vrot.slane %v1575_v59, %v6198_v12  ;;  %5823 = vmatprep.subr.mxu0 %v6256_v2 }
  0x5f   : > { %v1942_v14 = vcombine.low %v1829_v51, %v1837_v62  ;;  %v1486_v15 = vcombine.high %v1478_v32, %v1478_v32  ;;  %v1494_v20 = vrot.slane %v5348_v56, %v6198_v12  ;;  %v1485_v26 = vrot.slane %v1471_v4, %v6198_v12  ;;  %5824 = vmatpush3.msra.mxu0 %v6256_v2 }
  0x60   : > { %5798 = vmatprep.mubr.msk.f32.mxu0 %vm682_vm1, %v6525_v63  ;;  %v1957_v13 = vrot.slane %v1943_v1, %v6198_v12  ;;  %v1838_v27 = vcombine.high %v1747_v41, %v1747_v41  ;;  %v1853_v3 = vcombine.high %v1845_v55, %v1845_v55  ;;  %v6537_v18 = vcombine.low %v1583_v10, %v1590_v60 }
  0x61   : > { %v1950_v28 = vrot.slane %v1942_v14, %v6198_v12  ;;  %v1502_v30 = vcombine.high %v1494_v20, %v1494_v20  ;;  %v1861_v33 = vrot.slane %v1748_v5, %v6198_v12  ;;  %v1592_v34 = vcombine.low %v1486_v15, %v1485_v26  ;;  %5810 = vmatprep.subr.mxu1 %v6180_v9 }
  0x62   : > { %v1852_v37 = vrot.slane %v1838_v27, %v6198_v12  ;;  %v1487_v35 = vcombine.high %v5348_v56, %v5348_v56  ;;  %v1503_v32 = vcombine.high %v5349_v25, %v5349_v25  ;;  %5782 = vmatmul.mubr.msk.f32.gmra.mxu1 %vm682_vm1, %v6537_v18  ;;  %v1510_v45 = vrot.slane %v5349_v25, %v6198_v12 }
  0x63   : > { %v6546_v41 = vcombine.low %v1950_v28, %v1957_v13  ;;  %v1593_v43 = vcombine.low %v1494_v20, %v1502_v30  ;;  %v1869_v44 = vcombine.high %v1861_v33, %v1861_v33  ;;  %v1600_v47 = vrot.slane %v1592_v34, %v6198_v12  ;;  %5825 = vmatprep.subr.mxu0 %v6271_v21  ;;  %v5394_v20 = vld [vmem:[%s6195_s18 + $0x9] sm:$0x3f] }
  0x64   : > { %v1959_v2 = vcombine.low %v1853_v3, %v1852_v37  ;;  %v1501_v49 = vrot.slane %v1487_v35, %v6198_v12  ;;  %v1517_v51 = vrot.slane %v1503_v32, %v6198_v12  ;;  %v1518_v55 = vcombine.high %v1510_v45, %v1510_v45  ;;  %5811 = vmatpush3.msra.mxu1 %v6180_v9  ;;  %v5396_v9 = vld [vmem:[%s6195_s18 + $0x49] sm:$0x3f] }
  0x65   : > { %5799 = vmatmul.mubr.msk.f32.gmra.mxu0 %vm682_vm1, %v6546_v41  ;;  %v1607_v0 = vrot.slane %v1593_v43, %v6198_v12  ;;  %v1960_v53 = vcombine.low %v1861_v33, %v1869_v44  ;;  %v1854_v56 = vcombine.high %v1748_v5, %v1748_v5  ;;  %v1870_v62 = vcombine.high %v1749_v46, %v1749_v46  ;;  %v5395_v5 = vld [vmem:[%s6195_s18 + $0x29] sm:$0x3f] }
  0x66   : > { %v1967_v59 = vrot.slane %v1959_v2, %v6198_v12  ;;  %v1609_v60 = vcombine.low %v1501_v49, %v1510_v45  ;;  %v1877_v1 = vrot.slane %v1749_v46, %v6198_v12  ;;  %v1610_v14 = vcombine.low %v1518_v55, %v1517_v51  ;;  %5826 = vmatpush3.msra.mxu0 %v6271_v21  ;;  %v5397_v37 = vld [vmem:[%s6195_s18 + $0x69] sm:$0x3f] }
  0x67   : > { %v6560_v4 = vcombine.low %v1600_v47, %v1607_v0  ;;  %v1974_v10 = vrot.slane %v1960_v53, %v6198_v12  ;;  %v1868_v15 = vrot.slane %v1854_v56, %v6198_v12  ;;  %v1884_v13 = vrot.slane %v1870_v62, %v6198_v12  ;;  %5827 = vmatprep.subr.mxu0 %v6287_v39  ;;  %v5398_v53 = vld [vmem:[%s6195_s18 + $0x89] sm:$0x3f] }
  0x68   : > { %v1617_v25 = vrot.slane %v1609_v60, %v6198_v12  ;;  %v1885_v26 = vcombine.high %v1877_v1, %v1877_v1  ;;  %5838 = vmatprep.subr.msk.mxu1 %vm695_vm0, %v6166_v7  ;;  %v1624_v21 = vrot.slane %v1610_v14, %v6198_v12  ;;  %5828 = vmatpush3.msra.mxu0 %v6287_v39 }
  0x69   : > { %5784 = vmatprep.mubr.msk.f32.mxu1 %vm682_vm1, %v6560_v4  ;;  %v6575_v27 = vcombine.low %v1967_v59, %v1974_v10  ;;  %v1976_v3 = vcombine.low %v1868_v15, %v1877_v1  ;;  %5855 = vmatprep.subr.msk.mxu0 %vm695_vm0, %v6299_v50  ;;  %v2543_v30 = vcombine.high %v5394_v20, %v5394_v20 }
  0x6a   : > { %v1977_v28 = vcombine.low %v1885_v26, %v1884_v13  ;;  %v2550_v33 = vrot.slane %v5394_v20, %v6198_v12  ;;  %v2559_v34 = vcombine.high %v5395_v5, %v5395_v5  ;;  %v6585_v35 = vcombine.low %v1617_v25, %v1624_v21 }
  0x6b   : > { %5801 = vmatprep.mubr.msk.f32.mxu0 %vm682_vm1, %v6575_v27  ;;  %v1984_v32 = vrot.slane %v1976_v3, %v6198_v12  ;;  %v2566_v43 = vrot.slane %v5395_v5, %v6198_v12  ;;  %v2582_v39 = vrot.slane %v5396_v9, %v6198_v12  ;;  %v2557_v45 = vrot.slane %v2543_v30, %v6198_v12 }
  0x6c   : > { %v1991_v44 = vrot.slane %v1977_v28, %v6198_v12  ;;  %v2558_v46 = vcombine.high %v2550_v33, %v2550_v33  ;;  %v2573_v47 = vrot.slane %v2559_v34, %v6198_v12  ;;  %5785 = vmatmul.mubr.msk.f32.gmra.mxu1 %vm682_vm1, %v6585_v35  ;;  %v2575_v51 = vcombine.high %v5396_v9, %v5396_v9 }
  0x6d   : > { %v2574_v2 = vcombine.high %v2566_v43, %v2566_v43  ;;  %v2590_v49 = vcombine.high %v2582_v39, %v2582_v39  ;;  %v2591_v0 = vcombine.high %v5397_v37, %v5397_v37  ;;  %5812 = vmatprep.mubr.msk.f32.mxu1 %vm682_vm1, %v6470_v42  ;;  %v2672_v59 = vcombine.low %v2557_v45, %v2566_v43  ;;  %v5399_v42 = vld [vmem:[%s6195_s18 + $0xa9] sm:$0x3f] }
  0x6e   : > { %v6596_v55 = vcombine.low %v1984_v32, %v1991_v44  ;;  %v2671_v56 = vcombine.low %v2550_v33, %v2558_v46  ;;  %v2598_v60 = vrot.slane %v5397_v37, %v6198_v12  ;;  %v2589_v10 = vrot.slane %v2575_v51, %v6198_v12  ;;  %v5401_v44 = vld [vmem:[%s6195_s18 + $0xe9] sm:$0x3f] }
  0x6f   : > { %v2688_v62 = vcombine.low %v2574_v2, %v2573_v47  ;;  %v2689_v1 = vcombine.low %v2582_v39, %v2590_v49  ;;  %v2605_v14 = vrot.slane %v2591_v0, %v6198_v12  ;;  %v2686_v20 = vrot.slane %v2672_v59, %v6198_v12  ;;  %v5409_v0 = vld [vmem:[%s6195_s18 + $0x11] sm:$0x3f] }
  0x70   : > { %5802 = vmatmul.mubr.msk.f32.gmra.mxu0 %vm682_vm1, %v6596_v55  ;;  %v2679_v15 = vrot.slane %v2671_v56, %v6198_v12  ;;  %v2606_v5 = vcombine.high %v2598_v60, %v2598_v60  ;;  %v2607_v25 = vcombine.high %v5398_v53, %v5398_v53  ;;  %5813 = vmatmul.mubr.msk.f32.vlgmr.msra.gmra.mxu1 %vm682_vm1, %v6490_v19 }
  0x71   : > { %5829 = vmatprep.mubr.msk.f32.mxu0 %vm682_vm1, %v6324_v31  ;;  %v2696_v13 = vrot.slane %v2688_v62, %v6198_v12  ;;  %v2703_v26 = vrot.slane %v2689_v1, %v6198_v12  ;;  %v2705_v9 = vcombine.low %v2589_v10, %v2598_v60  ;;  %5839 = vmatpush3.msk.msra.mxu1 %vm695_vm0, %v6166_v7  ;;  %v5400_v31 = vld [vmem:[%s6195_s18 + $0xc9] sm:$0x3f]  ;;  %v5411_v10 = vld [vmem:[%s6195_s18 + $0x51] sm:$0x3f] }
  0x72   : > { %5815 = vmatprep.mubr.msk.f32.mxu1 %vm682_vm1, %v6512_v52  ;;  %v6618_v21 = vcombine.low %v2679_v15, %v2686_v20  ;;  %v2706_v3 = vcombine.low %v2606_v5, %v2605_v14  ;;  %v2614_v28 = vrot.slane %v5398_v53, %v6198_v12  ;;  %5840 = vmatprep.subr.mxu1 %v6174_v8  ;;  %v5410_v53 = vld [vmem:[%s6195_s18 + $0x31] sm:$0x3f] }
  0x73   : > { %v6623_v19 = vcombine.low %v2696_v13, %v2703_v26  ;;  %v2713_v30 = vrot.slane %v2705_v9, %v6198_v12  ;;  %v2621_v33 = vrot.slane %v2607_v25, %v6198_v12  ;;  %v2630_v7 = vrot.slane %v5399_v42, %v6198_v12  ;;  %5841 = vmatpush3.msra.mxu1 %v6174_v8  ;;  %v5412_v9 = vld [vmem:[%s6195_s18 + $0x71] sm:$0x3f] }
  0x74   : > { %5830 = vmatmul.mubr.msk.f32.vlgmr.msra.gmra.mxu0 %vm682_vm1, %v6339_v57  ;;  %v2720_v52 = vrot.slane %v2706_v3, %v6198_v12  ;;  %v2622_v34 = vcombine.high %v2614_v28, %v2614_v28  ;;  %v2623_v37 = vcombine.high %v5399_v42, %v5399_v42  ;;  %5816 = vmatmul.mubr.msk.f32.gmra.mxu1 %vm682_vm1, %v6537_v18 }
  0x75   : > { %5832 = vmatprep.mubr.msk.f32.mxu0 %vm682_vm1, %v6375_v29  ;;  %v2723_v32 = vcombine.low %v2621_v33, %v2630_v7  ;;  %v2638_v43 = vcombine.high %v2630_v7, %v2630_v7  ;;  %v2646_v39 = vrot.slane %v5400_v31, %v6198_v12  ;;  %5842 = vmatprep.subr.mxu1 %v6187_v11  ;;  %v5986_v29 = vld [vmem:[%s8146_s1 + $0x48] sm:$0xff]  ;;  %v5413_v33 = vld [vmem:[%s6195_s18 + $0x91] sm:$0x3f] }
  0x76   : > { %5818 = vmatprep.mubr.msk.f32.mxu1 %vm682_vm1, %v6560_v4  ;;  %v6641_v8 = vcombine.low %v2713_v30, %v2720_v52  ;;  %v2722_v57 = vcombine.low %v2614_v28, %v2622_v34  ;;  %v2637_v45 = vrot.slane %v2623_v37, %v6198_v12  ;;  %5843 = vmatpush3.msra.mxu1 %v5986_v29  ;;  %v5414_v37 = vld [vmem:[%s6195_s18 + $0xb1] sm:$0x3f] }
  0x77   : > { %5856 = vmatpush3.msk.msra.mxu0 %vm695_vm0, %v6299_v50  ;;  %v2737_v11 = vrot.slane %v2723_v32, %v6198_v12  ;;  %v2654_v18 = vcombine.high %v2646_v39, %v2646_v39  ;;  %v2639_v46 = vcombine.high %v5400_v31, %v5400_v31  ;;  %5844 = vmatprep.subr.mxu1 %v6218_v22 }
  0x78   : > { %5833 = vmatmul.mubr.msk.f32.gmra.mxu0 %vm682_vm1, %v6407_v54  ;;  %v2730_v4 = vrot.slane %v2722_v57, %v6198_v12  ;;  %v2739_v47 = vcombine.low %v2638_v43, %v2637_v45  ;;  %v2655_v2 = vcombine.high %v5401_v44, %v5401_v44  ;;  %5819 = vmatmul.mubr.msk.f32.gmra.mxu1 %vm682_vm1, %v6585_v35 }
  0x79   : > { %5835 = vmatprep.mubr.msk.f32.mxu0 %vm682_vm1, %v6435_v40  ;;  %v2740_v50 = vcombine.low %v2646_v39, %v2654_v18  ;;  %v2653_v49 = vrot.slane %v2639_v46, %v6198_v12  ;;  %v2662_v51 = vrot.slane %v5401_v44, %v6198_v12  ;;  %5857 = vmatprep.subr.mxu0 %v6344_v58 }
  0x7a   : > { %5845 = vmatpush3.msra.mxu1 %v6218_v22  ;;  %v2738_v54 = vcombine.low %v2730_v4, %v2737_v11  ;;  %v2747_v56 = vrot.slane %v2739_v47, %v6198_v12  ;;  %v2669_v40 = vrot.slane %v2655_v2, %v6198_v12  ;;  %5858 = vmatpush3.msra.mxu0 %v6344_v58  ;;  %v5987_v58 = vld [vmem:[%s8146_s1 + $0x98] sm:$0xf]  ;;  %v5416_v11 = vld [vmem:[%s6195_s18 + $0xf1] sm:$0x3f] }
  0x7b   : > { %5846 = vmatprep.mubr.msk.f32.mxu1 %vm682_vm1, %v6482_v61  ;;  %v2754_v35 = vrot.slane %v2740_v50, %v6198_v12  ;;  %v2670_v59 = vcombine.high %v2662_v51, %v2662_v51  ;;  %v2756_v60 = vcombine.low %v2653_v49, %v2662_v51  ;;  %5859 = vmatprep.subr.mxu0 %v6361_v17 }
  0x7c   : > { %5836 = vmatmul.mubr.msk.f32.gmra.mxu0 %vm682_vm1, %v6460_v23  ;;  %v2902_v22 = vcombine.high %v5409_v0, %v5409_v0  ;;  %v2909_v62 = vrot.slane %v5409_v0, %v6198_v12  ;;  %v2918_v1 = vcombine.high %v5410_v53, %v5410_v53  ;;  %5872 = vmatprep.subr.msk.mxu1 %vm695_vm0, %v5987_v58 }
  0x7d   : > { %5860 = vmatpush3.msra.mxu0 %v6361_v17  ;;  %v2755_v61 = vcombine.low %v2747_v56, %v2754_v35  ;;  %v2757_v14 = vcombine.low %v2670_v59, %v2669_v40  ;;  %v2764_v15 = vrot.slane %v2756_v60, %v6198_v12  ;;  %5847 = vmatmul.mubr.msk.f32.vlgmr.msra.gmra.mxu1 %vm682_vm1, %v6498_v36 }
  0x7e   : > { %5861 = vmatprep.subr.mxu0 %v6389_v38  ;;  %v2916_v23 = vrot.slane %v2902_v22, %v6198_v12  ;;  %v2917_v20 = vcombine.high %v2909_v62, %v2909_v62  ;;  %v2925_v17 = vrot.slane %v5410_v53, %v6198_v12  ;;  %5873 = vmatpush3.msk.msra.mxu1 %vm695_vm0, %v5987_v58 }
  0x7f   : > { %5862 = vmatpush3.msra.mxu0 %v6389_v38  ;;  %v2771_v5 = vrot.slane %v2757_v14, %v6198_v12  ;;  %v2932_v42 = vrot.slane %v2918_v1, %v6198_v12  ;;  %v2941_v25 = vrot.slane %v5411_v10, %v6198_v12  ;;  %5863 = vmatprep.mubr.msk.f32.mxu0 %vm682_vm1, %v6618_v21 }
  0x80   : > { %5874 = vmatprep.subr.mxu1 %v6370_v24  ;;  %v2933_v36 = vcombine.high %v2925_v17, %v2925_v17  ;;  %v3030_v13 = vcombine.low %v2909_v62, %v2917_v20  ;;  %v3031_v26 = vcombine.low %v2916_v23, %v2925_v17  ;;  %5864 = vmatmul.mubr.msk.f32.vlgmr.msra.gmra.mxu0 %vm682_vm1, %v6623_v19 }
  0x81   : > { %5849 = vmatprep.mubr.msk.f32.mxu1 %vm682_vm1, %v6525_v63  ;;  %v2772_v38 = vcombine.low %v2764_v15, %v2771_v5  ;;  %v2949_v3 = vcombine.high %v2941_v25, %v2941_v25  ;;  %v2934_v28 = vcombine.high %v5411_v10, %v5411_v10  ;;  %5875 = vmatpush3.msra.mxu1 %v6370_v24 }
  0x82   : > { %5866 = vmatprep.mubr.msk.f32.mxu0 %vm682_vm1, %v6641_v8  ;;  %v3038_v21 = vrot.slane %v3030_v13, %v6198_v12  ;;  %v3045_v31 = vrot.slane %v3031_v26, %v6198_v12  ;;  %v3047_v30 = vcombine.low %v2933_v36, %v2932_v42  ;;  %5850 = vmatmul.mubr.msk.f32.gmra.mxu1 %vm682_vm1, %v6546_v41  ;;  %v3380_v42 = vld [vmem:[%s8148_s3 + $0x78] sm:$0xf]  ;;  %v3378_v36 = vld [vmem:[%s8148_s3 + $0x68] sm:$0xff]  ;;  %v3377_v13 = vld [vmem:[%s8148_s3 + $0x60] sm:$0xff] }
  0x83   : > { %5876 = vmatprep.subr.mxu1 %v6402_v48  ;;  %v3048_v63 = vcombine.low %v2941_v25, %v2949_v3  ;;  %v2948_v19 = vrot.slane %v2934_v28, %v6198_v12  ;;  %v2950_v24 = vcombine.high %v5412_v9, %v5412_v9  ;;  %5852 = vmatprep.mubr.msk.f32.mxu1 %vm682_vm1, %v6575_v27  ;;  %v3379_v25 = vld [vmem:[%s8148_s3 + $0x70] sm:$0xf]  ;;  %v3376_v26 = vld [vmem:[%s8148_s3 + $0x58] sm:$0xff]  ;;  %v3373_v3 = vld [vmem:[%s8148_s3 + $0x40] sm:$0xff] }
  0x84   : > { %5877 = vmatpush3.msra.mxu1 %v6402_v48  ;;  %v3046_v7 = vcombine.low %v3038_v21, %v3045_v31  ;;  %v3055_v52 = vrot.slane %v3047_v30, %v6198_v12  ;;  %v2957_v34 = vrot.slane %v5412_v9, %v6198_v12  ;;  %5867 = vmatmul.mubr.msk.f32.gmra.mxu0 %vm682_vm1, %v2738_v54  ;;  %v5415_v48 = vld [vmem:[%s6195_s18 + $0xd1] sm:$0x3f]  ;;  %v3372_v28 = vld [vmem:[%s8148_s3 + $0x38] sm:$0xff]  ;;  %v3370_v31 = vld [vmem:[%s8148_s3 + $0x28] sm:$0xff]  ;;  %s272_s18 = sand.u32 1, %s6040_s25  }
  0x85   : > { %5878 = vmatprep.subr.mxu1 %v6420_v16  ;;  %v3062_v41 = vrot.slane %v3048_v63, %v6198_v12  ;;  %v2964_v32 = vrot.slane %v2950_v24, %v6198_v12  ;;  %v2966_v43 = vcombine.high %v5413_v33, %v5413_v33  ;;  %5869 = vmatprep.mubr.msk.f32.mxu0 %vm682_vm1, %v2755_v61  ;;  %v3375_v9 = vld [vmem:[%s8148_s3 + $0x50] sm:$0xff]  ;;  %v3369_v30 = vld [vmem:[%s8148_s3 + $0x20] sm:$0xff]  ;;  %s5293_s22 = sshll.u32 %s272_s18, 3  ;;  %s5217_s19 = scalar_lea.sflag [#allocation3], %s272_s18 }
  0x86   : > { %5879 = vmatpush3.msra.mxu1 %v6420_v16  ;;  %v2965_v27 = vcombine.high %v2957_v34, %v2957_v34  ;;  %v3064_v39 = vcombine.low %v2948_v19, %v2957_v34  ;;  %v2973_v44 = vrot.slane %v5413_v33, %v6198_v12  ;;  %v2989_v45 = vrot.slane %v5414_v37, %v6198_v12  ;;  %v3371_v21 = vld [vmem:[%s8148_s3 + $0x30] sm:$0xff]  ;;  %v3368_v33 = vld [vmem:[%s8148_s3 + $0x18] sm:$0xff]  ;;  %v3366_v19 = vld [vmem:[%s8148_s3 + $0x8] sm:$0xff]  ;;  %s274_s9 = scalar_lea.vmem [#allocation2], %s5293_s22 }
  0x87   : > { %5853 = vmatmul.mubr.msk.f32.gmra.mxu1 %vm682_vm1, %v6596_v55  ;;  %v3063_v8 = vcombine.low %v3055_v52, %v3062_v41  ;;  %v2980_v57 = vrot.slane %v2966_v43, %v6198_v12  ;;  %v2982_v29 = vcombine.high %v5414_v37, %v5414_v37  ;;  %v3005_v4 = vrot.slane %v5415_v48, %v6198_v12  ;;  %v3367_v63 = vld [vmem:[%s8148_s3 + $0x10] sm:$0xff]  ;;  %v3365_v24 = vld [vmem:[%s8148_s3] sm:$0xff]  ;;  %v5439_v52 = vld [vmem:[%s8148_s3 + $0xf8] sm:$0xf]  ;;  %s5230_s13 = sshll.u32 %s274_s9, 4  ;;  %s5231_s13 = int_to_ptr.vmem [resolvable:$true] %s5230_s13 }
  0x88   : > { %5880 = vmatprep.mubr.msk.f32.mxu1 %vm682_vm1, %v3046_v7  ;;  %v3065_v18 = vcombine.low %v2965_v27, %v2964_v32  ;;  %v3072_v46 = vrot.slane %v3064_v39, %v6198_v12  ;;  %v2981_v16 = vcombine.high %v2973_v44, %v2973_v44  ;;  %5870 = vmatmul.mubr.msk.f32.gmra.mxu0 %vm682_vm1, %v2772_v38  ;;  %v3374_v38 = vld [vmem:[%s8148_s3 + $0x48] sm:$0xff]  ;;  %v6051_v7 = vmov 0.0   ;;  %v5438_v34 = vld [vmem:[%s8148_s3 + $0xf0] sm:$0xf]  ;;  %v5436_v41 = vld [vmem:[%s8148_s3 + $0xe0] sm:$0xff]  ;;  %s5988_s20 = scalar_lea.vmem %s5231_s13, 128  ;;  %p5995_p0 = scmp.lt.s32.totalorder %s5231_s13, %s5993_s28 }
  0x89   : > { %v3082_v47 = vcombine.low %v2980_v57, %v2989_v45  ;;  %v2996_v55 = vrot.slane %v2982_v29, %v6198_v12  ;;  %v2997_v2 = vcombine.high %v2989_v45, %v2989_v45  ;;  %v2998_v50 = vcombine.high %v5415_v48, %v5415_v48  ;;  %5446 = vmatprep.subr.msk.mxu1 %vm695_vm0, %v3380_v42  ;;  %v5437_v37 = vld [vmem:[%s8148_s3 + $0xe8] sm:$0xff]  ;;  %v5505_v32 = vld [vmem:[%s8148_s3 + $0x1f8] sm:$0xf]  ;;  %v5434_v48 = vld [vmem:[%s8148_s3 + $0xd0] sm:$0xff]  ;;  %p5989_p11 = scmp.ne.s32.totalorder %s5231_s13, %s5988_s20  ;;  %p5996_p1 = scmp.lt.s32.totalorder %s5994_s21, %s5988_s20 }
  0x8a   : > { %v3079_v49 = vrot.slane %v3065_v18, %v6198_v12  ;;  %v3081_v51 = vcombine.low %v2973_v44, %v2981_v16  ;;  %v3013_v0 = vcombine.high %v3005_v4, %v3005_v4  ;;  %v3014_v53 = vcombine.high %v5416_v11, %v5416_v11  ;;  %3545 = vmatprep.mubr.f32.mxu0 %v6051_v7  ;;  %v5435_v43 = vld [vmem:[%s8148_s3 + $0xd8] sm:$0xff]  ;;  %v5433_v27 = vld [vmem:[%s8148_s3 + $0xc8] sm:$0xff]  ;;  %v5432_v39 = vld [vmem:[%s8148_s3 + $0xc0] sm:$0xff] }
  0x8b   : > { %5881 = vmatmul.mubr.msk.f32.vlgmr.msra.gmra.mxu1 %vm682_vm1, %v3063_v8  ;;  %v3096_v54 = vrot.slane %v3082_v47, %v6198_v12  ;;  %v3098_v56 = vcombine.low %v2997_v2, %v2996_v55  ;;  %v3012_v40 = vrot.slane %v2998_v50, %v6198_v12  ;;  %v3021_v35 = vrot.slane %v5416_v11, %v6198_v12  ;;  %v5431_v44 = vld [vmem:[%s8148_s3 + $0xb8] sm:$0xff]  ;;  %v5430_v8 = vld [vmem:[%s8148_s3 + $0xb0] sm:$0xff]  ;;  %v5429_v57 = vld [vmem:[%s8148_s3 + $0xa8] sm:$0xff]  ;;  %p5990_p12 = pnand %p5989_p11, %p6131_p5  ;;  %p5997_p2 = por %p5996_p1, %p5995_p0 }
  0x8c   : > { %v3080_v59 = vcombine.low %v3072_v46, %v3079_v49  ;;  %v3089_v60 = vrot.slane %v3081_v51, %v6198_v12  ;;  %v3099_v22 = vcombine.low %v3005_v4, %v3013_v0  ;;  %v3028_v62 = vrot.slane %v3014_v53, %v6198_v12  ;;  %5447 = vmatpush1.msk.msra.mxu1 %vm695_vm0, %v3379_v25  ;;  %v5428_v45 = vld [vmem:[%s8148_s3 + $0xa0] sm:$0xff]  ;;  %v5427_v29 = vld [vmem:[%s8148_s3 + $0x98] sm:$0xff]  ;;  %v5426_v11 = vld [vmem:[%s8148_s3 + $0x90] sm:$0xff] }
  0x8d   : > { %v3106_v1 = vrot.slane %v3098_v56, %v6198_v12  ;;  %v3029_v10 = vcombine.high %v3021_v35, %v3021_v35  ;;  %v3115_v58 = vcombine.low %v3012_v40, %v3021_v35  ;;  %3670 = vmatprep.subr.mxu1 %v3378_v36  ;;  %5440 = vmatprep.subr.msk.mxu0 %vm695_vm0, %v5439_v52  ;;  %v5425_v46 = vld [vmem:[%s8148_s3 + $0x88] sm:$0xff]  ;;  %v5424_v16 = vld [vmem:[%s8148_s3 + $0x80] sm:$0xff]  ;;  %v5475_v4 = vld [vmem:[%s8148_s3 + $0x178] sm:$0xf]  ;;  %p5991_p13 = pneg %p5990_p12 }
  0x8e   : > { %5883 = vmatprep.mubr.msk.f32.mxu1 %vm682_vm1, %v3080_v59  ;;  %v3097_v61 = vcombine.low %v3089_v60, %v3096_v54  ;;  %v3113_v14 = vrot.slane %v3099_v22, %v6198_v12  ;;  %3671 = vmatpush1.msra.mxu1 %v3377_v13 }
  0x8f   : > { %v3116_v15 = vcombine.low %v3029_v10, %v3028_v62  ;;  %v3123_v23 = vrot.slane %v3115_v58, %v6198_v12  ;;  %3672 = vmatprep.subr.mxu1 %v3376_v26  ;;  %5441 = vmatpush1.msk.msra.mxu0 %vm695_vm0, %v5438_v34  ;;  %p5998_p3 = pnand %p5997_p2, %p5991_p13 }
  0x90   : > { %5884 = vmatmul.mubr.msk.f32.gmra.mxu1 %vm682_vm1, %v3097_v61  ;;  %v3114_v20 = vcombine.low %v3106_v1, %v3113_v14  ;;  %3499 = vmatprep.subr.mxu0 %v5437_v37 }
  0x91   : > { %v3130_v17 = vrot.slane %v3116_v15, %v6198_v12  ;;  %3673 = vmatpush1.msra.mxu1 %v3375_v9  ;;  %3500 = vmatpush1.msra.mxu0 %v5436_v41 }
  0x92   : > { %5886 = vmatprep.mubr.msk.f32.mxu1 %vm682_vm1, %v3114_v20  ;;  %3674 = vmatprep.subr.mxu1 %v3374_v38 }
  0x93   : > { %v3131_v5 = vcombine.low %v3123_v23, %v3130_v17  ;;  %3675 = vmatpush1.msra.mxu1 %v3373_v3  ;;  %3501 = vmatprep.subr.mxu0 %v5435_v43  ;;  %v6865_v17 = vld [vmem:[%s8147_s2] ss:$0 sm:$0xff] }
  0x94   : > { %3676 = vmatprep.subr.mxu1 %v3372_v28  ;;  %3502 = vmatpush1.msra.mxu0 %v5434_v48 }
  0x95   : > { %5887 = vmatmul.mubr.msk.f32.gmra.mxu1 %vm682_vm1, %v3131_v5  ;;  %3503 = vmatprep.subr.mxu0 %v5433_v27 }
  0x96   : > { %3677 = vmatpush1.msra.mxu1 %v3371_v21  ;;  %3716 = vmatprep.mubr.f32.mxu1 %v6051_v7 }
  0x97   : > { %3678 = vmatprep.subr.mxu1 %v3370_v31  ;;  %3504 = vmatpush1.msra.mxu0 %v5432_v39 }
  0x98   : > { %3679 = vmatpush1.msra.mxu1 %v3369_v30  ;;  %3505 = vmatprep.subr.mxu0 %v5431_v44 }
  0x99   : > { %3680 = vmatprep.subr.mxu1 %v3368_v33  ;;  %3506 = vmatpush1.msra.mxu0 %v5430_v8 }
  0x9a   : > { %3681 = vmatpush1.msra.mxu1 %v3367_v63  ;;  %3507 = vmatprep.subr.mxu0 %v5429_v57 }
  0x9b   : > { %3682 = vmatprep.subr.mxu1 %v3366_v19  ;;  %3508 = vmatpush1.msra.mxu0 %v5428_v45 }
  0x9c   : > { %3683 = vmatpush1.msra.mxu1 %v3365_v24  ;;  %3509 = vmatprep.subr.mxu0 %v5427_v29 }
  0x9d   : > { %5506 = vmatprep.subr.msk.mxu1 %vm695_vm0, %v5505_v32  ;;  %3510 = vmatpush1.msra.mxu0 %v5426_v11 }
  0x9e   : > { %3511 = vmatprep.subr.mxu0 %v5425_v46 }
  0x9f   : > { %3512 = vmatpush1.msra.mxu0 %v5424_v16 }
  0xa0   : > { %5476 = vmatprep.subr.msk.mxu0 %vm695_vm0, %v5475_v4 }
  0xe6   : > { %v5729_v18 = vpop.f32.mrf.mxu1 }
  0xe8   : > { %v765_v47 = vpop.f32.mrf.mxu1 }
  0xea   : > { %v5732_v55 = vpop.f32.mrf.mxu1 }
  0xec   : > { %v775_v2 = vpop.f32.mrf.mxu1 }
  0xf0   : > { %v5735_v50 = vpop.f32.mrf.mxu1 }
  0xf2   : > { %v785_v49 = vpop.f32.mrf.mxu1 }
  0xf9   : > { %v5746_v51 = vpop.f32.mrf.mxu1 }
  0xfa   : > { %v5763_v0 = vpop.f32.mrf.mxu0  ;;  %v983_v62 = vadd.f32 %v5746_v51, %v5729_v18 }
  0xfb   : > { %v977_v53 = vpop.f32.mrf.mxu1 }
  0xfc   : > { %v1339_v54 = vpop.f32.mrf.mxu0  ;;  %v978_v10 = vadd.f32 %v977_v53, %v765_v47  ;;  %v1369_v61 = vadd.f32 %v5763_v0, %v983_v62 }
  0xfe   : > { %v1368_v15 = vadd.f32 %v1339_v54, %v978_v10 }
 0x102   : > { %v5749_v56 = vpop.f32.mrf.mxu1 }
 0x103   : > { %v993_v9 = vadd.f32 %v5749_v56, %v5732_v55 }
 0x104   : > { %v987_v35 = vpop.f32.mrf.mxu1 }
 0x105   : > { %v5766_v40 = vpop.f32.mrf.mxu0  ;;  %v988_v28 = vadd.f32 %v987_v35, %v775_v2 }
 0x106   : > { %v1371_v30 = vadd.f32 %v5766_v40, %v993_v9 }
 0x107   : > { %v1349_v59 = vpop.f32.mrf.mxu0 }
 0x108   : > { %v1370_v43 = vadd.f32 %v1349_v59, %v988_v28 }
 0x10d   : > { %v5752_v60 = vpop.f32.mrf.mxu1 }
 0x10e   : > { %v1003_v48 = vadd.f32 %v5752_v60, %v5735_v50 }
 0x10f   : > { %v997_v1 = vpop.f32.mrf.mxu1 }
 0x110   : > { %v6858_v22 = vpop.f32.mrf.mxu0  ;;  %v998_v27 = vadd.f32 %v997_v1, %v785_v49 }
 0x111   : > { %v1373_v62 = vadd.f32 %v6858_v22, %v1003_v48 }
 0x112   : > { %v6860_v58 = vpop.f32.mrf.mxu0 }
 0x113   : > { %v1372_v9 = vadd.f32 %v6860_v58, %v998_v27 }
 0x119   : > { %v5780_v14 = vpop.f32.mrf.mxu1 }
 0x11a   : > { %v1737_v23 = vadd.f32 %v5780_v14, %v1369_v61  ;;  %v5797_v20 = vpop.f32.mrf.mxu0 }
 0x11b   : > { %v1707_v5 = vpop.f32.mrf.mxu1 }
 0x11c   : > { %v2104_v42 = vadd.f32 %v5797_v20, %v1737_v23  ;;  %v1736_v25 = vadd.f32 %v1707_v5, %v1368_v15  ;;  %v2074_v36 = vpop.f32.mrf.mxu0 }
 0x11e   : > { %v2117_v13 = vadd.f32 %v6865_v17, %v2104_v42  ;;  %v2103_v26 = vadd.f32 %v2074_v36, %v1736_v25 }
 0x120   : > { %v2123_v38 = vmax.f32 %v2117_v13, 0.0  ;;  %v2116_v3 = vadd.f32 %v6865_v17, %v2103_v26  ;;  %v5504_v26 = vld [vmem:[%s8148_s3 + $0x1f0] sm:$0xf] }
 0x122   : > { %v2158_v21 = vrot.slane %v2123_v38, %v6198_v12  ;;  %v2122_v31 = vmax.f32 %v2116_v3, 0.0  ;;  %v5783_v33 = vpop.f32.mrf.mxu1  ;;  %v2151_v63 = vcombine.high %v2123_v38, %v2123_v38 }
 0x123   : > { %v1739_v37 = vadd.f32 %v5783_v33, %v1371_v30 }
 0x124   : > { %v2166_v19 = vcombine.high %v2158_v21, %v2158_v21  ;;  %v3757_v24 = vrot.slane %v2158_v21, 7  ;;  %v2134_v52 = vcombine.high %v2122_v31, %v2122_v31  ;;  %v2141_v34 = vrot.slane %v2122_v31, %v6198_v12  ;;  %v1717_v32 = vpop.f32.mrf.mxu1 }
 0x125   : > { %v5800_v41 = vpop.f32.mrf.mxu0  ;;  %v6875_v57 = vrot.slane %v2151_v63, %v6198_v12  ;;  %v1738_v11 = vadd.f32 %v1717_v32, %v1370_v43  ;;  %v5502_v63 = vld [vmem:[%s8148_s3 + $0x1e0] sm:$0xff]  ;;  %v5500_v43 = vld [vmem:[%s8148_s3 + $0x1d0] sm:$0xff] }
 0x126   : > { %v4270_v39 = vcombine.low %v2158_v21, %v2166_v19  ;;  %v2148_v44 = vrot.slane %v2134_v52, %v6198_v12  ;;  %v2149_v8 = vcombine.high %v2141_v34, %v2141_v34  ;;  %v3759_v45 = vrot.slane %v3757_v24, 2  ;;  %v5501_v52 = vld [vmem:[%s8148_s3 + $0x1d8] sm:$0xff] }
 0x127   : > { %v2106_v29 = vadd.f32 %v5800_v41, %v1739_v37  ;;  %v5452_v16 = vrot.slane %v2141_v34, 9  ;;  %v2084_v47 = vpop.f32.mrf.mxu0  ;;  %v3760_v2 = vrot.slane %v2166_v19, 7  ;;  %v6905_v22 = vcombine.high %v6875_v57, %v6875_v57 }
 0x128   : > { %v2150_v18 = vcombine.high %v2148_v44, %v2148_v44  ;;  %v3570_v46 = vcombine.low %v2141_v34, %v2149_v8  ;;  %v3750_v4 = vrot.slane %v2149_v8, 7  ;;  %v6883_v50 = vrot.slane %v4270_v39, %v6198_v12 }
 0x129   : > { %v4269_v49 = vcombine.low %v2149_v8, %v2148_v44  ;;  %v2105_v51 = vadd.f32 %v2084_v47, %v1738_v11  ;;  %v3753_v56 = vrot.slane %v2148_v44, 7  ;;  %v2119_v59 = vadd.f32 %v6865_v17, %v2106_v29  ;;  %v5499_v8 = vld [vmem:[%s8148_s3 + $0x1c8] sm:$0xff] }
 0x12a   : > { %v3571_v0 = vcombine.low %v2150_v18, %v2158_v21  ;;  %v3751_v53 = vsel %vm6878_vm9, %v5452_v16, %v3750_v4  ;;  %v3752_v54 = vrot.slane %v3750_v4, 2  ;;  %v5453_v40 = vrot.slane %v2150_v18, 9  ;;  %v5503_v21 = vld [vmem:[%s8148_s3 + $0x1e8] sm:$0xff] }
 0x12b   : > { %v6888_v35 = vrot.slane %v4269_v49, %v6198_v12  ;;  %v2118_v60 = vadd.f32 %v6865_v17, %v2105_v51  ;;  %v3578_v1 = vrot.slane %v3570_v46, %v6198_v12  ;;  %v3761_v15 = vsel %vm6878_vm9, %v3759_v45, %v3760_v2  ;;  %v5498_v46 = vld [vmem:[%s8148_s3 + $0x1c0] sm:$0xff]  ;;  %v5497_v49 = vld [vmem:[%s8148_s3 + $0x1b8] sm:$0xff] }
 0x12c   : > { %v3585_v10 = vrot.slane %v3571_v0, %v6198_v12  ;;  %v3754_v61 = vsel %vm6878_vm9, %v3752_v54, %v3753_v56  ;;  %v5786_v14 = vpop.f32.mrf.mxu1  ;;  %v3758_v23 = vsel %vm6878_vm9, %v5453_v40, %v3757_v24  ;;  %v2125_v38 = vmax.f32 %v2119_v59, 0.0 }
 0x12d   : > { %v3821_v20 = vcombine.low %v3751_v53, %v3754_v61  ;;  %v3822_v25 = vcombine.low %v3758_v23, %v3761_v15  ;;  %v2124_v36 = vmax.f32 %v2118_v60, 0.0  ;;  %v1741_v3 = vadd.f32 %v5786_v14, %v1373_v62  ;;  %v5496_v53 = vld [vmem:[%s8148_s3 + $0x1b0] sm:$0xff]  ;;  %v5494_v23 = vld [vmem:[%s8148_s3 + $0x1a0] sm:$0xff] }
 0x12e   : > { %v3586_v42 = vcombine.low %v3578_v1, %v3585_v10  ;;  %v1727_v13 = vpop.f32.mrf.mxu1  ;;  %v3764_v34 = vrot.slane %v6905_v22, 7  ;;  %v2185_v48 = vcombine.high %v2125_v38, %v2125_v38  ;;  %v6953_v29 = vrot.slane %v2125_v38, %v6198_v12  ;;  %v5495_v1 = vld [vmem:[%s8148_s3 + $0x1a8] sm:$0xff] }
 0x12f   : > { %v2168_v31 = vcombine.high %v2124_v36, %v2124_v36  ;;  %v6915_v30 = vrot.slane %v2124_v36, %v6198_v12  ;;  %v1740_v19 = vadd.f32 %v1727_v13, %v1372_v9  ;;  %v6950_v45 = vrot.slane %v3821_v20, %v6198_v12 }
 0x130   : > { %v5803_v28 = vpop.f32.mrf.mxu0  ;;  %v6917_v33 = vpop.f32.mrf.mxu1  ;;  %5448 = vmatmul.mubr.msk.f32.vlgmr.msra.gmra.mxu1 %vm3466_vm7, %v3586_v42  ;;  %v3587_v18 = vcombine.low %v6875_v57, %v6905_v22  ;;  %v6976_v54 = vrot.slane %v3822_v25, %v6198_v12  ;;  %v3766_v56 = vrot.slane %v3764_v34, 2  ;;  %v6979_v40 = vrot.slane %v2185_v48, %v6198_v12 }
 0x131   : > { %v2108_v58 = vadd.f32 %v5803_v28, %v1741_v3  ;;  %3722 = vmatprep.mubr.f32.mxu1 %v6051_v7  ;;  %5507 = vmatpush1.msk.msra.mxu1 %vm695_vm0, %v5504_v26  ;;  %v6930_v37 = vrot.slane %v2168_v31, %v6198_v12  ;;  %v6934_v41 = vcombine.high %v6915_v30, %v6915_v30  ;;  %v3767_v51 = vrot.slane %v6915_v30, 7  ;;  %v5493_v26 = vld [vmem:[%s8148_s3 + $0x198] sm:$0xff]  ;;  %v5492_v3 = vld [vmem:[%s8148_s3 + $0x190] sm:$0xff] }
 0x132   : > { %v2094_v24 = vpop.f32.mrf.mxu0  ;;  %v6936_v32 = vpop.f32.mrf.mxu1  ;;  %4173 = vmatprep.subr.mxu1 %v5503_v21  ;;  %v4286_v27 = vcombine.low %v6905_v22, %v6915_v30  ;;  %v6990_v10 = vcombine.high %v6953_v29, %v6953_v29  ;;  %v3595_v15 = vrot.slane %v3587_v18, %v6198_v12  ;;  %v5454_v42 = vrot.slane %v6875_v57, 9 }
 0x133   : > { %v2121_v39 = vadd.f32 %v6865_v17, %v2108_v58  ;;  %4174 = vmatpush1.msra.mxu1 %v5502_v63  ;;  %v2107_v4 = vadd.f32 %v2094_v24, %v1740_v19  ;;  %v3588_v2 = vcombine.low %v6934_v41, %v6930_v37  ;;  %v7014_v57 = vsel %vm6878_vm9, %v3766_v56, %v3767_v51  ;;  %v5491_v63 = vld [vmem:[%s8148_s3 + $0x188] sm:$0xff] }
 0x134   : > { %v6944_v44 = vpop.f32.mrf.mxu0  ;;  %v6955_v11 = vpop.f32.mrf.mxu1  ;;  %4175 = vmatprep.subr.mxu1 %v5501_v52  ;;  %v7018_v28 = vcombine.high %v6979_v40, %v6979_v40  ;;  %v7027_v58 = vsel %vm6878_vm9, %v5454_v42, %v3764_v34  ;;  %v3604_v19 = vcombine.low %v6953_v29, %v6990_v10  ;;  %v5455_v42 = vrot.slane %v6934_v41, 9 }
 0x135   : > { %v2127_v16 = vmax.f32 %v2121_v39, 0.0  ;;  %4176 = vmatpush1.msra.mxu1 %v5500_v43  ;;  %v2120_v59 = vadd.f32 %v6865_v17, %v2107_v4  ;;  %v3602_v62 = vrot.slane %v3588_v2, %v6198_v12  ;;  %v5490_v43 = vld [vmem:[%s8148_s3 + $0x180] sm:$0xff] }
 0x136   : > { %v6962_v47 = vpop.f32.mrf.mxu0  ;;  %v6970_v0 = vpop.f32.mrf.mxu1  ;;  %4177 = vmatprep.subr.mxu1 %v5499_v8 }
 0x137   : > { %4178 = vmatpush1.msra.mxu1 %v5498_v46  ;;  %v2219_v61 = vcombine.high %v2127_v16, %v2127_v16  ;;  %v7002_v25 = vrot.slane %v2127_v16, %v6198_v12  ;;  %v2126_v36 = vmax.f32 %v2120_v59, 0.0  ;;  %v3603_v38 = vcombine.low %v3595_v15, %v3602_v62 }
 0x138   : > { %v6982_v60 = vpop.f32.mrf.mxu0  ;;  %v6992_v14 = vpop.f32.mrf.mxu1  ;;  %4179 = vmatprep.subr.mxu1 %v5497_v49  ;;  %v3612_v49 = vrot.slane %v3604_v19, %v6198_v12 }
 0x139   : > { %4180 = vmatpush1.msra.mxu1 %v5496_v53  ;;  %v2202_v21 = vcombine.high %v2126_v36, %v2126_v36  ;;  %v7032_v24 = vrot.slane %v2219_v61, %v6198_v12  ;;  %v7035_v52 = vrot.slane %v2126_v36, %v6198_v12  ;;  %v7043_v34 = vcombine.high %v7002_v25, %v7002_v25 }
 0x13a   : > { %v2407_v13 = vpop.f32.mrf.mxu0  ;;  %v7007_v9 = vpop.f32.mrf.mxu1  ;;  %4181 = vmatprep.subr.mxu1 %v5495_v1  ;;  %5449 = vmatmul.mubr.msk.f32.gmra.mxu1 %vm3466_vm7, %v3603_v38  ;;  %v2403_v1 = vadd.f32 %v6944_v44, %v6917_v33  ;;  %v3771_v36 = vrot.slane %v6930_v37, 7  ;;  %v2398_v38 = vadd.f32 %v6962_v47, %v6936_v32  ;;  %v2413_v32 = vadd.f32 %v6982_v60, %v6955_v11 }
 0x13b   : > { %4182 = vmatpush1.msra.mxu1 %v5494_v23  ;;  %v7046_v48 = vrot.slane %v2202_v21, %v6198_v12  ;;  %3728 = vmatprep.mubr.f32.mxu1 %v6051_v7  ;;  %v3605_v4 = vcombine.low %v7018_v28, %v7035_v52  ;;  %v3622_v56 = vcombine.low %v7043_v34, %v7032_v24 }
 0x13c   : > { %v7020_v31 = vpop.f32.mrf.mxu0  ;;  %4183 = vmatprep.subr.mxu1 %v5493_v26  ;;  %v2184_v23 = vcombine.high %v6930_v37, %v6930_v37  ;;  %v7080_v44 = vcombine.high %v7035_v52, %v7035_v52  ;;  %v3773_v11 = vrot.slane %v3771_v36, 2 }
 0x13d   : > { %v5848_v39 = vpop.f32.mrf.mxu1  ;;  %4184 = vmatpush1.msra.mxu1 %v5492_v3  ;;  %v7055_v46 = vcombine.high %v7046_v48, %v7046_v48  ;;  %v3619_v51 = vrot.slane %v3605_v4, %v6198_v12  ;;  %v3636_v21 = vrot.slane %v3622_v56, %v6198_v12  ;;  %v7096_v56 = vcombine.high %v7032_v24, %v7032_v24 }
 0x13e   : > { %v7051_v18 = vpop.f32.mrf.mxu0  ;;  %4185 = vmatprep.subr.mxu1 %v5491_v63  ;;  %v2522_v3 = vadd.f32 %v5848_v39, %v2403_v1  ;;  %v2408_v39 = vadd.f32 %v2407_v13, %v6970_v0  ;;  %v3774_v60 = vrot.slane %v2184_v23, 7 }
 0x13f   : > { %v2492_v16 = vpop.f32.mrf.mxu1  ;;  %4186 = vmatpush1.msra.mxu1 %v5490_v43  ;;  %v3621_v53 = vcombine.low %v7046_v48, %v7055_v46  ;;  %v3620_v61 = vcombine.low %v3612_v49, %v3619_v51  ;;  %v7089_v49 = vsel %vm6878_vm9, %v5455_v42, %v3771_v36  ;;  %v4287_v51 = vcombine.low %v6930_v37, %v2184_v23 }
 0x140   : > { %v5865_v2 = vpop.f32.mrf.mxu0  ;;  %4629 = vmatprep.subr.mxu1 %v6051_v7  ;;  %v2521_v47 = vadd.f32 %v2492_v16, %v2398_v38  ;;  %v7104_v37 = vrot.slane %v4286_v27, %v6198_v12  ;;  %v4320_v42 = vcombine.low %v7055_v46, %v7002_v25 }
 0x141   : > { %v3629_v15 = vrot.slane %v3621_v53, %v6198_v12  ;;  %5450 = vmatmul.mubr.msk.f32.gmra.mxu1 %vm3466_vm7, %v3620_v61  ;;  %v4303_v53 = vcombine.low %v6990_v10, %v6979_v40  ;;  %v2881_v1 = vadd.f32 %v5865_v2, %v2522_v3  ;;  %v7107_v61 = vrot.slane %v4287_v51, %v6198_v12 }
 0x142   : > { %v5851_v59 = vpop.f32.mrf.mxu1  ;;  %v2851_v62 = vpop.f32.mrf.mxu0  ;;  %3734 = vmatprep.mubr.f32.mxu1 %v6051_v7  ;;  %v4304_v2 = vcombine.low %v7035_v52, %v7080_v44 }
 0x143   : > { %v3637_v43 = vcombine.low %v3629_v15, %v3636_v21  ;;  %v2524_v0 = vadd.f32 %v5851_v59, %v2413_v32  ;;  %v2423_v15 = vadd.f32 %v7020_v31, %v6992_v14  ;;  %v2880_v59 = vadd.f32 %v2851_v62, %v2521_v47 }
 0x144   : > { %v2502_v26 = vpop.f32.mrf.mxu1  ;;  %v5868_v63 = vpop.f32.mrf.mxu0  ;;  %v7118_v30 = vrot.slane %v4303_v53, %v6198_v12  ;;  %v7121_v27 = vrot.slane %v4304_v2, %v6198_v12  ;;  %v4321_v14 = vcombine.low %v7032_v24, %v7096_v56  ;;  %v7127_v31 = vrot.slane %v4320_v42, %v6198_v12 }
 0x145   : > { %5451 = vmatmul.mubr.msk.f32.gmra.mxu1 %vm3466_vm7, %v3637_v43  ;;  %v2523_v36 = vadd.f32 %v2502_v26, %v2408_v39  ;;  %v8153_v62 = vrot.slane %v7035_v52, 7  ;;  %v2418_v26 = vadd.f32 %v7051_v18, %v7007_v9  ;;  %v2883_v32 = vadd.f32 %v5868_v63, %v2524_v0 }
 0x146   : > { %v2861_v13 = vpop.f32.mrf.mxu0  ;;  %4219 = vmatprep.mubr.f32.mxu1 %v6051_v7 }
 0x147   : > { %v5854_v19 = vpop.f32.mrf.mxu1 }
 0x148   : > { %v5871_v47 = vpop.f32.mrf.mxu0  ;;  %v2526_v2 = vadd.f32 %v5854_v19, %v2423_v15 }
 0x149   : > { %v2512_v4 = vpop.f32.mrf.mxu1 }
 0x14b   : > { %v5882_v16 = vpop.f32.mrf.mxu1 }
 0x14c   : > { %v3240_v23 = vadd.f32 %v5882_v16, %v2881_v1  ;;  %v7137_v1 = vsel %vm6878_vm9, %v3773_v11, %v3774_v60  ;;  %v7140_v16 = vrot.slane %v4321_v14, %v6198_v12  ;;  %v2871_v60 = vpop.f32.mrf.mxu0  ;;  %v2885_v14 = vadd.f32 %v5871_v47, %v2526_v2 }
 0x14d   : > { %v3210_v38 = vpop.f32.mrf.mxu1 }
 0x14e   : > { %v3246_v3 = vadd.f32 %v6865_v17, %v3240_v23  ;;  %v3239_v21 = vadd.f32 %v3210_v38, %v2880_v59  ;;  %v2882_v59 = vadd.f32 %v2861_v13, %v2523_v36  ;;  %v2525_v23 = vadd.f32 %v2512_v4, %v2418_v26 }
 0x150   : > { %v3252_v39 = vmax.f32 %v3246_v3, 0.0  ;;  %v3245_v51 = vadd.f32 %v6865_v17, %v3239_v21  ;;  %v5885_v53 = vpop.f32.mrf.mxu1  ;;  %v7147_v3 = vrot.slane %v8153_v62, 2 }
 0x151   : > { %v3242_v9 = vadd.f32 %v5885_v53, %v2883_v32 }
 0x152   : > { %v3280_v18 = vcombine.high %v3252_v39, %v3252_v39  ;;  %v3287_v63 = vrot.slane %v3252_v39, %v6198_v12  ;;  %v3251_v0 = vmax.f32 %v3245_v51, 0.0  ;;  %v3220_v42 = vpop.f32.mrf.mxu1  ;;  %v2884_v51 = vadd.f32 %v2871_v60, %v2525_v23 }
 0x153   : > { %v3248_v19 = vadd.f32 %v6865_v17, %v3242_v9  ;;  %v3241_v13 = vadd.f32 %v3220_v42, %v2882_v59 }
 0x154   : > { %v7152_v4 = vrot.slane %v3280_v18, %v6198_v12  ;;  %v3295_v15 = vcombine.high %v3287_v63, %v3287_v63  ;;  %v4009_v36 = vrot.slane %v3287_v63, 7  ;;  %v3263_v21 = vcombine.high %v3251_v0, %v3251_v0 }
 0x155   : > { %v3270_v26 = vrot.slane %v3251_v0, %v6198_v12  ;;  %v3254_v32 = vmax.f32 %v3248_v19, 0.0  ;;  %v3247_v39 = vadd.f32 %v6865_v17, %v3241_v13 }
 0x156   : > { %v7158_v53 = vcombine.high %v7152_v4, %v7152_v4  ;;  %v4011_v38 = vrot.slane %v4009_v36, 2  ;;  %v4012_v9 = vrot.slane %v3295_v15, 7  ;;  %v3277_v18 = vrot.slane %v3263_v21, %v6198_v12  ;;  %v5888_v15 = vpop.f32.mrf.mxu1 }
 0x157   : > { %v3278_v42 = vcombine.high %v3270_v26, %v3270_v26  ;;  %v3314_v43 = vcombine.high %v3254_v32, %v3254_v32  ;;  %v5482_v0 = vrot.slane %v3270_v26, 9  ;;  %v7166_v23 = vrot.slane %v3254_v32, %v6198_v12 }
 0x158   : > { %v4013_v47 = vsel %vm6878_vm9, %v4011_v38, %v4012_v9  ;;  %v8154_v2 = vrot.slane %v7158_v53, 7  ;;  %v3279_v60 = vcombine.high %v3277_v18, %v3277_v18  ;;  %v3253_v22 = vmax.f32 %v3247_v39, 0.0  ;;  %v3230_v11 = vpop.f32.mrf.mxu1 }
 0x159   : > { %v3398_v19 = vcombine.low %v3270_v26, %v3278_v42  ;;  %v4002_v13 = vrot.slane %v3278_v42, 7  ;;  %v4005_v21 = vrot.slane %v3277_v18, 7  ;;  %v7171_v8 = vrot.slane %v3314_v43, %v6198_v12 }
 0x15a   : > { %v4018_v5 = vrot.slane %v8154_v2, 2  ;;  %v7175_v38 = vcombine.high %v7166_v23, %v7166_v23  ;;  %v3399_v9 = vcombine.low %v3279_v60, %v3287_v63  ;;  %v5483_v42 = vrot.slane %v3279_v60, 9 }
 0x15b   : > { %v3406_v32 = vrot.slane %v3398_v19, %v6198_v12  ;;  %v4004_v20 = vrot.slane %v4002_v13, 2  ;;  %v4003_v39 = vsel %vm6878_vm9, %v5482_v0, %v4002_v13  ;;  %v7183_v18 = vcombine.high %v7171_v8, %v7171_v8 }
 0x15c   : > { %v8155_v43 = vrot.slane %v7175_v38, 7  ;;  %v3413_v62 = vrot.slane %v3399_v9, %v6198_v12  ;;  %v3432_v19 = vcombine.low %v7166_v23, %v7175_v38  ;;  %v3297_v33 = vcombine.high %v3253_v22, %v3253_v22 }
 0x15d   : > { %v4006_v63 = vsel %vm6878_vm9, %v4004_v20, %v4005_v21  ;;  %v4010_v0 = vsel %vm6878_vm9, %v5483_v42, %v4009_v36  ;;  %v3304_v59 = vrot.slane %v3253_v22, %v6198_v12  ;;  %v5474_v21 = vld [vmem:[%s8148_s3 + $0x170] sm:$0xf]  ;;  %v3244_v36 = vadd.f32 %v5888_v15, %v2885_v14  ;;  %v5473_v42 = vld [vmem:[%s8148_s3 + $0x168] sm:$0xff]  ;;  %v5471_v15 = vld [vmem:[%s8148_s3 + $0x158] sm:$0xff] }
 0x15e   : > { %v4073_v60 = vcombine.low %v4003_v39, %v4006_v63  ;;  %v7195_v13 = vrot.slane %v8155_v43, 2  ;;  %v3414_v26 = vcombine.low %v3406_v32, %v3413_v62  ;;  %v4074_v9 = vcombine.low %v4010_v0, %v4013_v47  ;;  %v5472_v63 = vld [vmem:[%s8148_s3 + $0x160] sm:$0xff] }
 0x15f   : > { %v3311_v20 = vrot.slane %v3297_v33, %v6198_v12  ;;  %v3243_v39 = vadd.f32 %v3230_v11, %v2884_v51  ;;  %v3415_v62 = vcombine.low %v7152_v4, %v7158_v53  ;;  %v3312_v22 = vcombine.high %v3304_v59, %v3304_v59 }
 0x160   : > { %v4081_v2 = vrot.slane %v4073_v60, %v6198_v12  ;;  %v4088_v47 = vrot.slane %v4074_v9, %v6198_v12  ;;  %v4019_v33 = vrot.slane %v3304_v59, 7  ;;  %5442 = vmatmul.mubr.msk.f32.vlgmr.msra.gmra.mxu0 %vm3466_vm7, %v3414_v26  ;;  %v3250_v11 = vadd.f32 %v6865_v17, %v3244_v36 }
 0x161   : > { %v3313_v32 = vcombine.high %v3311_v20, %v3311_v20  ;;  %v4023_v14 = vrot.slane %v3311_v20, 7  ;;  %v3249_v51 = vadd.f32 %v6865_v17, %v3243_v39  ;;  %5477 = vmatpush1.msk.msra.mxu0 %vm695_vm0, %v5474_v21  ;;  %3551 = vmatprep.mubr.f32.mxu0 %v6051_v7  ;;  %v3423_v59 = vrot.slane %v3415_v62, %v6198_v12  ;;  %v5470_v39 = vld [vmem:[%s8148_s3 + $0x150] sm:$0xff] }
 0x162   : > { %v3416_v26 = vcombine.low %v3312_v22, %v3311_v20  ;;  %v4020_v0 = vsel %vm6878_vm9, %v4018_v5, %v4019_v33  ;;  %v5485_v60 = vrot.slane %v3312_v22, 9  ;;  %3921 = vmatprep.subr.mxu0 %v5473_v42  ;;  %v3256_v41 = vmax.f32 %v3250_v11, 0.0  ;;  %v5469_v20 = vld [vmem:[%s8148_s3 + $0x148] sm:$0xff] }
 0x163   : > { %v4026_v9 = vrot.slane %v3313_v32, 7  ;;  %v4025_v36 = vrot.slane %v4023_v14, 2  ;;  %v3255_v17 = vmax.f32 %v3249_v51, 0.0  ;;  %3922 = vmatpush1.msra.mxu0 %v5472_v63  ;;  %v4089_v21 = vcombine.low %v4081_v2, %v4088_v47 }
 0x164   : > { %3923 = vmatprep.subr.mxu0 %v5471_v15  ;;  %v3430_v43 = vrot.slane %v3416_v26, %v6198_v12  ;;  %v8160_v5 = vrot.slane %v7158_v53, 7  ;;  %v8161_v42 = vrot.slane %v7152_v4, 9  ;;  %v4024_v2 = vsel %vm6878_vm9, %v5485_v60, %v4023_v14  ;;  %v5468_v14 = vld [vmem:[%s8148_s3 + $0x140] sm:$0xff] }
 0x165   : > { %v7240_v47 = vrot.slane %v3432_v19, %v6198_v12  ;;  %v3348_v22 = vcombine.high %v3256_v41, %v3256_v41  ;;  %v7243_v32 = vrot.slane %v3256_v41, %v6198_v12  ;;  %v3331_v33 = vcombine.high %v3255_v17, %v3255_v17  ;;  %5508 = vmatmul.mubr.msk.f32.vlgmr.msra.gmra.mxu1 %vm3466_vm7, %v4089_v21 }
 0x166   : > { %v4017_v62 = vsel %vm6878_vm9, %v8161_v42, %v8160_v5  ;;  %v3338_v63 = vrot.slane %v3255_v17, %v6198_v12  ;;  %v5487_v4 = vrot.slane %v7183_v18, 9  ;;  %v3431_v53 = vcombine.low %v3423_v59, %v3430_v43  ;;  %3924 = vmatpush1.msra.mxu0 %v5470_v39  ;;  %4225 = vmatprep.mubr.f32.mxu1 %v6051_v7  ;;  %v5467_v59 = vld [vmem:[%s8148_s3 + $0x138] sm:$0xff] }
 0x167   : > { %v4027_v19 = vsel %vm6878_vm9, %v4025_v36, %v4026_v9  ;;  %v4090_v41 = vcombine.low %v4017_v62, %v4020_v0  ;;  %v7255_v11 = vrot.slane %v3348_v22, %v6198_v12  ;;  %v7259_v51 = vcombine.high %v7243_v32, %v7243_v32  ;;  %3925 = vmatprep.subr.mxu0 %v5469_v20  ;;  %v5466_v36 = vld [vmem:[%s8148_s3 + $0x130] sm:$0xff]  ;;  %v5464_v22 = vld [vmem:[%s8148_s3 + $0x120] sm:$0xff] }
 0x168   : > { %v4047_v43 = vrot.slane %v7243_v32, 7  ;;  %v3345_v15 = vrot.slane %v3331_v33, %v6198_v12  ;;  %v3346_v26 = vcombine.high %v3338_v63, %v3338_v63  ;;  %v3433_v60 = vcombine.low %v7183_v18, %v3338_v63  ;;  %5443 = vmatmul.mubr.msk.f32.gmra.mxu0 %vm3466_vm7, %v3431_v53  ;;  %v5465_v18 = vld [vmem:[%s8148_s3 + $0x128] sm:$0xff] }
 0x169   : > { %v4037_v0 = vrot.slane %v3338_v63, 7  ;;  %v4091_v9 = vcombine.low %v4024_v2, %v4027_v19  ;;  %v3364_v17 = vcombine.high %v7255_v11, %v7255_v11  ;;  %v3450_v21 = vcombine.low %v7259_v51, %v7255_v11  ;;  %3926 = vmatpush1.msra.mxu0 %v5468_v14  ;;  %3557 = vmatprep.mubr.f32.mxu0 %v6051_v7  ;;  %v5463_v14 = vld [vmem:[%s8148_s3 + $0x118] sm:$0xff] }
 0x16a   : > { %v5489_v39 = vrot.slane %v7259_v51, 9  ;;  %v4051_v20 = vrot.slane %v7255_v11, 7  ;;  %v3347_v5 = vcombine.high %v3345_v15, %v3345_v15  ;;  %v4040_v62 = vrot.slane %v3346_v26, 7  ;;  %3927 = vmatprep.subr.mxu0 %v5467_v59 }
 0x16b   : > { %v4039_v42 = vrot.slane %v4037_v0, 2  ;;  %v5488_v2 = vrot.slane %v3345_v15, 9  ;;  %v4054_v33 = vrot.slane %v3364_v17, 7  ;;  %v4098_v63 = vrot.slane %v4090_v41, %v6198_v12  ;;  %3928 = vmatpush1.msra.mxu0 %v5466_v36  ;;  %v5462_v36 = vld [vmem:[%s8148_s3 + $0x110] sm:$0xff] }
 0x16c   : > { %v4053_v32 = vrot.slane %v4051_v20, 2  ;;  %v4105_v53 = vrot.slane %v4091_v9, %v6198_v12  ;;  %v4044_v19 = vrot.slane %v3347_v5, 7  ;;  %v3447_v11 = vrot.slane %v3433_v60, %v6198_v12  ;;  %3929 = vmatprep.subr.mxu0 %v5465_v18 }
 0x16d   : > { %v8162_v51 = vrot.slane %v7175_v38, 7  ;;  %v8163_v59 = vrot.slane %v7166_v23, 9  ;;  %v8164_v41 = vrot.slane %v7171_v8, 7  ;;  %3930 = vmatpush1.msra.mxu0 %v5464_v22  ;;  %v4038_v38 = vsel %vm6878_vm9, %v5487_v4, %v4037_v0  ;;  %v5527_v22 = vld [vmem:[%s8148_s3 + $0x278] sm:$0xf] }
 0x16e   : > { %v4106_v17 = vcombine.low %v4098_v63, %v4105_v53  ;;  %v4041_v23 = vsel %vm6878_vm9, %v4039_v42, %v4040_v62  ;;  %v4046_v18 = vrot.slane %v4044_v19, 2  ;;  %v3448_v8 = vcombine.low %v7240_v47, %v3447_v11  ;;  %3931 = vmatprep.subr.mxu0 %v5463_v14  ;;  %v5460_v47 = vld [vmem:[%s8148_s3 + $0x100] sm:$0xff] }
 0x16f   : > { %v4031_v26 = vsel %vm6878_vm9, %v8163_v59, %v8162_v51  ;;  %v4034_v9 = vsel %vm6878_vm9, %v7195_v13, %v8164_v41  ;;  %v4108_v51 = vcombine.low %v4038_v38, %v4041_v23  ;;  %v3449_v59 = vcombine.low %v3345_v15, %v3347_v5  ;;  %v5461_v13 = vld [vmem:[%s8148_s3 + $0x108] sm:$0xff]  ;;  %3932 = vmatpush1.msra.mxu0 %v5462_v36  ;;  %v5526_v38 = vld [vmem:[%s8148_s3 + $0x270] sm:$0xf] }
 0x170   : > { %v4107_v60 = vcombine.low %v4031_v26, %v4034_v9  ;;  %v3792_v63 = vrot.slane %v7055_v46, 7  ;;  %5509 = vmatmul.mubr.msk.f32.gmra.mxu1 %vm3466_vm7, %v4106_v17  ;;  %v3464_v0 = vrot.slane %v3450_v21, %v6198_v12  ;;  %v4045_v15 = vsel %vm6878_vm9, %v5488_v2, %v4044_v19  ;;  %5444 = vmatmul.mubr.msk.f32.gmra.mxu0 %vm3466_vm7, %v3448_v8 }
 0x171   : > { %v8165_v5 = vrot.slane %v6990_v10, 7  ;;  %4231 = vmatprep.mubr.f32.mxu1 %v6051_v7  ;;  %v4122_v46 = vrot.slane %v4108_v51, %v6198_v12  ;;  %v3457_v62 = vrot.slane %v3449_v59, %v6198_v12  ;;  %v4048_v21 = vsel %vm6878_vm9, %v4046_v18, %v4047_v43  ;;  %3563 = vmatprep.mubr.f32.mxu0 %v6051_v7 }
 0x172   : > { %v4115_v4 = vrot.slane %v4107_v60, %v6198_v12  ;;  %v3799_v2 = vrot.slane %v7032_v24, 7  ;;  %3933 = vmatprep.subr.mxu0 %v5461_v13  ;;  %v4052_v53 = vsel %vm6878_vm9, %v5489_v39, %v4051_v20  ;;  %v4055_v14 = vsel %vm6878_vm9, %v4053_v32, %v4054_v33 }
 0x173   : > { %v3780_v42 = vrot.slane %v8165_v5, 2  ;;  %v4124_v19 = vcombine.low %v4045_v15, %v4048_v21  ;;  %v3465_v26 = vcombine.low %v3457_v62, %v3464_v0  ;;  %3934 = vmatpush1.msra.mxu0 %v5460_v47  ;;  %v4125_v43 = vcombine.low %v4052_v53, %v4055_v14  ;;  %v5521_v15 = vld [vmem:[%s8148_s3 + $0x248] sm:$0xff]  ;;  %v5519_v62 = vld [vmem:[%s8148_s3 + $0x238] sm:$0xff]  ;;  %v5518_v21 = vld [vmem:[%s8148_s3 + $0x230] sm:$0xff] }
 0x174   : > { %v4123_v11 = vcombine.low %v4115_v4, %v4122_v46  ;;  %v3839_v41 = vcombine.low %v7089_v49, %v7137_v1  ;;  %v5457_v9 = vrot.slane %v7018_v28, 9  ;;  %5528 = vmatprep.subr.msk.mxu0 %vm695_vm0, %v5527_v22  ;;  %v8166_v36 = vrot.slane %v7080_v44, 7  ;;  %v5516_v53 = vld [vmem:[%s8148_s3 + $0x220] sm:$0xff] }
 0x175   : > { %v4132_v24 = vrot.slane %v4124_v19, %v6198_v12  ;;  %v3794_v20 = vrot.slane %v3792_v63, 2  ;;  %v5456_v32 = vrot.slane %v6953_v29, 9  ;;  %v3795_v33 = vrot.slane %v7002_v25, 7  ;;  %5445 = vmatmul.mubr.msk.f32.gmra.mxu0 %vm3466_vm7, %v3465_v26  ;;  %v5515_v19 = vld [vmem:[%s8148_s3 + $0x218] sm:$0xff]  ;;  %v5514_v26 = vld [vmem:[%s8148_s3 + $0x210] sm:$0xff] }
 0x176   : > { %v3789_v39 = vsel %vm6878_vm9, %v7147_v3, %v8166_v36  ;;  %5510 = vmatmul.mubr.msk.f32.gmra.mxu1 %vm3466_vm7, %v4123_v11  ;;  %v4139_v28 = vrot.slane %v4125_v43, %v6198_v12  ;;  %3967 = vmatprep.mubr.f32.mxu0 %v6051_v7  ;;  %v8167_v44 = vrot.slane %v6979_v40, 7  ;;  %v8168_v1 = vrot.slane %v7035_v52, 7  ;;  %v5525_v52 = vld [vmem:[%s8148_s3 + $0x268] sm:$0xff]  ;;  %v4504_v36 = vld [vmem:[%s8150_s5 + $0x60] sm:$0xff] }
 0x177   : > { %4237 = vmatprep.mubr.f32.mxu1 %v6051_v7  ;;  %v3801_v25 = vrot.slane %v3799_v2, 2  ;;  %v3802_v3 = vrot.slane %v7096_v56, 7  ;;  %v3853_v23 = vrot.slane %v3839_v41, %v6198_v12  ;;  %v5459_v40 = vrot.slane %v7043_v34, 9  ;;  %v5524_v34 = vld [vmem:[%s8148_s3 + $0x260] sm:$0xff]  ;;  %v5513_v43 = vld [vmem:[%s8148_s3 + $0x208] sm:$0xff] }
 0x178   : > { %v3782_v49 = vsel %vm6878_vm9, %v3780_v42, %v8167_v44  ;;  %v3786_v29 = vsel %vm6878_vm9, %v5457_v9, %v8168_v1  ;;  %v4140_v17 = vcombine.low %v4132_v24, %v4139_v28  ;;  %v5458_v18 = vrot.slane %v7046_v48, 9  ;;  %v5543_v28 = vld [vmem:[%s8150_s5 + $0x110] sm:$0xff]  ;;  %v4501_v44 = vld [vmem:[%s8150_s5 + $0x48] sm:$0xff]  ;;  %v4500_v1 = vld [vmem:[%s8150_s5 + $0x40] sm:$0xff] }
 0x179   : > { %v3856_v60 = vcombine.low %v3786_v29, %v3789_v39  ;;  %v8169_v8 = vmov %v8165_v5  ;;  %v3796_v51 = vsel %vm6878_vm9, %v3794_v20, %v3795_v33  ;;  %v8170_v59 = vcombine.low %v6950_v45, %v6976_v54  ;;  %v5523_v45 = vld [vmem:[%s8148_s3 + $0x258] sm:$0xff]  ;;  %v5520_v5 = vld [vmem:[%s8148_s3 + $0x240] sm:$0xff]  ;;  %v4502_v33 = vld [vmem:[%s8150_s5 + $0x50] sm:$0xff] }
 0x17a   : > { %v3779_v56 = vsel %vm6878_vm9, %v5456_v32, %v8169_v8  ;;  %5511 = vmatmul.mubr.msk.f32.gmra.mxu1 %vm3466_vm7, %v4140_v17  ;;  %v8171_v10 = vcombine.low %v7027_v58, %v7014_v57  ;;  %v3793_v54 = vsel %vm6878_vm9, %v5458_v18, %v3792_v63  ;;  %v3803_v4 = vsel %vm6878_vm9, %v3801_v25, %v3802_v3  ;;  %v5522_v57 = vld [vmem:[%s8148_s3 + $0x250] sm:$0xff]  ;;  %v5545_v39 = vld [vmem:[%s8150_s5 + $0x120] sm:$0xff]  ;;  %v4503_v20 = vld [vmem:[%s8150_s5 + $0x58] sm:$0xff] }
 0x17b   : > { %5478 = vmatmul.mubr.msk.f32.vlgmr.msra.gmra.mxu0 %vm3466_vm7, %v8170_v59  ;;  %v3855_v13 = vcombine.low %v3779_v56, %v3782_v49  ;;  %v3870_v58 = vrot.slane %v3856_v60, %v6198_v12  ;;  %v3872_v47 = vcombine.low %v3793_v54, %v3796_v51  ;;  %v3800_v63 = vsel %vm6878_vm9, %v5459_v40, %v3799_v2  ;;  %v5517_v2 = vld [vmem:[%s8148_s3 + $0x228] sm:$0xff]  ;;  %v5544_v32 = vld [vmem:[%s8150_s5 + $0x118] sm:$0xff]  ;;  %v5541_v29 = vld [vmem:[%s8150_s5 + $0x100] sm:$0xff] }
 0x17c   : > { %v3846_v48 = vrot.slane %v8171_v10, %v6198_v12  ;;  %5529 = vmatpush1.msk.msra.mxu0 %vm695_vm0, %v5526_v38  ;;  %3973 = vmatprep.mubr.f32.mxu0 %v6051_v7  ;;  %v3873_v46 = vcombine.low %v3800_v63, %v3803_v4  ;;  %v8172_v41 = vcombine.low %v6888_v35, %v6883_v50  ;;  %v5549_v35 = vld [vmem:[%s8150_s5 + $0x140] sm:$0xff]  ;;  %v5542_v49 = vld [vmem:[%s8150_s5 + $0x108] sm:$0xff]  ;;  %v4499_v25 = vld [vmem:[%s8150_s5 + $0x38] sm:$0xff] }
 0x17d   : > { %4369 = vmatprep.subr.mxu0 %v5525_v52  ;;  %v3863_v42 = vrot.slane %v3855_v13, %v6198_v12  ;;  %v3880_v22 = vrot.slane %v3872_v47, %v6198_v12  ;;  %v8173_v9 = vcombine.low %v7104_v37, %v7107_v61  ;;  %v8174_v24 = vcombine.low %v7118_v30, %v7121_v27  ;;  %v4507_v37 = vld [vmem:[%s8150_s5 + $0x78] sm:$0xff]  ;;  %v4506_v30 = vld [vmem:[%s8150_s5 + $0x70] sm:$0xff]  ;;  %v5538_v60 = vld [vmem:[%s8150_s5 + $0xe8] sm:$0xff] }
 0x17e   : > { %v3854_v0 = vcombine.low %v3846_v48, %v3853_v23  ;;  %4370 = vmatpush1.msra.mxu0 %v5524_v34  ;;  %v3887_v14 = vrot.slane %v3873_v46, %v6198_v12  ;;  %v5512_v12 = vld [vmem:[%s8148_s3 + $0x200] sm:$0xff]  ;;  %v8175_v50 = vcombine.low %v7127_v31, %v7140_v16  ;;  %4630 = vmatpush1.msra.mxu1 %v5549_v35  ;;  %v5548_v61 = vld [vmem:[%s8150_s5 + $0x138] sm:$0xff]  ;;  %v5547_v27 = vld [vmem:[%s8150_s5 + $0x130] sm:$0xff] }
 0x17f   : > { %4371 = vmatprep.subr.mxu0 %v5523_v45  ;;  %v3871_v55 = vcombine.low %v3863_v42, %v3870_v58  ;;  %4631 = vmatprep.subr.mxu1 %v6051_v7  ;;  %v4505_v31 = vld [vmem:[%s8150_s5 + $0x68] sm:$0xff]  ;;  %v5540_v3 = vld [vmem:[%s8150_s5 + $0xf8] sm:$0xff]  ;;  %v4498_v17 = vld [vmem:[%s8150_s5 + $0x30] sm:$0xff] }
 0x180   : > { %5479 = vmatmul.mubr.msk.f32.gmra.mxu0 %vm3466_vm7, %v3854_v0  ;;  %v3888_v11 = vcombine.low %v3880_v22, %v3887_v14  ;;  %4632 = vmatpush1.msra.mxu1 %v5548_v61  ;;  %v5546_v16 = vld [vmem:[%s8150_s5 + $0x128] sm:$0xff]  ;;  %v5539_v38 = vld [vmem:[%s8150_s5 + $0xf0] sm:$0xff]  ;;  %v4496_v40 = vld [vmem:[%s8150_s5 + $0x20] sm:$0xff] }
 0x181   : > { %4372 = vmatpush1.msra.mxu0 %v5522_v57  ;;  %3979 = vmatprep.mubr.f32.mxu0 %v6051_v7  ;;  %v4497_v23 = vld [vmem:[%s8150_s5 + $0x28] sm:$0xff]  ;;  %v5537_v18 = vld [vmem:[%s8150_s5 + $0xe0] sm:$0xff]  ;;  %v4495_v52 = vld [vmem:[%s8150_s5 + $0x18] sm:$0xff] }
 0x182   : > { %4373 = vmatprep.subr.mxu0 %v5521_v15  ;;  %4633 = vmatprep.subr.mxu1 %v6051_v7  ;;  %v5536_v8 = vld [vmem:[%s8150_s5 + $0xd8] sm:$0xff]  ;;  %v4494_v56 = vld [vmem:[%s8150_s5 + $0x10] sm:$0xff]  ;;  %v4493_v59 = vld [vmem:[%s8150_s5 + $0x8] sm:$0xff] }
 0x183   : > { %4374 = vmatpush1.msra.mxu0 %v5520_v5  ;;  %4634 = vmatpush1.msra.mxu1 %v5547_v27  ;;  %v5535_v51 = vld [vmem:[%s8150_s5 + $0xd0] sm:$0xff]  ;;  %v5534_v34 = vld [vmem:[%s8150_s5 + $0xc8] sm:$0xff]  ;;  %v4492_v10 = vld [vmem:[%s8150_s5] sm:$0xff] }
 0x184   : > { %4375 = vmatprep.subr.mxu0 %v5519_v62  ;;  %5480 = vmatmul.mubr.msk.f32.gmra.mxu0 %vm3466_vm7, %v3871_v55  ;;  %v5558_v48 = vld [vmem:[%s8150_s5 + $0x188] sm:$0xff]  ;;  %v4516_v13 = vld [vmem:[%s8150_s5 + $0xc0] sm:$0xff]  ;;  %v4515_v54 = vld [vmem:[%s8150_s5 + $0xb8] sm:$0xff] }
 0x185   : > { %4376 = vmatpush1.msra.mxu0 %v5518_v21  ;;  %3985 = vmatprep.mubr.f32.mxu0 %v6051_v7  ;;  %v5557_v45 = vld [vmem:[%s8150_s5 + $0x180] sm:$0xff]  ;;  %v5556_v4 = vld [vmem:[%s8150_s5 + $0x178] sm:$0xff]  ;;  %v4514_v0 = vld [vmem:[%s8150_s5 + $0xb0] sm:$0xff] }
 0x186   : > { %4377 = vmatprep.subr.mxu0 %v5517_v2  ;;  %4635 = vmatprep.subr.mxu1 %v6051_v7  ;;  %v5555_v57 = vld [vmem:[%s8150_s5 + $0x170] sm:$0xff]  ;;  %v4513_v58 = vld [vmem:[%s8150_s5 + $0xa8] sm:$0xff]  ;;  %v4512_v15 = vld [vmem:[%s8150_s5 + $0xa0] sm:$0xff] }
 0x187   : > { %4378 = vmatpush1.msra.mxu0 %v5516_v53  ;;  %4636 = vmatpush1.msra.mxu1 %v5546_v16  ;;  %v5554_v47 = vld [vmem:[%s8150_s5 + $0x168] sm:$0xff]  ;;  %v5553_v63 = vld [vmem:[%s8150_s5 + $0x160] sm:$0xff]  ;;  %v4511_v5 = vld [vmem:[%s8150_s5 + $0x98] sm:$0xff] }
 0x188   : > { %4379 = vmatprep.subr.mxu0 %v5515_v19  ;;  %5481 = vmatmul.mubr.msk.f32.gmra.mxu0 %vm3466_vm7, %v3888_v11  ;;  %v5552_v42 = vld [vmem:[%s8150_s5 + $0x158] sm:$0xff]  ;;  %v4510_v46 = vld [vmem:[%s8150_s5 + $0x90] sm:$0xff]  ;;  %v4509_v55 = vld [vmem:[%s8150_s5 + $0x88] sm:$0xff] }
 0x189   : > { %4380 = vmatpush1.msra.mxu0 %v5514_v26  ;;  %4415 = vmatprep.mubr.f32.mxu0 %v6051_v7  ;;  %v5551_v62 = vld [vmem:[%s8150_s5 + $0x150] sm:$0xff]  ;;  %v5550_v21 = vld [vmem:[%s8150_s5 + $0x148] sm:$0xff]  ;;  %v4508_v22 = vld [vmem:[%s8150_s5 + $0x80] sm:$0xff] }
 0x18a   : > { %4381 = vmatprep.subr.mxu0 %v5513_v43  ;;  %4637 = vmatprep.subr.mxu1 %v6051_v7 }
 0x18b   : > { %4382 = vmatpush1.msra.mxu0 %v5512_v12  ;;  %4638 = vmatpush1.msra.mxu1 %v5545_v39 }
 0x18c   : > { %5530 = vmatmul.mubr.msk.f32.vlgmr.msra.gmra.mxu0 %vm3466_vm7, %v8172_v41  ;;  %4780 = vmatprep.subr.mxu0 %v6051_v7 }
 0x18d   : > { %4421 = vmatprep.mubr.f32.mxu0 %v6051_v7  ;;  %4781 = vmatpush1.msra.mxu0 %v4507_v37 }
 0x18e   : > { %4782 = vmatprep.subr.mxu0 %v6051_v7  ;;  %4639 = vmatprep.subr.mxu1 %v6051_v7 }
 0x18f   : > { %4783 = vmatpush1.msra.mxu0 %v4506_v30  ;;  %4640 = vmatpush1.msra.mxu1 %v5544_v32 }
 0x190   : > { %5531 = vmatmul.mubr.msk.f32.gmra.mxu0 %vm3466_vm7, %v8173_v9  ;;  %4784 = vmatprep.subr.mxu0 %v6051_v7 }
 0x191   : > { %4427 = vmatprep.mubr.f32.mxu0 %v6051_v7  ;;  %4785 = vmatpush1.msra.mxu0 %v4505_v31 }
 0x192   : > { %4786 = vmatprep.subr.mxu0 %v6051_v7  ;;  %4641 = vmatprep.subr.mxu1 %v6051_v7 }
 0x193   : > { %4787 = vmatpush1.msra.mxu0 %v4504_v36  ;;  %4642 = vmatpush1.msra.mxu1 %v5543_v28 }
 0x194   : > { %5532 = vmatmul.mubr.msk.f32.gmra.mxu0 %vm3466_vm7, %v8174_v24  ;;  %4788 = vmatprep.subr.mxu0 %v6051_v7 }
 0x195   : > { %4433 = vmatprep.mubr.f32.mxu0 %v6051_v7  ;;  %4789 = vmatpush1.msra.mxu0 %v4503_v20 }
 0x196   : > { %4790 = vmatprep.subr.mxu0 %v6051_v7  ;;  %4643 = vmatprep.subr.mxu1 %v6051_v7 }
 0x197   : > { %4791 = vmatpush1.msra.mxu0 %v4502_v33  ;;  %4644 = vmatpush1.msra.mxu1 %v5542_v49 }
 0x198   : > { %5533 = vmatmul.mubr.msk.f32.gmra.mxu0 %vm3466_vm7, %v8175_v50  ;;  %4792 = vmatprep.subr.mxu0 %v6051_v7 }
 0x199   : > { %4793 = vmatpush1.msra.mxu0 %v4501_v44  ;;  %4645 = vmatprep.subr.mxu1 %v6051_v7 }
 0x19a   : > { %4794 = vmatprep.subr.mxu0 %v6051_v7  ;;  %4646 = vmatpush1.msra.mxu1 %v5541_v29 }
 0x19b   : > { %4795 = vmatpush1.msra.mxu0 %v4500_v1  ;;  %4647 = vmatprep.subr.mxu1 %v6051_v7 }
 0x19c   : > { %4796 = vmatprep.subr.mxu0 %v6051_v7  ;;  %4648 = vmatpush1.msra.mxu1 %v5540_v3 }
 0x19d   : > { %4797 = vmatpush1.msra.mxu0 %v4499_v25  ;;  %4649 = vmatprep.subr.mxu1 %v6051_v7  ;;  %v7666_v25 = vsub.s32 0, %v6161_v6 }
 0x19e   : > { %4798 = vmatprep.subr.mxu0 %v6051_v7  ;;  %4650 = vmatpush1.msra.mxu1 %v5539_v38 }
 0x19f   : > { %4799 = vmatpush1.msra.mxu0 %v4498_v17  ;;  %4651 = vmatprep.subr.mxu1 %v6051_v7  ;;  %v4448_v17 = vld [vmem:[%s8149_s4] sm:$0x3] }
 0x1a0   : > { %4800 = vmatprep.subr.mxu0 %v6051_v7  ;;  %4652 = vmatpush1.msra.mxu1 %v5538_v60 }
 0x1a1   : > { %4801 = vmatpush1.msra.mxu0 %v4497_v23  ;;  %4653 = vmatprep.subr.mxu1 %v6051_v7 }
 0x1a2   : > { %4802 = vmatprep.subr.mxu0 %v6051_v7  ;;  %4654 = vmatpush1.msra.mxu1 %v5537_v18 }
 0x1a3   : > { %4803 = vmatpush1.msra.mxu0 %v4496_v40  ;;  %4655 = vmatprep.subr.mxu1 %v6051_v7  ;;  %v7672_v40 = vsub.s32 1, %v6161_v6 }
 0x1a4   : > { %4804 = vmatprep.subr.mxu0 %v6051_v7  ;;  %4656 = vmatpush1.msra.mxu1 %v5536_v8 }
 0x1a5   : > { %4805 = vmatpush1.msra.mxu0 %v4495_v52  ;;  %4657 = vmatprep.subr.mxu1 %v6051_v7 }
 0x1a6   : > { %4806 = vmatprep.subr.mxu0 %v6051_v7  ;;  %4658 = vmatpush1.msra.mxu1 %v5535_v51  ;;  %v7675_v51 = vrot.slane %v4448_v17, %v7666_v25 }
 0x1a7   : > { %4807 = vmatpush1.msra.mxu0 %v4494_v56  ;;  %4659 = vmatprep.subr.mxu1 %v6051_v7 }
 0x1a8   : > { %4808 = vmatprep.subr.mxu0 %v6051_v7  ;;  %4660 = vmatpush1.msra.mxu1 %v5534_v34 }
 0x1a9   : > { %4809 = vmatpush1.msra.mxu0 %v4493_v59  ;;  %4675 = vmatprep.subr.mxu1 %v6051_v7 }
 0x1aa   : > { %4810 = vmatprep.subr.mxu0 %v6051_v7  ;;  %4676 = vmatpush2.msra.mxu1 %v5558_v48 }
 0x1ab   : > { %4811 = vmatpush1.msra.mxu0 %v4492_v10  ;;  %4677 = vmatprep.subr.mxu1 %v6051_v7 }
 0x1ac   : > { %4826 = vmatprep.subr.mxu0 %v6051_v7  ;;  %4678 = vmatpush2.msra.mxu1 %v5557_v45  ;;  %v7678_v45 = vrot.slane %v4448_v17, %v7672_v40 }
 0x1ad   : > { %4827 = vmatpush2.msra.mxu0 %v4516_v13  ;;  %4679 = vmatprep.subr.mxu1 %v6051_v7 }
 0x1ae   : > { %4828 = vmatprep.subr.mxu0 %v6051_v7  ;;  %4680 = vmatpush2.msra.mxu1 %v5556_v4 }
 0x1af   : > { %4829 = vmatpush2.msra.mxu0 %v4515_v54  ;;  %4681 = vmatprep.subr.mxu1 %v6051_v7 }
 0x1b0   : > { %4830 = vmatprep.subr.mxu0 %v6051_v7  ;;  %4682 = vmatpush2.msra.mxu1 %v5555_v57 }
 0x1b1   : > { %4831 = vmatpush2.msra.mxu0 %v4514_v0  ;;  %4683 = vmatprep.subr.mxu1 %v6051_v7 }
 0x1b2   : > { %4832 = vmatprep.subr.mxu0 %v6051_v7  ;;  %4684 = vmatpush2.msra.mxu1 %v5554_v47 }
 0x1b3   : > { %4833 = vmatpush2.msra.mxu0 %v4513_v58  ;;  %4685 = vmatprep.subr.mxu1 %v6051_v7 }
 0x1b4   : > { %4834 = vmatprep.subr.mxu0 %v6051_v7  ;;  %4686 = vmatpush2.msra.mxu1 %v5553_v63 }
 0x1b5   : > { %4835 = vmatpush2.msra.mxu0 %v4512_v15  ;;  %4687 = vmatprep.subr.mxu1 %v6051_v7 }
 0x1b6   : > { %4836 = vmatprep.subr.mxu0 %v6051_v7  ;;  %4688 = vmatpush2.msra.mxu1 %v5552_v42 }
 0x1b7   : > { %4837 = vmatpush2.msra.mxu0 %v4511_v5  ;;  %4689 = vmatprep.subr.mxu1 %v6051_v7 }
 0x1b8   : > { %4838 = vmatprep.subr.mxu0 %v6051_v7  ;;  %4690 = vmatpush2.msra.mxu1 %v5551_v62 }
 0x1b9   : > { %4839 = vmatpush2.msra.mxu0 %v4510_v46  ;;  %4691 = vmatprep.subr.mxu1 %v6051_v7 }
 0x1ba   : > { %4840 = vmatprep.subr.mxu0 %v6051_v7  ;;  %4692 = vmatpush2.msra.mxu1 %v5550_v21 }
 0x1bb   : > { %4841 = vmatpush2.msra.mxu0 %v4509_v55  ;;  %4957 = vmatprep.subr.mxu1 %v6051_v7 }
 0x1bc   : > { %4842 = vmatprep.subr.mxu0 %v6051_v7 }
 0x1bd   : > { %4843 = vmatpush2.msra.mxu0 %v4508_v22 }
 0x1be   : > { %5135 = vmatprep.subr.mxu0 %v6051_v7 }
 0x1f0   : > { %v3718_v2 = vpop.f32.mrf.mxu1 }
 0x1f2   : > { %v3720_v53 = vpop.f32.mrf.mxu1 }
 0x1fa   : > { %v3724_v14 = vpop.f32.mrf.mxu1 }
 0x1fc   : > { %v3726_v11 = vpop.f32.mrf.mxu1 }
 0x201   : > { %v3730_v43 = vpop.f32.mrf.mxu1 }
 0x203   : > { %v3732_v41 = vpop.f32.mrf.mxu1 }
 0x205   : > { %v3736_v24 = vpop.f32.mrf.mxu1 }
 0x207   : > { %v3738_v37 = vpop.f32.mrf.mxu1 }
 0x220   : > { %v3547_v19 = vpop.f32.mrf.mxu0 }
 0x221   : > { %v3719_v28 = vadd.f32 %v3718_v2, %v3547_v19  ;;  %v7683_v19 = vsub.s32 5, %v6161_v6 }
 0x222   : > { %v3549_v26 = vpop.f32.mrf.mxu0 }
 0x223   : > { %v3721_v1 = vadd.f32 %v3720_v53, %v3549_v26 }
 0x225   : > { %v4221_v30 = vpop.f32.mrf.mxu1 }
 0x227   : > { %v4223_v16 = vpop.f32.mrf.mxu1 }
 0x228   : > { %v3553_v12 = vpop.f32.mrf.mxu0 }
 0x229   : > { %v3725_v38 = vadd.f32 %v3724_v14, %v3553_v12 }
 0x22a   : > { %v3555_v9 = vpop.f32.mrf.mxu0 }
 0x22b   : > { %v3727_v52 = vadd.f32 %v3726_v11, %v3555_v9  ;;  %v7686_v11 = vsub.s32 4, %v6161_v6 }
 0x230   : > { %v3559_v50 = vpop.f32.mrf.mxu0  ;;  %v4227_v20 = vpop.f32.mrf.mxu1 }
 0x231   : > { %v3731_v54 = vadd.f32 %v3730_v43, %v3559_v50  ;;  %v7690_v50 = vsub.s32 6, %v6161_v6 }
 0x232   : > { %v3561_v35 = vpop.f32.mrf.mxu0  ;;  %v4229_v44 = vpop.f32.mrf.mxu1 }
 0x233   : > { %v3733_v0 = vadd.f32 %v3732_v41, %v3561_v35 }
 0x235   : > { %v3565_v61 = vpop.f32.mrf.mxu0 }
 0x236   : > { %v4233_v23 = vpop.f32.mrf.mxu1  ;;  %v3737_v15 = vadd.f32 %v3736_v24, %v3565_v61 }
 0x237   : > { %v3567_v27 = vpop.f32.mrf.mxu0 }
 0x238   : > { %v4235_v34 = vpop.f32.mrf.mxu1  ;;  %v3739_v63 = vadd.f32 %v3738_v37, %v3567_v27 }
 0x23a   : > { %v4239_v46 = vpop.f32.mrf.mxu1 }
 0x23b   : > { %v3969_v31 = vpop.f32.mrf.mxu0 }
 0x23c   : > { %v3992_v29 = vadd.f32 %v3969_v31, %v3719_v28  ;;  %v4241_v35 = vpop.f32.mrf.mxu1 }
 0x23d   : > { %v3971_v36 = vpop.f32.mrf.mxu0 }
 0x23e   : > { %v3993_v60 = vadd.f32 %v3971_v36, %v3721_v1  ;;  %v4244_v56 = vadd.f32 %v4221_v30, %v3992_v29 }
 0x240   : > { %v3975_v39 = vpop.f32.mrf.mxu0  ;;  %v4245_v13 = vadd.f32 %v4223_v16, %v3993_v60 }
 0x241   : > { %v3994_v8 = vadd.f32 %v3975_v39, %v3725_v38 }
 0x242   : > { %v3977_v32 = vpop.f32.mrf.mxu0 }
 0x243   : > { %v3995_v10 = vadd.f32 %v3977_v32, %v3727_v52  ;;  %v4246_v47 = vadd.f32 %v4227_v20, %v3994_v8 }
 0x244   : > { %v3981_v33 = vpop.f32.mrf.mxu0 }
 0x245   : > { %v3996_v5 = vadd.f32 %v3981_v33, %v3731_v54  ;;  %v4247_v22 = vadd.f32 %v4229_v44, %v3995_v10 }
 0x246   : > { %v3983_v49 = vpop.f32.mrf.mxu0 }
 0x247   : > { %v3997_v62 = vadd.f32 %v3983_v49, %v3733_v0  ;;  %v4248_v9 = vadd.f32 %v4233_v23, %v3996_v5 }
 0x248   : > { %v3987_v3 = vpop.f32.mrf.mxu0 }
 0x249   : > { %v3998_v2 = vadd.f32 %v3987_v3, %v3737_v15  ;;  %v4249_v27 = vadd.f32 %v4235_v34, %v3997_v62 }
 0x24a   : > { %v3989_v18 = vpop.f32.mrf.mxu0 }
 0x24b   : > { %v3999_v53 = vadd.f32 %v3989_v18, %v3739_v63  ;;  %v4250_v39 = vadd.f32 %v4239_v46, %v3998_v2 }
 0x24c   : > { %v4417_v59 = vpop.f32.mrf.mxu0 }
 0x24d   : > { %v4440_v48 = vadd.f32 %v4417_v59, %v4244_v56  ;;  %v4251_v20 = vadd.f32 %v4241_v35, %v3999_v53 }
 0x24e   : > { %v4419_v4 = vpop.f32.mrf.mxu0 }
 0x24f   : > { %v4460_v57 = vadd.f32 %v7675_v51, %v4440_v48  ;;  %v4441_v58 = vadd.f32 %v4419_v4, %v4245_v13 }
 0x250   : > { %v4423_v42 = vpop.f32.mrf.mxu0 }
 0x251   : > { %v4461_v55 = vadd.f32 %v7678_v45, %v4441_v58  ;;  %v4442_v21 = vadd.f32 %v4423_v42, %v4246_v47  ;;  %v4468_v26 = vmax.f32 %v4460_v57, 0.0 }
 0x252   : > { %v4425_v14 = vpop.f32.mrf.mxu0 }
 0x253   : > { %v4469_v43 = vmax.f32 %v4461_v55, 0.0  ;;  %v4462_v12 = vadd.f32 %v7675_v51, %v4442_v21  ;;  %v4443_v41 = vadd.f32 %v4425_v14, %v4247_v22 }
 0x254   : > { %v4429_v24 = vpop.f32.mrf.mxu0 }
 0x255   : > { %v7692_v37 = vcombine.low %v4468_v26, %v4469_v43  ;;  %v7694_v61 = vcombine.high %v4468_v26, %v4469_v43  ;;  %v4463_v30 = vadd.f32 %v7678_v45, %v4443_v41  ;;  %v4470_v31 = vmax.f32 %v4462_v12, 0.0 }
 0x256   : > { %v4444_v16 = vadd.f32 %v4429_v24, %v4248_v9  ;;  %v4431_v36 = vpop.f32.mrf.mxu0 }
 0x257   : > { %v4471_v32 = vmax.f32 %v4463_v30, 0.0  ;;  %v4445_v33 = vadd.f32 %v4431_v36, %v4249_v27  ;;  %v4550_v28 = vrot.slane %v7692_v37, %v7683_v19  ;;  %v4558_v44 = vrot.slane %v7694_v61, %v7683_v19 }
 0x258   : > { %v4464_v49 = vadd.f32 %v7675_v51, %v4444_v16  ;;  %v4435_v1 = vpop.f32.mrf.mxu0  ;;  %v4706_v29 = vrot.slane %v7692_v37, %v7686_v11  ;;  %v4714_v3 = vrot.slane %v7694_v61, %v7686_v11  ;;  %v4546_v17 = vrot.slane %v7692_v37, %v7672_v40 }
 0x259   : > { %v7708_v38 = vcombine.low %v4470_v31, %v4471_v32  ;;  %v7710_v23 = vcombine.high %v4470_v31, %v4471_v32  ;;  %v4465_v60 = vadd.f32 %v7678_v45, %v4445_v33  ;;  %v4446_v18 = vadd.f32 %v4435_v1, %v4250_v39 }
 0x25a   : > { %v4472_v52 = vmax.f32 %v4464_v49, 0.0  ;;  %v4437_v8 = vpop.f32.mrf.mxu0  ;;  %v4618_v56 = vsel %vm4607_vm10, %v4558_v44, %v4550_v28  ;;  %v4770_v59 = vsel %vm4607_vm10, %v4714_v3, %v4706_v29  ;;  %v4554_v34 = vrot.slane %v7694_v61, %v7672_v40 }
 0x25b   : > { %v4473_v10 = vmax.f32 %v4465_v60, 0.0  ;;  %v4466_v48 = vadd.f32 %v7675_v51, %v4446_v18  ;;  %v4447_v13 = vadd.f32 %v4437_v8, %v4251_v20  ;;  %v4566_v54 = vrot.slane %v7708_v38, %v7683_v19  ;;  %v5576_v18 = vld [vmem:[%s8150_s5 + $0x208] sm:$0xff] }
 0x25c   : > { %v4574_v4 = vrot.slane %v7710_v23, %v7683_v19  ;;  %v4722_v0 = vrot.slane %v7708_v38, %v7686_v11  ;;  %v4730_v57 = vrot.slane %v7710_v23, %v7686_v11  ;;  %v4562_v58 = vrot.slane %v7708_v38, %v7672_v40 }
 0x25d   : > { %v7728_v47 = vcombine.low %v4472_v52, %v4473_v10  ;;  %v7730_v51 = vcombine.high %v4472_v52, %v4473_v10  ;;  %v4474_v15 = vmax.f32 %v4466_v48, 0.0  ;;  %v4467_v63 = vadd.f32 %v7678_v45, %v4447_v13 }
 0x25e   : > { %v4619_v5 = vsel %vm3742_vm3, %v4566_v54, %v4618_v56  ;;  %v4771_v42 = vsel %vm3742_vm3, %v4722_v0, %v4770_v59  ;;  %v4570_v46 = vrot.slane %v7710_v23, %v7672_v40  ;;  %v4608_v62 = vsel %vm4607_vm10, %v4554_v34, %v4546_v17 }
 0x25f   : > { %v4475_v55 = vmax.f32 %v4467_v63, 0.0  ;;  %v4582_v21 = vrot.slane %v7728_v47, %v7683_v19  ;;  %v4590_v22 = vrot.slane %v7730_v51, %v7683_v19  ;;  %v4620_v2 = vsel %vm4610_vm11, %v4574_v4, %v4619_v5  ;;  %v5575_v4 = vld [vmem:[%s8150_s5 + $0x200] sm:$0xff] }
 0x260   : > { %v4738_v45 = vrot.slane %v7728_v47, %v7686_v11  ;;  %v4746_v53 = vrot.slane %v7730_v51, %v7686_v11  ;;  %v4772_v14 = vsel %vm4610_vm11, %v4730_v57, %v4771_v42  ;;  %v4578_v26 = vrot.slane %v7728_v47, %v7672_v40 }
 0x261   : > { %v7750_v43 = vcombine.low %v4474_v15, %v4475_v55  ;;  %v7752_v12 = vcombine.high %v4474_v15, %v4475_v55  ;;  %v4621_v41 = vsel %vm3744_vm4, %v4582_v21, %v4620_v2  ;;  %v4586_v9 = vrot.slane %v7730_v51, %v7672_v40 }
 0x262   : > { %v4622_v24 = vsel %vm4613_vm12, %v4590_v22, %v4621_v41  ;;  %v4773_v35 = vsel %vm3744_vm4, %v4738_v45, %v4772_v14  ;;  %v4609_v30 = vsel %vm3742_vm3, %v4562_v58, %v4608_v62  ;;  %v4702_v27 = vrot.slane %v7692_v37, %v7666_v25 }
 0x263   : > { %v4598_v31 = vrot.slane %v7750_v43, %v7683_v19  ;;  %v4606_v16 = vrot.slane %v7752_v12, %v7683_v19  ;;  %v4754_v36 = vrot.slane %v7750_v43, %v7686_v11  ;;  %v4762_v39 = vrot.slane %v7752_v12, %v7686_v11 }
 0x264   : > { %v4774_v20 = vsel %vm4613_vm12, %v4746_v53, %v4773_v35  ;;  %v4594_v32 = vrot.slane %v7750_v43, %v7672_v40  ;;  %v4602_v33 = vrot.slane %v7752_v12, %v7672_v40  ;;  %v4611_v28 = vsel %vm4610_vm11, %v4570_v46, %v4609_v30  ;;  %v5574_v46 = vld [vmem:[%s8150_s5 + $0x1f8] sm:$0xff] }
 0x265   : > { %v4623_v44 = vsel %vm3746_vm6, %v4598_v31, %v4622_v24  ;;  %v4775_v19 = vsel %vm3746_vm6, %v4754_v36, %v4774_v20  ;;  %v4612_v49 = vsel %vm3744_vm4, %v4578_v26, %v4611_v28  ;;  %v4710_v1 = vrot.slane %v7694_v61, %v7666_v25  ;;  %v5573_v26 = vld [vmem:[%s8150_s5 + $0x1f0] sm:$0xff]  ;;  %v5572_v20 = vld [vmem:[%s8150_s5 + $0x1e8] sm:$0xff] }
 0x266   : > { %v4624_v11 = vsel %vm4616_vm13, %v4606_v16, %v4623_v44  ;;  %v4776_v29 = vsel %vm4616_vm13, %v4762_v39, %v4775_v19  ;;  %v4614_v3 = vsel %vm4613_vm12, %v4586_v9, %v4612_v49  ;;  %v4718_v40 = vrot.slane %v7708_v38, %v7666_v25  ;;  %v5602_v9 = vld [vmem:[%s8150_s5 + $0x2d0] sm:$0xff]  ;;  %v5601_v39 = vld [vmem:[%s8150_s5 + $0x2c8] sm:$0xff]  ;;  %v5600_v49 = vld [vmem:[%s8150_s5 + $0x2c0] sm:$0xff] }
 0x267   : > { %5559 = vmatprep.mubr.msk.f32.mxu1 %vm4626_vm14, %v4624_v11  ;;  %5560 = vmatprep.mubr.msk.f32.mxu0 %vm4626_vm14, %v4776_v29  ;;  %v4615_v17 = vsel %vm3746_vm6, %v4594_v32, %v4614_v3  ;;  %v4726_v60 = vrot.slane %v7710_v23, %v7666_v25  ;;  %v7795_v52 = vsub.s32 7, %v6161_v6  ;;  %v4734_v56 = vrot.slane %v7728_v47, %v7666_v25  ;;  %v5599_v3 = vld [vmem:[%s8150_s5 + $0x2b8] sm:$0xff] }
 0x268   : > { %v4617_v8 = vsel %vm4616_vm13, %v4602_v33, %v4615_v17  ;;  %v4742_v59 = vrot.slane %v7730_v51, %v7666_v25  ;;  %v4750_v34 = vrot.slane %v7750_v43, %v7666_v25  ;;  %v4763_v10 = vsel %vm4607_vm10, %v4710_v1, %v4702_v27  ;;  %v5571_v1 = vld [vmem:[%s8150_s5 + $0x1e0] sm:$0xff]  ;;  %v5570_v17 = vld [vmem:[%s8150_s5 + $0x1d8] sm:$0xff] }
 0x269   : > { %4694 = vmatmul.mubr.f32.vlgmr.msra.gmra.mxu1 %v4617_v8  ;;  %v4883_v48 = vrot.slane %v7692_v37, %v7690_v50  ;;  %v4891_v13 = vrot.slane %v7694_v61, %v7690_v50  ;;  %v4899_v54 = vrot.slane %v7708_v38, %v7690_v50  ;;  %v4758_v0 = vrot.slane %v7752_v12, %v7666_v25  ;;  %v5597_v8 = vld [vmem:[%s8150_s5 + $0x2a8] sm:$0xff] }
 0x26a   : > { %v4764_v57 = vsel %vm3742_vm3, %v4718_v40, %v4763_v10  ;;  %4958 = vmatpush1.msra.mxu1 %v5576_v18  ;;  %v4907_v58 = vrot.slane %v7710_v23, %v7690_v50  ;;  %v4915_v15 = vrot.slane %v7728_v47, %v7690_v50  ;;  %v4923_v5 = vrot.slane %v7730_v51, %v7690_v50  ;;  %v5598_v18 = vld [vmem:[%s8150_s5 + $0x2b0] sm:$0xff]  ;;  %v5595_v10 = vld [vmem:[%s8150_s5 + $0x298] sm:$0xff] }
 0x26b   : > { %v4765_v63 = vsel %vm4610_vm11, %v4726_v60, %v4764_v57  ;;  %4959 = vmatprep.subr.mxu1 %v6051_v7  ;;  %v4931_v42 = vrot.slane %v7750_v43, %v7690_v50  ;;  %v4947_v25 = vsel %vm4607_vm10, %v4891_v13, %v4883_v48  ;;  %v5061_v21 = vrot.slane %v7692_v37, %v7795_v52  ;;  %v5566_v48 = vld [vmem:[%s8150_s5 + $0x1b8] sm:$0xff]  ;;  %v5594_v13 = vld [vmem:[%s8150_s5 + $0x290] sm:$0xff]  ;;  %v5592_v57 = vld [vmem:[%s8150_s5 + $0x280] sm:$0xff] }
 0x26c   : > { %v4766_v62 = vsel %vm3744_vm4, %v4734_v56, %v4765_v63  ;;  %v4948_v55 = vsel %vm3742_vm3, %v4899_v54, %v4947_v25  ;;  %v5069_v22 = vrot.slane %v7694_v61, %v7795_v52  ;;  %4960 = vmatpush1.msra.mxu1 %v5575_v4  ;;  %v4939_v45 = vrot.slane %v7752_v12, %v7690_v50  ;;  %v5568_v56 = vld [vmem:[%s8150_s5 + $0x1c8] sm:$0xff]  ;;  %v5565_v54 = vld [vmem:[%s8150_s5 + $0x1b0] sm:$0xff]  ;;  %v5562_v63 = vld [vmem:[%s8150_s5 + $0x198] sm:$0xff] }
 0x26d   : > { %v4767_v2 = vsel %vm4613_vm12, %v4742_v59, %v4766_v62  ;;  %v4949_v53 = vsel %vm4610_vm11, %v4907_v58, %v4948_v55  ;;  %v5077_v14 = vrot.slane %v7708_v38, %v7795_v52  ;;  %4961 = vmatprep.subr.mxu1 %v6051_v7  ;;  %v5085_v50 = vrot.slane %v7710_v23, %v7795_v52  ;;  %v5596_v59 = vld [vmem:[%s8150_s5 + $0x2a0] sm:$0xff]  ;;  %v5593_v4 = vld [vmem:[%s8150_s5 + $0x288] sm:$0xff]  ;;  %v5585_v62 = vld [vmem:[%s8150_s5 + $0x250] sm:$0xff] }
 0x26e   : > { %v4768_v41 = vsel %vm3746_vm6, %v4750_v34, %v4767_v2  ;;  %v4950_v24 = vsel %vm3744_vm4, %v4915_v15, %v4949_v53  ;;  %4962 = vmatpush1.msra.mxu1 %v5574_v46  ;;  %v5093_v27 = vrot.slane %v7728_v47, %v7795_v52  ;;  %v5101_v16 = vrot.slane %v7730_v51, %v7795_v52  ;;  %v5567_v34 = vld [vmem:[%s8150_s5 + $0x1c0] sm:$0xff]  ;;  %v5591_v15 = vld [vmem:[%s8150_s5 + $0x278] sm:$0xff]  ;;  %v5589_v25 = vld [vmem:[%s8150_s5 + $0x268] sm:$0xff] }
 0x26f   : > { %v4769_v35 = vsel %vm4616_vm13, %v4758_v0, %v4768_v41  ;;  %v4951_v30 = vsel %vm4613_vm12, %v4923_v5, %v4950_v24  ;;  %4963 = vmatprep.subr.mxu1 %v6051_v7  ;;  %v5125_v36 = vsel %vm4607_vm10, %v5069_v22, %v5061_v21  ;;  %v5109_v33 = vrot.slane %v7750_v43, %v7795_v52  ;;  %v5564_v0 = vld [vmem:[%s8150_s5 + $0x1a8] sm:$0xff]  ;;  %v5563_v58 = vld [vmem:[%s8150_s5 + $0x1a0] sm:$0xff]  ;;  %v5590_v5 = vld [vmem:[%s8150_s5 + $0x270] sm:$0xff] }
 0x270   : > { %4845 = vmatmul.mubr.f32.vlgmr.msra.gmra.mxu0 %v4769_v35  ;;  %v4952_v31 = vsel %vm3746_vm6, %v4931_v42, %v4951_v30  ;;  %4964 = vmatpush1.msra.mxu1 %v5573_v26  ;;  %v5126_v28 = vsel %vm3742_vm3, %v5077_v14, %v5125_v36  ;;  %v5117_v44 = vrot.slane %v7752_v12, %v7795_v52  ;;  %v5569_v52 = vld [vmem:[%s8150_s5 + $0x1d0] sm:$0xff]  ;;  %v7975_v46 = vsub.s32 2, %v6161_v6  ;;  %v5588_v55 = vld [vmem:[%s8150_s5 + $0x260] sm:$0xff]  ;;  %v5584_v21 = vld [vmem:[%s8150_s5 + $0x248] sm:$0xff] }
 0x271   : > { %5136 = vmatpush1.msra.mxu0 %v5602_v9  ;;  %v4953_v32 = vsel %vm4616_vm13, %v4939_v45, %v4952_v31  ;;  %4965 = vmatprep.subr.mxu1 %v6051_v7  ;;  %v5127_v19 = vsel %vm4610_vm11, %v5085_v50, %v5126_v28  ;;  %v5561_v42 = vld [vmem:[%s8150_s5 + $0x190] sm:$0xff]  ;;  %v5587_v22 = vld [vmem:[%s8150_s5 + $0x258] sm:$0xff]  ;;  %v5583_v53 = vld [vmem:[%s8150_s5 + $0x240] sm:$0xff]  ;;  %v8004_v26 = vsub.s32 3, %v6161_v6 }
 0x272   : > { %5586 = vmatprep.mubr.msk.f32.mxu1 %vm4626_vm14, %v4953_v32  ;;  %5137 = vmatprep.subr.mxu0 %v6051_v7  ;;  %v5128_v11 = vsel %vm3744_vm4, %v5093_v27, %v5127_v19  ;;  %v4879_v2 = vrot.slane %v7692_v37, %v7975_v46  ;;  %v4887_v45 = vrot.slane %v7694_v61, %v7975_v46  ;;  %v5611_v41 = vld [vmem:[%s8150_s5 + $0x318] sm:$0xff]  ;;  %v5610_v6 = vld [vmem:[%s8150_s5 + $0x310] sm:$0xff]  ;;  %v5609_v36 = vld [vmem:[%s8150_s5 + $0x308] sm:$0xff] }
 0x273   : > { %5138 = vmatpush1.msra.mxu0 %v5601_v39  ;;  %4966 = vmatpush1.msra.mxu1 %v5572_v20  ;;  %v5129_v29 = vsel %vm4613_vm12, %v5101_v16, %v5128_v11  ;;  %v4895_v14 = vrot.slane %v7708_v38, %v7975_v46  ;;  %v5582_v9 = vld [vmem:[%s8150_s5 + $0x238] sm:$0xff]  ;;  %v4903_v24 = vrot.slane %v7710_v23, %v7975_v46  ;;  %v5581_v30 = vld [vmem:[%s8150_s5 + $0x230] sm:$0xff] }
 0x274   : > { %5139 = vmatprep.subr.mxu0 %v6051_v7  ;;  %4967 = vmatprep.subr.mxu1 %v6051_v7  ;;  %v5130_v40 = vsel %vm3746_vm6, %v5109_v33, %v5129_v29  ;;  %v4911_v50 = vrot.slane %v7728_v47, %v7975_v46  ;;  %v4940_v35 = vsel %vm4607_vm10, %v4887_v45, %v4879_v2  ;;  %v5579_v33 = vld [vmem:[%s8150_s5 + $0x220] sm:$0xff]  ;;  %v5606_v29 = vld [vmem:[%s8150_s5 + $0x2f0] sm:$0xff] }
 0x275   : > { %5140 = vmatpush1.msra.mxu0 %v5600_v49  ;;  %4968 = vmatpush1.msra.mxu1 %v5571_v1  ;;  %v5131_v60 = vsel %vm4616_vm13, %v5117_v44, %v5130_v40  ;;  %v4941_v27 = vsel %vm3742_vm3, %v4895_v14, %v4940_v35  ;;  %v5057_v31 = vrot.slane %v7692_v37, %v8004_v26  ;;  %v5580_v37 = vld [vmem:[%s8150_s5 + $0x228] sm:$0xff]  ;;  %v5607_v49 = vld [vmem:[%s8150_s5 + $0x2f8] sm:$0xff]  ;;  %v5577_v40 = vld [vmem:[%s8150_s5 + $0x210] sm:$0xff] }
 0x276   : > { %5141 = vmatprep.subr.mxu0 %v6051_v7  ;;  %4969 = vmatprep.subr.mxu1 %v6051_v7  ;;  %v5065_v16 = vrot.slane %v7694_v61, %v8004_v26  ;;  %v5073_v39 = vrot.slane %v7708_v38, %v8004_v26  ;;  %v5608_v61 = vld [vmem:[%s8150_s5 + $0x300] sm:$0xff]  ;;  %v4919_v20 = vrot.slane %v7730_v51, %v7975_v46 }
 0x277   : > { %5612 = vmatprep.mubr.msk.f32.mxu0 %vm4626_vm14, %v5131_v60  ;;  %5142 = vmatpush1.msra.mxu0 %v5599_v3  ;;  %v4927_v38 = vrot.slane %v7750_v43, %v7975_v46  ;;  %v4942_v32 = vsel %vm4610_vm11, %v4903_v24, %v4941_v27  ;;  %v5081_v44 = vrot.slane %v7710_v23, %v8004_v26  ;;  %v5578_v23 = vld [vmem:[%s8150_s5 + $0x218] sm:$0xff] }
 0x278   : > { %5143 = vmatprep.subr.mxu0 %v6051_v7  ;;  %4970 = vmatpush1.msra.mxu1 %v5570_v17  ;;  %v4943_v28 = vsel %vm3744_vm4, %v4911_v50, %v4942_v32  ;;  %v5118_v19 = vsel %vm4607_vm10, %v5065_v16, %v5057_v31  ;;  %v5089_v1 = vrot.slane %v7728_v47, %v8004_v26 }
 0x279   : > { %5144 = vmatpush1.msra.mxu0 %v5598_v18  ;;  %4971 = vmatprep.subr.mxu1 %v6051_v7  ;;  %v5119_v11 = vsel %vm3742_vm3, %v5073_v39, %v5118_v19  ;;  %v4935_v3 = vrot.slane %v7752_v12, %v7975_v46  ;;  %v4944_v47 = vsel %vm4613_vm12, %v4919_v20, %v4943_v28 }
 0x27a   : > { %5145 = vmatprep.subr.mxu0 %v6051_v7  ;;  %4972 = vmatpush1.msra.mxu1 %v5569_v52  ;;  %v4945_v17 = vsel %vm3746_vm6, %v4927_v38, %v4944_v47  ;;  %v5097_v60 = vrot.slane %v7730_v51, %v8004_v26  ;;  %v5120_v18 = vsel %vm4610_vm11, %v5081_v44, %v5119_v11  ;;  %v5605_v52 = vld [vmem:[%s8150_s5 + $0x2e8] sm:$0xff]  ;;  %v5604_v51 = vld [vmem:[%s8150_s5 + $0x2e0] sm:$0xff] }
 0x27b   : > { %5146 = vmatpush1.msra.mxu0 %v5597_v8  ;;  %4973 = vmatprep.subr.mxu1 %v6051_v7  ;;  %v5105_v8 = vrot.slane %v7750_v43, %v8004_v26  ;;  %v5113_v43 = vrot.slane %v7752_v12, %v8004_v26 }
 0x27c   : > { %5147 = vmatprep.subr.mxu0 %v6051_v7  ;;  %4974 = vmatpush1.msra.mxu1 %v5568_v56  ;;  %v5121_v56 = vsel %vm3744_vm4, %v5089_v1, %v5120_v18 }
 0x27d   : > { %5148 = vmatpush1.msra.mxu0 %v5596_v59  ;;  %4975 = vmatprep.subr.mxu1 %v6051_v7  ;;  %v4946_v59 = vsel %vm4616_vm13, %v4935_v3, %v4945_v17 }
 0x27e   : > { %5149 = vmatprep.subr.mxu0 %v6051_v7  ;;  %4976 = vmatpush1.msra.mxu1 %v5567_v34  ;;  %v5122_v34 = vsel %vm4613_vm12, %v5097_v60, %v5121_v56 }
 0x27f   : > { %5150 = vmatpush1.msra.mxu0 %v5595_v10  ;;  %4977 = vmatprep.subr.mxu1 %v6051_v7  ;;  %v5603_v10 = vld [vmem:[%s8150_s5 + $0x2d8] sm:$0xff] }
 0x280   : > { %5151 = vmatprep.subr.mxu0 %v6051_v7  ;;  %4978 = vmatpush1.msra.mxu1 %v5566_v48  ;;  %v5123_v48 = vsel %vm3746_vm6, %v5105_v8, %v5122_v34 }
 0x281   : > { %5152 = vmatpush1.msra.mxu0 %v5594_v13  ;;  %4979 = vmatprep.subr.mxu1 %v6051_v7  ;;  %v5124_v13 = vsel %vm4616_vm13, %v5113_v43, %v5123_v48 }
 0x282   : > { %5153 = vmatprep.subr.mxu0 %v6051_v7  ;;  %4980 = vmatpush1.msra.mxu1 %v5565_v54 }
 0x283   : > { %5154 = vmatpush1.msra.mxu0 %v5593_v4  ;;  %4981 = vmatprep.subr.mxu1 %v6051_v7 }
 0x284   : > { %5155 = vmatprep.subr.mxu0 %v6051_v7  ;;  %4982 = vmatpush1.msra.mxu1 %v5564_v0 }
 0x285   : > { %5156 = vmatpush1.msra.mxu0 %v5592_v57  ;;  %4983 = vmatprep.subr.mxu1 %v6051_v7 }
 0x286   : > { %5157 = vmatprep.subr.mxu0 %v6051_v7  ;;  %4984 = vmatpush1.msra.mxu1 %v5563_v58 }
 0x287   : > { %5158 = vmatpush1.msra.mxu0 %v5591_v15  ;;  %4985 = vmatprep.subr.mxu1 %v6051_v7 }
 0x288   : > { %5159 = vmatprep.subr.mxu0 %v6051_v7  ;;  %4986 = vmatpush1.msra.mxu1 %v5562_v63 }
 0x289   : > { %5160 = vmatpush1.msra.mxu0 %v5590_v5  ;;  %4987 = vmatprep.subr.mxu1 %v6051_v7 }
 0x28a   : > { %5161 = vmatprep.subr.mxu0 %v6051_v7  ;;  %4988 = vmatpush1.msra.mxu1 %v5561_v42 }
 0x28b   : > { %5162 = vmatpush1.msra.mxu0 %v5589_v25  ;;  %5003 = vmatprep.subr.mxu1 %v6051_v7 }
 0x28c   : > { %5163 = vmatprep.subr.mxu0 %v6051_v7  ;;  %5004 = vmatpush2.msra.mxu1 %v5585_v62 }
 0x28d   : > { %5164 = vmatpush1.msra.mxu0 %v5588_v55  ;;  %5005 = vmatprep.subr.mxu1 %v6051_v7 }
 0x28e   : > { %5165 = vmatprep.subr.mxu0 %v6051_v7  ;;  %5006 = vmatpush2.msra.mxu1 %v5584_v21 }
 0x28f   : > { %5166 = vmatpush1.msra.mxu0 %v5587_v22  ;;  %5007 = vmatprep.subr.mxu1 %v6051_v7 }
 0x290   : > { %5181 = vmatprep.subr.mxu0 %v6051_v7  ;;  %5008 = vmatpush2.msra.mxu1 %v5583_v53 }
 0x291   : > { %5182 = vmatpush2.msra.mxu0 %v5611_v41  ;;  %5009 = vmatprep.subr.mxu1 %v6051_v7 }
 0x292   : > { %5183 = vmatprep.subr.mxu0 %v6051_v7  ;;  %5010 = vmatpush2.msra.mxu1 %v5582_v9 }
 0x293   : > { %5184 = vmatpush2.msra.mxu0 %v5610_v6  ;;  %5011 = vmatprep.subr.mxu1 %v6051_v7 }
 0x294   : > { %5185 = vmatprep.subr.mxu0 %v6051_v7  ;;  %5012 = vmatpush2.msra.mxu1 %v5581_v30 }
 0x295   : > { %5186 = vmatpush2.msra.mxu0 %v5609_v36  ;;  %5013 = vmatprep.subr.mxu1 %v6051_v7 }
 0x296   : > { %5187 = vmatprep.subr.mxu0 %v6051_v7  ;;  %5014 = vmatpush2.msra.mxu1 %v5580_v37 }
 0x297   : > { %5188 = vmatpush2.msra.mxu0 %v5608_v61  ;;  %5015 = vmatprep.subr.mxu1 %v6051_v7 }
 0x298   : > { %5189 = vmatprep.subr.mxu0 %v6051_v7  ;;  %5016 = vmatpush2.msra.mxu1 %v5579_v33 }
 0x299   : > { %5190 = vmatpush2.msra.mxu0 %v5607_v49  ;;  %5017 = vmatprep.subr.mxu1 %v6051_v7 }
 0x29a   : > { %5191 = vmatprep.subr.mxu0 %v6051_v7  ;;  %5018 = vmatpush2.msra.mxu1 %v5578_v23 }
 0x29b   : > { %5192 = vmatpush2.msra.mxu0 %v5606_v29  ;;  %5019 = vmatprep.subr.mxu1 %v6051_v7 }
 0x29c   : > { %5193 = vmatprep.subr.mxu0 %v6051_v7  ;;  %5020 = vmatpush2.msra.mxu1 %v5577_v40 }
 0x29d   : > { %5194 = vmatpush2.msra.mxu0 %v5605_v52  ;;  %5022 = vmatmul.mubr.f32.vlgmr.msra.gmra.mxu1 %v4946_v59 }
 0x29e   : > { %5195 = vmatprep.subr.mxu0 %v6051_v7 }
 0x29f   : > { %5196 = vmatpush2.msra.mxu0 %v5604_v51 }
 0x2a0   : > { %5197 = vmatprep.subr.mxu0 %v6051_v7  ;;  %v5613_v7 = vld [vmem:[%s8151_s6] ss:$0 sm:$0xff] }
 0x2a1   : > { %5198 = vmatpush2.msra.mxu0 %v5603_v10 }
 0x2a2   : > { %5200 = vmatmul.mubr.f32.vlgmr.msra.gmra.mxu0 %v5124_v13 }
 0x329   : > { %v4695_v54 = vpop.f32.mrf.mxu1 }
 0x32b   : > { %v4697_v12 = vpop.f32.mrf.mxu1 }
 0x330   : > { %v4846_v4 = vpop.f32.mrf.mxu0 }
 0x331   : > { %v4847_v57 = vadd.f32 %v4846_v4, %v4695_v54 }
 0x332   : > { %v4848_v0 = vpop.f32.mrf.mxu0 }
 0x35d   : > { %v5023_v58 = vpop.f32.mrf.mxu1 }
 0x35e   : > { %v5027_v15 = vadd.f32 %v5023_v58, %v4847_v57 }
 0x35f   : > { %v5025_v63 = vpop.f32.mrf.mxu1 }
 0x362   : > { %v5201_v5 = vpop.f32.mrf.mxu0 }
 0x363   : > { %v5205_v42 = vadd.f32 %v5201_v5, %v5027_v15 }
 0x364   : > { %v5203_v25 = vpop.f32.mrf.mxu0 }
 0x365   : > { %v5213_v46 = vadd.f32 %v5613_v7, %v5205_v42 }
 0x367   : > { %5215 = vst.msk [vmem:[%s274_s9] sm:$0xff] %vm5214_vm15, %v5213_v46 }
 0x368   : > { %6001 = shalt.err (!%p5998_p3)
}
 0x369   : > { %s6002_s22 = scalar_lea.hbm %s5228_s16, 128  ;;  %s6006_s29 = scalar_lea.hbm %s8152_s7, 256 }
 0x36a   : > { %p6003_p4 = scmp.ne.s32.totalorder %s5228_s16, %s6002_s22  ;;  %p6007_p9 = scmp.lt.s32.totalorder %s5228_s16, %s8152_s7 }
 0x36b   : > { %p6008_p10 = scmp.lt.s32.totalorder %s6006_s29, %s6002_s22 }
 0x36c   : > { %p6004_p7 = pnand %p6003_p4, %p6131_p5 }
 0x36d   : > { %p6009_p11 = por %p6008_p10, %p6007_p9 }
 0x36e   : > { %p6005_p8 = pneg %p6004_p7 }
 0x370   : > { %p6010_p12 = pnand %p6009_p11, %p6005_p8 }
 0x372   : > { %6013 = shalt.err (!%p6010_p12)
}
 0x373   : > { %5889 = dma.vmem_to_hbm [thread:$0]  (%p6131_p5), %s5231_s13, 128, %s5228_s16, %s5217_s19  }
 0x374 PF: > { %p5895_p13 = scmp.ge.s32.totalorder %s6048_s27, 2  ;;  %s5242_s14 = sand.u32 1, %s6036_s24  }
 0x375   : > { %s5243_s15 = scalar_lea.sflag [#allocation3], %s5242_s14 }
 0x376   : > { %p5892_p0 = pnand %p5895_p13, %p6135_p6 }
 0x378   : > { %p5893_p1 = pneg %p5892_p0 }
 0x37a   : > { %6031 = dma.done.wait (%p5893_p1), %s5243_s15, 128  }
 0x37b   : > { %6033 = vsyncadd (%p5893_p1), %s5243_s15, 4294967168  ;;  %p17_p2 = scmp.ge.s32.totalorder %s6118_s30, 4   ;;  %s8176_s24 = smov %s6040_s25 }
 0x37c   : > { %s8177_s25 = smov %s6044_s26  ;;  %s8178_s26 = smov %s6129_s10 }
 0x37d   : > { %s8179_s27 = smov %s6118_s30  ;;  %19 = sbr.rel (!%p17_p2) target bundleno = 3 (0x3), region = 97 }
 0x382   :  { %5248 = vsyncpa [#allocation3], 1 }
 0x383   :  { %5250 = vsyncpa [#allocation3 + $0x1], 1 }

</bundles_post_ra>
